<compile_context>
chip_gen: v5e
topology: v5e:2x2
jax: 0.10.0
libtpu: 0.0.40
codegen_flags: <defaults>
</compile_context>

<pallas_src>
import jax
import jax.numpy as jnp
from jax.experimental import pallas as pl
from jax.experimental.pallas import tpu as pltpu


def _round_up(x, m):
    return ((x + m - 1) // m) * m


# ----------------------------------------------------------------------------
# Generation-dependent defaults (detected once at import; safe fallbacks).
# ----------------------------------------------------------------------------
def _device_kind():
    try:
        return jax.devices()[0].device_kind.lower()
    except Exception:
        return ""


_KIND = _device_kind()
_IS_V7 = ("v7" in _KIND) or ("7x" in _KIND)
_IS_V5E = ("v5e" in _KIND) or ("v5 lite" in _KIND) or ("v5litepod" in _KIND)
# v5e/v6e have 128 MiB VMEM -> larger tiles; v7x has 64 MiB -> keep 512 caps.
_TN_MAX = 512 if _IS_V7 else 1024
_TK_MAX = 512 if _IS_V7 else 1024
_TM_DEFAULT = 512 if _IS_V5E else 256
# v7x has 2 TensorCores per chip: split the GRU batch across them (1 elsewhere).
_GRU_BATCH_SPLITS = 2 if _IS_V7 else 1


# ----------------------------------------------------------------------------
# Generic fused matmul:  out = post( A @ B + bias ), tiled (M, N, K) on the MXU
#   - A and B are bf16 (cast/padded on the host), f32 accumulation.
#   - f32 outputs accumulate directly in the output block (no scratch);
#     bf16 outputs use a small f32 VMEM scratch accumulator.
#   - epilogue: bias add (BatchNorm folded on host), Hardtanh clamp,
#     per-row time-length mask, log_softmax (padded logits get -1e30 bias).
# ----------------------------------------------------------------------------
def _make_matmul_kernel(clamp, log_softmax, has_mask, acc_in_out):
    def kernel(*refs):
        if has_mask:
            a_ref, b_ref, bias_ref, mask_ref = refs[:4]
            rest = refs[4:]
        else:
            a_ref, b_ref, bias_ref = refs[:3]
            mask_ref = None
            rest = refs[3:]
        if acc_in_out:
            (o_ref,) = rest
            acc_ref = o_ref
        else:
            o_ref, acc_ref = rest

        k = pl.program_id(2)

        @pl.when(k == 0)
        def _init():
            acc_ref[...] = jnp.zeros_like(acc_ref)

        # bf16 operands (no in-kernel cast), f32 accumulation on the MXU.
        acc_ref[...] += jnp.dot(a_ref[...], b_ref[...],
                                preferred_element_type=jnp.float32)

        @pl.when(k == pl.num_programs(2) - 1)
        def _finalize():
            z = acc_ref[...] + bias_ref[...]
            if clamp is not None:
                z = jnp.clip(z, clamp[0], clamp[1])
            if has_mask:
                z = z * mask_ref[...]          # fused time-length mask
            if log_softmax:
                m = jnp.max(z, axis=-1, keepdims=True)
                z = z - m
                z = z - jnp.log(jnp.sum(jnp.exp(z), axis=-1, keepdims=True))
            o_ref[...] = z.astype(o_ref.dtype)

    return kernel


def _pick_tn(Np, tn_max):
    """Largest multiple-of-128 tile <= tn_max that divides the padded width."""
    units = Np // 128
    max_units = max(1, tn_max // 128)
    if units <= max_units:
        return Np
    for u in range(max_units, 0, -1):
        if units % u == 0:
            return u * 128
    return 128


def pallas_matmul(a, b, bias, *, clamp=None, row_mask=None, log_softmax=False,
                  out_dtype=jnp.float32, tm=None, tn_max=None, tk_max=None):
    """Returns (M, Np) with Np = N padded up to a multiple of 128 (lane dense)."""
    assert not (row_mask is not None and log_softmax), \
        "row_mask + log_softmax would produce bogus uniform rows"
    if tm is None:
        tm = _TM_DEFAULT
    if tn_max is None:
        tn_max = _TN_MAX
    if tk_max is None:
        tk_max = _TK_MAX

    M, K = a.shape
    Kb, N = b.shape
    assert K == Kb

    Np = _round_up(N, 128)
    tn = _pick_tn(Np, tn_max)

    Kp0 = _round_up(K, 128)
    if Kp0 <= tk_max:
        tk, Kp = Kp0, Kp0
    else:
        tk = tk_max
        Kp = _round_up(K, tk)

    tm_eff = min(tm, _round_up(M, 8))
    Mp = _round_up(M, tm_eff)

    # Host-side bf16 cast + padding (no per-K in-kernel casts).
    a_p = a.astype(jnp.bfloat16)
    if (Mp, Kp) != (M, K):
        a_p = jnp.pad(a_p, ((0, Mp - M), (0, Kp - K)))
    b_p = b.astype(jnp.bfloat16)
    if (Kp, Np) != (K, N):
        b_p = jnp.pad(b_p, ((0, Kp - K), (0, Np - N)))
    pad_val = -1e30 if log_softmax else 0.0      # padded logits must not win softmax
    bias_p = jnp.reshape(bias, (1, N)).astype(jnp.float32)
    if Np != N:
        bias_p = jnp.pad(bias_p, ((0, 0), (0, Np - N)), constant_values=pad_val)

    has_mask = row_mask is not None
    acc_in_out = (out_dtype == jnp.float32)

    operands = [a_p, b_p, bias_p]
    in_specs = [
        pl.BlockSpec((tm_eff, tk), lambda i, j, k: (i, k)),
        pl.BlockSpec((tk, tn), lambda i, j, k: (k, j)),
        pl.BlockSpec((1, tn), lambda i, j, k: (0, j)),
    ]
    if has_mask:
        m_p = jnp.reshape(row_mask, (M, 1)).astype(jnp.float32)
        if Mp != M:
            m_p = jnp.pad(m_p, ((0, Mp - M), (0, 0)))
        operands.append(m_p)
        in_specs.append(pl.BlockSpec((tm_eff, 1), lambda i, j, k: (i, 0)))

    if log_softmax:
        assert tn == Np, "log_softmax needs the full (padded) class dim in one tile"

    scratch = [] if acc_in_out else [pltpu.VMEM((tm_eff, tn), jnp.float32)]

    out = pl.pallas_call(
        _make_matmul_kernel(clamp, log_softmax, has_mask, acc_in_out),
        out_shape=jax.ShapeDtypeStruct((Mp, Np), out_dtype),
        grid=(Mp // tm_eff, Np // tn, Kp // tk),
        in_specs=in_specs,
        out_specs=pl.BlockSpec((tm_eff, tn), lambda i, j, k: (i, j)),
        scratch_shapes=scratch,
        compiler_params=pltpu.CompilerParams(
            dimension_semantics=("parallel", "parallel", "arbitrary")),
    )(*operands)
    return out[:M]


# ----------------------------------------------------------------------------
# Fused bidirectional GRU layer: single pallas_call with grid=(splits, T)
#   gx columns: [r_f, z_f, n_f | r_b, z_b, n_b], each gate block Hp (mult. 128).
#   fwd gate half read at time t, bwd gate half at time T-1-t (two BlockSpecs
#   over the same bf16 tensor).  W_hh split per direction (no structural zeros).
#   Hidden state carried in f32 VMEM scratch; per-sequence length masking
#   (packed-sequence emulation) from the lengths vector.  Outputs (one per
#   direction) are bf16 and already time-aligned; caller just adds them.
# ----------------------------------------------------------------------------
def _make_bigru_kernel(Hp, T):
    def kernel(len_ref, gxf_ref, gxb_ref, whhf_ref, whhb_ref, bhhf_ref, bhhb_ref,
               yf_ref, yb_ref, hf_ref, hb_ref):
        t = pl.program_id(1)

        @pl.when(t == 0)
        def _init():
            hf_ref[...] = jnp.zeros_like(hf_ref)
            hb_ref[...] = jnp.zeros_like(hb_ref)

        lens = len_ref[...]                                   # (Bph, 1) int32

        def direction(h_ref, gx_ref, whh_ref, bhh_ref, y_ref, time_idx):
            h = h_ref[...]                                    # (Bph, Hp) f32
            gh = jnp.dot(h.astype(jnp.bfloat16), whh_ref[...],
                         preferred_element_type=jnp.float32) + bhh_ref[...]
            gx = gx_ref[0].astype(jnp.float32)                # (Bph, 3Hp)
            # sigmoid(x) == 0.5*(tanh(x/2)+1)  (EUP-friendly, exact)
            rz = 0.5 * (jnp.tanh(0.5 * (gx[:, :2 * Hp] + gh[:, :2 * Hp])) + 1.0)
            r = rz[:, :Hp]
            z = rz[:, Hp:]
            n = jnp.tanh(gx[:, 2 * Hp:] + r * gh[:, 2 * Hp:])
            h_new = (1.0 - z) * n + z * h
            valid = time_idx < lens                           # (Bph, 1) bool
            h_ref[...] = jnp.where(valid, h_new, h)           # packed-seq emulation
            y_ref[0] = jnp.where(valid, h_new, 0.0).astype(y_ref.dtype)

        direction(hf_ref, gxf_ref, whhf_ref, bhhf_ref, yf_ref, t)
        direction(hb_ref, gxb_ref, whhb_ref, bhhb_ref, yb_ref, T - 1 - t)

    return kernel


def bigru_layer(h_tm, lens_p, lp, splits):
    """h_tm: (T, Bp, F) bf16 time-major; returns (T, Bp, Hp) bf16 (directions summed)."""
    T, Bp, F = h_tm.shape
    Hp = lp["w_in"].shape[1] // 6
    Bph = Bp // splits

    # Input projections for both directions/gates in ONE lane-dense bf16 matmul.
    gx = pallas_matmul(h_tm.reshape(T * Bp, F), lp["w_in"], lp["b_in"],
                       out_dtype=jnp.bfloat16)
    gx = gx[:, :6 * Hp].reshape(T, Bp, 6 * Hp)

    yf, yb = pl.pallas_call(
        _make_bigru_kernel(Hp, T),
        out_shape=[jax.ShapeDtypeStruct((T, Bp, Hp), jnp.bfloat16)] * 2,
        grid=(splits, T),
        in_specs=[
            pl.BlockSpec((Bph, 1), lambda b, t: (b, 0)),                     # lengths (resident)
            pl.BlockSpec((1, Bph, 3 * Hp), lambda b, t: (t, b, 0)),          # gx fwd gates @ t
            pl.BlockSpec((1, Bph, 3 * Hp), lambda b, t: (T - 1 - t, b, 1)),  # gx bwd gates @ T-1-t
            pl.BlockSpec((Hp, 3 * Hp), lambda b, t: (0, 0)),                 # W_hh fwd (resident)
            pl.BlockSpec((Hp, 3 * Hp), lambda b, t: (0, 0)),                 # W_hh bwd (resident)
            pl.BlockSpec((1, 3 * Hp), lambda b, t: (0, 0)),                  # b_hh fwd (resident)
            pl.BlockSpec((1, 3 * Hp), lambda b, t: (0, 0)),                  # b_hh bwd (resident)
        ],
        out_specs=[
            pl.BlockSpec((1, Bph, Hp), lambda b, t: (t, b, 0)),              # fwd hidden @ t
            pl.BlockSpec((1, Bph, Hp), lambda b, t: (T - 1 - t, b, 0)),      # bwd hidden @ T-1-t
        ],
        scratch_shapes=[pltpu.VMEM((Bph, Hp), jnp.float32),
                        pltpu.VMEM((Bph, Hp), jnp.float32)],
        compiler_params=pltpu.CompilerParams(
            dimension_semantics=("parallel", "arbitrary")),
    )(lens_p, gx, gx, lp["whh_f"], lp["whh_b"], lp["bhh_f"], lp["bhh_b"])

    # sum_directions=True; outputs are already time-aligned (no reverse/transpose).
    return yf + yb


# ----------------------------------------------------------------------------
# Conv2d (+ eval BatchNorm2d + Hardtanh(0,20) + time-length mask) via
# bf16 im2col + the fused Pallas matmul (BN folded on host, mask in epilogue).
# ----------------------------------------------------------------------------
def _im2col(x, kh, kw, sh, sw, ph, pw):
    B, C, H, W = x.shape
    xp = jnp.pad(x, ((0, 0), (0, 0), (ph, ph), (pw, pw)))
    Ho = (H + 2 * ph - kh) // sh + 1
    Wo = (W + 2 * pw - kw) // sw + 1
    ri = (jnp.arange(Ho) * sh)[:, None] + jnp.arange(kh)[None, :]   # (Ho, kh)
    ci = (jnp.arange(Wo) * sw)[:, None] + jnp.arange(kw)[None, :]   # (Wo, kw)
    p = xp[:, :, ri]                 # (B, C, Ho, kh, Wp)
    p = p[:, :, :, :, ci]            # (B, C, Ho, kh, Wo, kw)
    p = p.transpose(0, 2, 4, 1, 3, 5)        # (B, Ho, Wo, C, kh, kw)
    return p.reshape(B * Ho * Wo, C * kh * kw), Ho, Wo


def conv_out_len(l, k, s, p):
    return (l + 2 * p - (k - 1) - 1) // s + 1


def conv_block(x, wm, bias, *, stride, padding, ksize, lengths):
    kh, kw = ksize
    sh, sw = stride
    ph, pw = padding
    B = x.shape[0]
    patches, Ho, Wo = _im2col(x.astype(jnp.bfloat16), kh, kw, sh, sw, ph, pw)
    l_out = conv_out_len(lengths, kw, sw, pw)                    # time-axis lengths
    tmask = (jnp.arange(Wo)[None, :] < l_out[:, None]).astype(jnp.float32)   # (B, Wo)
    rmask = jnp.broadcast_to(tmask[:, None, :], (B, Ho, Wo)).reshape(B * Ho * Wo)
    y = pallas_matmul(patches, wm, bias, clamp=(0.0, 20.0), row_mask=rmask,
                      out_dtype=jnp.bfloat16)
    return y, Ho, Wo, l_out


# ----------------------------------------------------------------------------
# One-time weight packing / BatchNorm folding (run OUTSIDE the jitted forward).
# ----------------------------------------------------------------------------
def _bn_fold(bn):
    gamma, beta, rm, rv = bn
    scale = gamma / jnp.sqrt(rv + 1e-5)
    shift = beta - rm * scale
    return scale, shift


def _pack_gru_layer(lp, in_scale, in_shift, f_in):
    wih_f, whh_f, bih_f, bhh_f = lp["fwd"]
    wih_b, whh_b, bih_b, bhh_b = lp["bwd"]
    H = whh_f.shape[1]
    F = wih_f.shape[1]
    Hp = _round_up(H, 128)

    def fold_in(wih, bih):
        w = wih.T.astype(jnp.float32)            # (F, 3H), gate order r|z|n
        if in_scale is not None:                 # SequenceWise BatchNorm (eval) folded
            b = in_shift @ w + bih
            w = in_scale[:, None] * w
        else:
            b = bih.astype(jnp.float32)
        wp = jnp.concatenate(
            [jnp.pad(w[:, g * H:(g + 1) * H], ((0, f_in - F), (0, Hp - H)))
             for g in range(3)], axis=1)         # (f_in, 3Hp)
        bp = jnp.concatenate(
            [jnp.pad(b[g * H:(g + 1) * H], (0, Hp - H)) for g in range(3)])
        return wp, bp

    w_f, b_f = fold_in(wih_f, bih_f)
    w_b, b_b = fold_in(wih_b, bih_b)
    w_in = jnp.concatenate([w_f, w_b], axis=1).astype(jnp.bfloat16)   # (f_in, 6Hp)
    b_in = jnp.concatenate([b_f, b_b]).reshape(1, 6 * Hp)

    def pack_hh(whh, bhh):
        w = whh.T.astype(jnp.float32)            # (H, 3H)
        wp = jnp.concatenate(
            [jnp.pad(w[:, g * H:(g + 1) * H], ((0, Hp - H), (0, Hp - H)))
             for g in range(3)], axis=1).astype(jnp.bfloat16)         # (Hp, 3Hp)
        bp = jnp.concatenate(
            [jnp.pad(bhh[g * H:(g + 1) * H].astype(jnp.float32), (0, Hp - H))
             for g in range(3)]).reshape(1, 3 * Hp)
        return wp, bp

    whh_fp, bhh_fp = pack_hh(whh_f, bhh_f)
    whh_bp, bhh_bp = pack_hh(whh_b, bhh_b)
    return {"w_in": w_in, "b_in": b_in,
            "whh_f": whh_fp, "whh_b": whh_bp,
            "bhh_f": bhh_fp, "bhh_b": bhh_bp}


def prepare_params(params):
    packed = {}
    for idx in (1, 2):
        w = params[f"conv{idx}_w"]
        scale, shift = _bn_fold(params[f"bn{idx}"])
        Cout = w.shape[0]
        wm = (w.reshape(Cout, -1).T.astype(jnp.float32) * scale[None, :])
        packed[f"conv{idx}"] = {"w": wm.astype(jnp.bfloat16),
                                "bias": params[f"conv{idx}_b"] * scale + shift}

    layers = []
    for li, lp in enumerate(params["rnn_layers"]):
        in_scale = in_shift = None
        if lp["bn"] is not None:
            in_scale, in_shift = _bn_fold(lp["bn"])
        F = lp["fwd"][0].shape[1]
        f_in = F if li == 0 else _round_up(F, 128)   # inner layers see Hp-wide inputs
        layers.append(_pack_gru_layer(lp, in_scale, in_shift, f_in))
    packed["rnn_layers"] = layers

    s, ish = _bn_fold(params["fc_bn"])
    W = params["fc_w"].T.astype(jnp.float32)         # (H, C)
    H = W.shape[0]
    Hp = _round_up(H, 128)
    packed["fc_w"] = jnp.pad(s[:, None] * W, ((0, Hp - H), (0, 0))).astype(jnp.bfloat16)
    packed["fc_bias"] = ish @ W                      # (C,)
    return packed


# ----------------------------------------------------------------------------
# Full model forward (inference mode)
# ----------------------------------------------------------------------------
def ds2_forward(packed, x, lengths):
    B, T, N = x.shape
    xc = jnp.transpose(x[:, None, :, :], (0, 1, 3, 2)).astype(jnp.bfloat16)  # (B,1,N,T)

    # conv block 1: Conv2d(1,32,(41,11),(2,2),(20,5)) + BN + Hardtanh + mask
    y1, H1, W1, l1 = conv_block(xc, packed["conv1"]["w"], packed["conv1"]["bias"],
                                stride=(2, 2), padding=(20, 5), ksize=(41, 11),
                                lengths=lengths)
    C1 = packed["conv1"]["bias"].shape[0]
    x1 = y1[:, :C1].reshape(B, H1, W1, C1).transpose(0, 3, 1, 2)   # (B,C,H1,W1) bf16

    # conv block 2: Conv2d(32,32,(21,11),(2,1),(10,5)) + BN + Hardtanh + mask
    y2, H2, W2, l2 = conv_block(x1, packed["conv2"]["w"], packed["conv2"]["bias"],
                                stride=(2, 1), padding=(10, 5), ksize=(21, 11),
                                lengths=l1)
    C2 = packed["conv2"]["bias"].shape[0]

    # (B,C,D,T') -> time-major (T', Bp, C*D); batch padded ONCE for all RNN layers.
    splits = _GRU_BATCH_SPLITS
    Bp = _round_up(B, 8 * splits)
    h = y2[:, :C2].reshape(B, H2, W2, C2).transpose(2, 0, 3, 1).reshape(W2, B, C2 * H2)
    h = jnp.pad(h, ((0, 0), (0, Bp - B), (0, 0)))                  # (T',Bp,F0) bf16
    lens_p = jnp.pad(l2.astype(jnp.int32), (0, Bp - B)).reshape(Bp, 1)

    # DeepBatchRNN: stacked bidirectional GRUs, directions summed.
    for lp in packed["rnn_layers"]:
        h = bigru_layer(h, lens_p, lp, splits)                     # (T',Bp,Hp) bf16

    # fc: SequenceWise(BatchNorm1d + Linear(H, C, bias=False)) + log_softmax (eval)
    Tc, _, Hp = h.shape
    Wf = packed["fc_w"]
    C_out = Wf.shape[1]
    out = pallas_matmul(h.reshape(Tc * Bp, Hp), Wf, packed["fc_bias"],
                        log_softmax=True, out_dtype=jnp.float32)
    out = out[:, :C_out].reshape(Tc, Bp, C_out)[:, :B].transpose(1, 0, 2)
    return out, l2


# ----------------------------------------------------------------------------
# Deterministic parameter initialization (shapes per the module's __init__)
# ----------------------------------------------------------------------------
def init_params(key, input_dim, hidden, num_layers, num_classes):
    keys = iter(jax.random.split(key, 64))

    def nrm(shape, scale=0.1):
        return scale * jax.random.normal(next(keys), shape, jnp.float32)

    def bn(n):
        return (1.0 + 0.1 * jax.random.normal(next(keys), (n,), jnp.float32),   # gamma
                0.1 * jax.random.normal(next(keys), (n,), jnp.float32),          # beta
                0.1 * jax.random.normal(next(keys), (n,), jnp.float32),          # running mean
                1.0 + 0.1 * jnp.abs(jax.random.normal(next(keys), (n,),          # running var
                                                      jnp.float32)))

    p = {}
    p["conv1_w"] = nrm((32, 1, 41, 11))
    p["conv1_b"] = nrm((32,))
    p["bn1"] = bn(32)
    p["conv2_w"] = nrm((32, 32, 21, 11), scale=0.02)
    p["conv2_b"] = nrm((32,))
    p["bn2"] = bn(32)

    d1 = (input_dim + 2 * 20 - (41 - 1) - 1) // 2 + 1
    d2 = (d1 + 2 * 10 - (21 - 1) - 1) // 2 + 1
    rnn_in = d2 * 32

    layers = []
    in_size = rnn_in
    for li in range(num_layers):
        lp = {"bn": bn(in_size) if li > 0 else None}
        for dname in ("fwd", "bwd"):
            lp[dname] = (nrm((3 * hidden, in_size)),   # W_ih  (r|z|n)
                         nrm((3 * hidden, hidden)),    # W_hh
                         nrm((3 * hidden,)),           # b_ih
                         nrm((3 * hidden,)))           # b_hh
        layers.append(lp)
        in_size = hidden
    p["rnn_layers"] = layers

    p["fc_bn"] = bn(hidden)
    p["fc_w"] = nrm((num_classes, hidden))
    return p, rnn_in


# ----------------------------------------------------------------------------
if __name__ == "__main__":
    key = jax.random.PRNGKey(0)
    kx, kp = jax.random.split(key)

    # Small shapes consistent with the module (window_size=30 -> 16 features).
    B, T = 2, 16
    window_size = 30
    input_dim = window_size // 2 + 1       # 16
    hidden = 32                            # rnn_hidden_size (small)
    num_rnn_layers = 2
    num_classes = 29

    params, rnn_in = init_params(kp, input_dim, hidden, num_rnn_layers, num_classes)
    packed = prepare_params(params)        # BN folding / weight packing, outside the jit

    x = jax.random.normal(kx, (B, T, input_dim), jnp.float32)
    lengths = jnp.array([16, 12], jnp.int32)

    fwd = jax.jit(ds2_forward)
    out, out_lens = fwd(packed, x, lengths)
    out = jax.block_until_ready(out)
    out_lens = jax.block_until_ready(out_lens)

    assert out.shape == (B, 8, num_classes), out.shape
    assert [int(v) for v in out_lens] == [8, 6]
    assert bool(jnp.all(jnp.isfinite(out)))
    # log_softmax rows should exponentiate-sum to ~1
    assert jnp.allclose(jnp.exp(out).sum(-1), 1.0, atol=1e-3)
    print("KERNEL_OK")
</pallas_src>

<mosaic_0001>
module attributes {stable_mosaic.version = 11 : i64} {
  func.func @kernel(%arg0: i32, %arg1: i32, %arg2: i32, %arg3: memref<128x512xbf16, #tpu.memory_space<vmem>>, %arg4: memref<512x128xbf16, #tpu.memory_space<vmem>>, %arg5: memref<1x128xf32, #tpu.memory_space<vmem>>, %arg6: memref<128x1xf32, #tpu.memory_space<vmem>>, %arg7: memref<128x128xbf16, #tpu.memory_space<vmem>>, %arg8: memref<128x128xf32, #tpu.memory_space<vmem>>) attributes {dimension_semantics = [#tpu.dimension_semantics<parallel>, #tpu.dimension_semantics<parallel>, #tpu.dimension_semantics<arbitrary>], iteration_bounds = array<i64: 1, 1, 1>, scalar_prefetch = 0 : i64, scratch_operands = 1 : i64, tpu.core_type = #tpu.core_type<tc>, window_params = [{transform_indices = @transform_0, window_bounds = array<i64: 128, 512>}, {transform_indices = @transform_1, window_bounds = array<i64: 512, 128>}, {transform_indices = @transform_2, window_bounds = array<i64: 1, 128>}, {transform_indices = @transform_3, window_bounds = array<i64: 128, 1>}, {transform_indices = @transform_4, window_bounds = array<i64: 128, 128>}]} {
    %c0_i32 = arith.constant 0 : i32
    %0 = arith.cmpi eq, %arg2, %c0_i32 : i32
    %1 = arith.extui %0 : i1 to i32
    %c0_i32_0 = arith.constant 0 : i32
    %2 = arith.cmpi ne, %1, %c0_i32_0 : i32
    scf.if %2 {
      %cst_10 = arith.constant 0.000000e+00 : f32
      %12 = vector.broadcast %cst_10 : f32 to vector<128x128xf32>
      %c0_11 = arith.constant 0 : index
      %c0_12 = arith.constant 0 : index
      %13 = vector.load %arg8[%c0_11, %c0_12] : memref<128x128xf32, #tpu.memory_space<vmem>>, vector<128x128xf32>
      tpu.vector_store %arg8[%c0_11, %c0_12], %12 {strides = array<i32>} : memref<128x128xf32, #tpu.memory_space<vmem>>, vector<128x128xf32>,
    } else {
    }
    %c0 = arith.constant 0 : index
    %c0_1 = arith.constant 0 : index
    %3 = vector.load %arg8[%c0, %c0_1] : memref<128x128xf32, #tpu.memory_space<vmem>>, vector<128x128xf32>
    %c0_2 = arith.constant 0 : index
    %c0_3 = arith.constant 0 : index
    %4 = vector.load %arg3[%c0_2, %c0_3] : memref<128x512xbf16, #tpu.memory_space<vmem>>, vector<128x512xbf16>
    %c0_4 = arith.constant 0 : index
    %c0_5 = arith.constant 0 : index
    %5 = vector.load %arg4[%c0_4, %c0_5] : memref<512x128xbf16, #tpu.memory_space<vmem>>, vector<512x128xbf16>
    %cst = arith.constant dense<0.000000e+00> : vector<128x128xf32>
    %6 = tpu.matmul %4, %5, %cst {dimension_numbers = #tpu.dot_dimension_numbers<[1], [0], [0], [1], [0, 0, 1, 1], [], []>} : vector<128x512xbf16>, vector<512x128xbf16>, vector<128x128xf32> -> vector<128x128xf32>
    %7 = arith.addf %3, %6 : vector<128x128xf32>
    %c0_6 = arith.constant 0 : index
    %c0_7 = arith.constant 0 : index
    %8 = vector.load %arg8[%c0_6, %c0_7] : memref<128x128xf32, #tpu.memory_space<vmem>>, vector<128x128xf32>
    tpu.vector_store %arg8[%c0_6, %c0_7], %7 {strides = array<i32>} : memref<128x128xf32, #tpu.memory_space<vmem>>, vector<128x128xf32>,
    %c0_i32_8 = arith.constant 0 : i32
    %9 = arith.cmpi eq, %arg2, %c0_i32_8 : i32
    %10 = arith.extui %9 : i1 to i32
    %c0_i32_9 = arith.constant 0 : i32
    %11 = arith.cmpi ne, %10, %c0_i32_9 : i32
    scf.if %11 {
      %c0_10 = arith.constant 0 : index
      %c0_11 = arith.constant 0 : index
      %12 = vector.load %arg8[%c0_10, %c0_11] : memref<128x128xf32, #tpu.memory_space<vmem>>, vector<128x128xf32>
      %c0_12 = arith.constant 0 : index
      %c0_13 = arith.constant 0 : index
      %13 = vector.load %arg5[%c0_12, %c0_13] : memref<1x128xf32, #tpu.memory_space<vmem>>, vector<1x128xf32>
      %14 = vector.broadcast %13 : vector<1x128xf32> to vector<128x128xf32>
      %15 = arith.addf %12, %14 : vector<128x128xf32>
      %cst_14 = arith.constant 0.000000e+00 : f32
      %cst_15 = arith.constant 2.000000e+01 : f32
      %16 = vector.broadcast %cst_14 : f32 to vector<128x128xf32>
      %17 = arith.maximumf %16, %15 : vector<128x128xf32>
      %18 = vector.broadcast %cst_15 : f32 to vector<128x128xf32>
      %19 = arith.minimumf %18, %17 : vector<128x128xf32>
      %c0_16 = arith.constant 0 : index
      %c0_17 = arith.constant 0 : index
      %20 = vector.load %arg6[%c0_16, %c0_17] : memref<128x1xf32, #tpu.memory_space<vmem>>, vector<128x1xf32>
      %21 = vector.broadcast %20 : vector<128x1xf32> to vector<128x128xf32>
      %22 = arith.mulf %19, %21 : vector<128x128xf32>
      %23 = arith.truncf %22 : vector<128x128xf32> to vector<128x128xbf16>
      %c0_18 = arith.constant 0 : index
      %c0_19 = arith.constant 0 : index
      %24 = vector.load %arg7[%c0_18, %c0_19] : memref<128x128xbf16, #tpu.memory_space<vmem>>, vector<128x128xbf16>
      tpu.vector_store %arg7[%c0_18, %c0_19], %23 {strides = array<i32>} : memref<128x128xbf16, #tpu.memory_space<vmem>>, vector<128x128xbf16>,
    } else {
    }
    return
  }
  func.func @transform_0(%arg0: i32, %arg1: i32, %arg2: i32) -> (i32, i32) {
    %c0_i32 = arith.constant 0 : i32
    return %arg0, %arg2 : i32, i32
  }
  func.func @transform_1(%arg0: i32, %arg1: i32, %arg2: i32) -> (i32, i32) {
    %c0_i32 = arith.constant 0 : i32
    return %arg2, %arg1 : i32, i32
  }
  func.func @transform_2(%arg0: i32, %arg1: i32, %arg2: i32) -> (i32, i32) {
    %c0_i32 = arith.constant 0 : i32
    %c0_i32_0 = arith.constant 0 : i32
    return %c0_i32, %arg1 : i32, i32
  }
  func.func @transform_3(%arg0: i32, %arg1: i32, %arg2: i32) -> (i32, i32) {
    %c0_i32 = arith.constant 0 : i32
    %c0_i32_0 = arith.constant 0 : i32
    return %arg0, %c0_i32 : i32, i32
  }
  func.func @transform_4(%arg0: i32, %arg1: i32, %arg2: i32) -> (i32, i32) {
    %c0_i32 = arith.constant 0 : i32
    return %arg0, %arg1 : i32, i32
  }
}

module attributes {stable_mosaic.version = 11 : i64} {
  func.func @kernel(%arg0: i32, %arg1: i32, %arg2: i32, %arg3: memref<64x1024xbf16, #tpu.memory_space<vmem>>, %arg4: memref<1024x128xbf16, #tpu.memory_space<vmem>>, %arg5: memref<1x128xf32, #tpu.memory_space<vmem>>, %arg6: memref<64x1xf32, #tpu.memory_space<vmem>>, %arg7: memref<64x128xbf16, #tpu.memory_space<vmem>>, %arg8: memref<64x128xf32, #tpu.memory_space<vmem>>) attributes {dimension_semantics = [#tpu.dimension_semantics<parallel>, #tpu.dimension_semantics<parallel>, #tpu.dimension_semantics<arbitrary>], iteration_bounds = array<i64: 1, 1, 8>, scalar_prefetch = 0 : i64, scratch_operands = 1 : i64, tpu.core_type = #tpu.core_type<tc>, window_params = [{transform_indices = @transform_0, window_bounds = array<i64: 64, 1024>}, {transform_indices = @transform_1, window_bounds = array<i64: 1024, 128>}, {transform_indices = @transform_2, window_bounds = array<i64: 1, 128>}, {transform_indices = @transform_3, window_bounds = array<i64: 64, 1>}, {transform_indices = @transform_4, window_bounds = array<i64: 64, 128>}]} {
    %c0_i32 = arith.constant 0 : i32
    %0 = arith.cmpi eq, %arg2, %c0_i32 : i32
    %1 = arith.extui %0 : i1 to i32
    %c0_i32_0 = arith.constant 0 : i32
    %2 = arith.cmpi ne, %1, %c0_i32_0 : i32
    scf.if %2 {
      %cst_9 = arith.constant 0.000000e+00 : f32
      %12 = vector.broadcast %cst_9 : f32 to vector<64x128xf32>
      %c0_10 = arith.constant 0 : index
      %c0_11 = arith.constant 0 : index
      %13 = vector.load %arg8[%c0_10, %c0_11] : memref<64x128xf32, #tpu.memory_space<vmem>>, vector<64x128xf32>
      tpu.vector_store %arg8[%c0_10, %c0_11], %12 {strides = array<i32>} : memref<64x128xf32, #tpu.memory_space<vmem>>, vector<64x128xf32>,
    } else {
    }
    %c0 = arith.constant 0 : index
    %c0_1 = arith.constant 0 : index
    %3 = vector.load %arg8[%c0, %c0_1] : memref<64x128xf32, #tpu.memory_space<vmem>>, vector<64x128xf32>
    %c0_2 = arith.constant 0 : index
    %c0_3 = arith.constant 0 : index
    %4 = vector.load %arg3[%c0_2, %c0_3] : memref<64x1024xbf16, #tpu.memory_space<vmem>>, vector<64x1024xbf16>
    %c0_4 = arith.constant 0 : index
    %c0_5 = arith.constant 0 : index
    %5 = vector.load %arg4[%c0_4, %c0_5] : memref<1024x128xbf16, #tpu.memory_space<vmem>>, vector<1024x128xbf16>
    %cst = arith.constant dense<0.000000e+00> : vector<64x128xf32>
    %6 = tpu.matmul %4, %5, %cst {dimension_numbers = #tpu.dot_dimension_numbers<[1], [0], [0], [1], [0, 0, 1, 1], [], []>} : vector<64x1024xbf16>, vector<1024x128xbf16>, vector<64x128xf32> -> vector<64x128xf32>
    %7 = arith.addf %3, %6 : vector<64x128xf32>
    %c0_6 = arith.constant 0 : index
    %c0_7 = arith.constant 0 : index
    %8 = vector.load %arg8[%c0_6, %c0_7] : memref<64x128xf32, #tpu.memory_space<vmem>>, vector<64x128xf32>
    tpu.vector_store %arg8[%c0_6, %c0_7], %7 {strides = array<i32>} : memref<64x128xf32, #tpu.memory_space<vmem>>, vector<64x128xf32>,
    %c7_i32 = arith.constant 7 : i32
    %9 = arith.cmpi eq, %arg2, %c7_i32 : i32
    %10 = arith.extui %9 : i1 to i32
    %c0_i32_8 = arith.constant 0 : i32
    %11 = arith.cmpi ne, %10, %c0_i32_8 : i32
    scf.if %11 {
      %c0_9 = arith.constant 0 : index
      %c0_10 = arith.constant 0 : index
      %12 = vector.load %arg8[%c0_9, %c0_10] : memref<64x128xf32, #tpu.memory_space<vmem>>, vector<64x128xf32>
      %c0_11 = arith.constant 0 : index
      %c0_12 = arith.constant 0 : index
      %13 = vector.load %arg5[%c0_11, %c0_12] : memref<1x128xf32, #tpu.memory_space<vmem>>, vector<1x128xf32>
      %14 = vector.broadcast %13 : vector<1x128xf32> to vector<64x128xf32>
      %15 = arith.addf %12, %14 : vector<64x128xf32>
      %cst_13 = arith.constant 0.000000e+00 : f32
      %cst_14 = arith.constant 2.000000e+01 : f32
      %16 = vector.broadcast %cst_13 : f32 to vector<64x128xf32>
      %17 = arith.maximumf %16, %15 : vector<64x128xf32>
      %18 = vector.broadcast %cst_14 : f32 to vector<64x128xf32>
      %19 = arith.minimumf %18, %17 : vector<64x128xf32>
      %c0_15 = arith.constant 0 : index
      %c0_16 = arith.constant 0 : index
      %20 = vector.load %arg6[%c0_15, %c0_16] : memref<64x1xf32, #tpu.memory_space<vmem>>, vector<64x1xf32>
      %21 = vector.broadcast %20 : vector<64x1xf32> to vector<64x128xf32>
      %22 = arith.mulf %19, %21 : vector<64x128xf32>
      %23 = arith.truncf %22 : vector<64x128xf32> to vector<64x128xbf16>
      %c0_17 = arith.constant 0 : index
      %c0_18 = arith.constant 0 : index
      %24 = vector.load %arg7[%c0_17, %c0_18] : memref<64x128xbf16, #tpu.memory_space<vmem>>, vector<64x128xbf16>
      tpu.vector_store %arg7[%c0_17, %c0_18], %23 {strides = array<i32>} : memref<64x128xbf16, #tpu.memory_space<vmem>>, vector<64x128xbf16>,
    } else {
    }
    return
  }
  func.func @transform_0(%arg0: i32, %arg1: i32, %arg2: i32) -> (i32, i32) {
    %c0_i32 = arith.constant 0 : i32
    return %arg0, %arg2 : i32, i32
  }
  func.func @transform_1(%arg0: i32, %arg1: i32, %arg2: i32) -> (i32, i32) {
    %c0_i32 = arith.constant 0 : i32
    return %arg2, %arg1 : i32, i32
  }
  func.func @transform_2(%arg0: i32, %arg1: i32, %arg2: i32) -> (i32, i32) {
    %c0_i32 = arith.constant 0 : i32
    %c0_i32_0 = arith.constant 0 : i32
    return %c0_i32, %arg1 : i32, i32
  }
  func.func @transform_3(%arg0: i32, %arg1: i32, %arg2: i32) -> (i32, i32) {
    %c0_i32 = arith.constant 0 : i32
    %c0_i32_0 = arith.constant 0 : i32
    return %arg0, %c0_i32 : i32, i32
  }
  func.func @transform_4(%arg0: i32, %arg1: i32, %arg2: i32) -> (i32, i32) {
    %c0_i32 = arith.constant 0 : i32
    return %arg0, %arg1 : i32, i32
  }
}

module attributes {stable_mosaic.version = 11 : i64} {
  func.func @kernel(%arg0: i32, %arg1: i32, %arg2: memref<8x1xi32, #tpu.memory_space<vmem>>, %arg3: memref<1x8x384xbf16, #tpu.memory_space<vmem>>, %arg4: memref<1x8x384xbf16, #tpu.memory_space<vmem>>, %arg5: memref<128x384xbf16, #tpu.memory_space<vmem>>, %arg6: memref<128x384xbf16, #tpu.memory_space<vmem>>, %arg7: memref<1x384xf32, #tpu.memory_space<vmem>>, %arg8: memref<1x384xf32, #tpu.memory_space<vmem>>, %arg9: memref<1x8x128xbf16, #tpu.memory_space<vmem>>, %arg10: memref<1x8x128xbf16, #tpu.memory_space<vmem>>, %arg11: memref<8x128xf32, #tpu.memory_space<vmem>>, %arg12: memref<8x128xf32, #tpu.memory_space<vmem>>) attributes {dimension_semantics = [#tpu.dimension_semantics<parallel>, #tpu.dimension_semantics<arbitrary>], iteration_bounds = array<i64: 1, 8>, scalar_prefetch = 0 : i64, scratch_operands = 2 : i64, tpu.core_type = #tpu.core_type<tc>, window_params = [{transform_indices = @transform_0, window_bounds = array<i64: 8, 1>}, {transform_indices = @transform_1, window_bounds = array<i64: 1, 8, 384>}, {transform_indices = @transform_2, window_bounds = array<i64: 1, 8, 384>}, {pipeline_mode = #tpu.pipeline_mode<synchronous>, transform_indices = @transform_3, window_bounds = array<i64: 128, 384>}, {pipeline_mode = #tpu.pipeline_mode<synchronous>, transform_indices = @transform_4, window_bounds = array<i64: 128, 384>}, {pipeline_mode = #tpu.pipeline_mode<synchronous>, transform_indices = @transform_5, window_bounds = array<i64: 1, 384>}, {pipeline_mode = #tpu.pipeline_mode<synchronous>, transform_indices = @transform_6, window_bounds = array<i64: 1, 384>}, {transform_indices = @transform_7, window_bounds = array<i64: 1, 8, 128>}, {transform_indices = @transform_8, window_bounds = array<i64: 1, 8, 128>}]} {
    %c0_i32 = arith.constant 0 : i32
    %0 = arith.cmpi eq, %arg1, %c0_i32 : i32
    %1 = arith.extui %0 : i1 to i32
    %c0_i32_0 = arith.constant 0 : i32
    %2 = arith.cmpi ne, %1, %c0_i32_0 : i32
    scf.if %2 {
      %cst_41 = arith.constant 0.000000e+00 : f32
      %97 = vector.broadcast %cst_41 : f32 to vector<8x128xf32>
      %c0_42 = arith.constant 0 : index
      %c0_43 = arith.constant 0 : index
      %98 = vector.load %arg11[%c0_42, %c0_43] : memref<8x128xf32, #tpu.memory_space<vmem>>, vector<8x128xf32>
      tpu.vector_store %arg11[%c0_42, %c0_43], %97 {strides = array<i32>} : memref<8x128xf32, #tpu.memory_space<vmem>>, vector<8x128xf32>,
      %cst_44 = arith.constant 0.000000e+00 : f32
      %99 = vector.broadcast %cst_44 : f32 to vector<8x128xf32>
      %c0_45 = arith.constant 0 : index
      %c0_46 = arith.constant 0 : index
      %100 = vector.load %arg12[%c0_45, %c0_46] : memref<8x128xf32, #tpu.memory_space<vmem>>, vector<8x128xf32>
      tpu.vector_store %arg12[%c0_45, %c0_46], %99 {strides = array<i32>} : memref<8x128xf32, #tpu.memory_space<vmem>>, vector<8x128xf32>,
    } else {
    }
    %c0 = arith.constant 0 : index
    %c0_1 = arith.constant 0 : index
    %3 = vector.load %arg2[%c0, %c0_1] : memref<8x1xi32, #tpu.memory_space<vmem>>, vector<8x1xi32>
    %c0_2 = arith.constant 0 : index
    %c0_3 = arith.constant 0 : index
    %4 = vector.load %arg11[%c0_2, %c0_3] : memref<8x128xf32, #tpu.memory_space<vmem>>, vector<8x128xf32>
    %5 = arith.truncf %4 : vector<8x128xf32> to vector<8x128xbf16>
    %c0_4 = arith.constant 0 : index
    %c0_5 = arith.constant 0 : index
    %6 = vector.load %arg5[%c0_4, %c0_5] : memref<128x384xbf16, #tpu.memory_space<vmem>>, vector<128x384xbf16>
    %cst = arith.constant dense<0.000000e+00> : vector<8x384xf32>
    %7 = tpu.matmul %5, %6, %cst {dimension_numbers = #tpu.dot_dimension_numbers<[1], [0], [0], [1], [0, 0, 1, 1], [], []>} : vector<8x128xbf16>, vector<128x384xbf16>, vector<8x384xf32> -> vector<8x384xf32>
    %c0_6 = arith.constant 0 : index
    %c0_7 = arith.constant 0 : index
    %8 = vector.load %arg7[%c0_6, %c0_7] : memref<1x384xf32, #tpu.memory_space<vmem>>, vector<1x384xf32>
    %9 = vector.broadcast %8 : vector<1x384xf32> to vector<8x384xf32>
    %10 = arith.addf %7, %9 : vector<8x384xf32>
    %c0_8 = arith.constant 0 : index
    %c0_9 = arith.constant 0 : index
    %c0_10 = arith.constant 0 : index
    %11 = vector.load %arg3[%c0_8, %c0_9, %c0_10] : memref<1x8x384xbf16, #tpu.memory_space<vmem>>, vector<1x8x384xbf16>
    %12 = vector.shape_cast %11 : vector<1x8x384xbf16> to vector<8x384xbf16>
    %13 = arith.extf %12 : vector<8x384xbf16> to vector<8x384xf32>
    %14 = vector.extract_strided_slice %13 {offsets = [0, 0], sizes = [8, 256], strides = [1, 1]} : vector<8x384xf32> to vector<8x256xf32>
    %15 = vector.extract_strided_slice %10 {offsets = [0, 0], sizes = [8, 256], strides = [1, 1]} : vector<8x384xf32> to vector<8x256xf32>
    %16 = arith.addf %14, %15 : vector<8x256xf32>
    %cst_11 = arith.constant 5.000000e-01 : f32
    %17 = vector.broadcast %cst_11 : f32 to vector<8x256xf32>
    %18 = arith.mulf %17, %16 : vector<8x256xf32>
    %19 = math.tanh %18 : vector<8x256xf32>
    %cst_12 = arith.constant 1.000000e+00 : f32
    %20 = vector.broadcast %cst_12 : f32 to vector<8x256xf32>
    %21 = arith.addf %19, %20 : vector<8x256xf32>
    %cst_13 = arith.constant 5.000000e-01 : f32
    %22 = vector.broadcast %cst_13 : f32 to vector<8x256xf32>
    %23 = arith.mulf %22, %21 : vector<8x256xf32>
    %24 = vector.extract_strided_slice %23 {offsets = [0, 0], sizes = [8, 128], strides = [1, 1]} : vector<8x256xf32> to vector<8x128xf32>
    %25 = vector.extract_strided_slice %23 {offsets = [0, 128], sizes = [8, 128], strides = [1, 1]} : vector<8x256xf32> to vector<8x128xf32>
    %26 = vector.extract_strided_slice %13 {offsets = [0, 256], sizes = [8, 128], strides = [1, 1]} : vector<8x384xf32> to vector<8x128xf32>
    %27 = vector.extract_strided_slice %10 {offsets = [0, 256], sizes = [8, 128], strides = [1, 1]} : vector<8x384xf32> to vector<8x128xf32>
    %28 = arith.mulf %24, %27 : vector<8x128xf32>
    %29 = arith.addf %26, %28 : vector<8x128xf32>
    %30 = math.tanh %29 : vector<8x128xf32>
    %cst_14 = arith.constant 1.000000e+00 : f32
    %31 = vector.broadcast %cst_14 : f32 to vector<8x128xf32>
    %32 = arith.subf %31, %25 : vector<8x128xf32>
    %33 = arith.mulf %32, %30 : vector<8x128xf32>
    %34 = arith.mulf %25, %4 : vector<8x128xf32>
    %35 = arith.addf %33, %34 : vector<8x128xf32>
    %36 = vector.broadcast %arg1 : i32 to vector<8x1xi32>
    %37 = arith.cmpi slt, %36, %3 : vector<8x1xi32>
    %38 = vector.shape_cast %37 : vector<8x1xi1> to vector<8x1xi1>
    %39 = vector.broadcast %38 : vector<8x1xi1> to vector<8x128xi1>
    %40 = arith.select %39, %35, %4 : vector<8x128xi1>, vector<8x128xf32>
    %c0_15 = arith.constant 0 : index
    %c0_16 = arith.constant 0 : index
    %41 = vector.load %arg11[%c0_15, %c0_16] : memref<8x128xf32, #tpu.memory_space<vmem>>, vector<8x128xf32>
    tpu.vector_store %arg11[%c0_15, %c0_16], %40 {strides = array<i32>} : memref<8x128xf32, #tpu.memory_space<vmem>>, vector<8x128xf32>,
    %cst_17 = arith.constant 0.000000e+00 : f32
    %42 = vector.shape_cast %37 : vector<8x1xi1> to vector<8x1xi1>
    %43 = vector.broadcast %42 : vector<8x1xi1> to vector<8x128xi1>
    %44 = vector.broadcast %cst_17 : f32 to vector<8x128xf32>
    %45 = arith.select %43, %35, %44 : vector<8x128xi1>, vector<8x128xf32>
    %46 = arith.truncf %45 : vector<8x128xf32> to vector<8x128xbf16>
    %c0_18 = arith.constant 0 : index
    %c0_19 = arith.constant 0 : index
    %c0_20 = arith.constant 0 : index
    %47 = vector.load %arg9[%c0_18, %c0_19, %c0_20] : memref<1x8x128xbf16, #tpu.memory_space<vmem>>, vector<1x8x128xbf16>
    %48 = vector.shape_cast %47 : vector<1x8x128xbf16> to vector<8x128xbf16>
    %49 = vector.shape_cast %46 : vector<8x128xbf16> to vector<1x8x128xbf16>
    tpu.vector_store %arg9[%c0_18, %c0_19, %c0_20], %49 {strides = array<i32>} : memref<1x8x128xbf16, #tpu.memory_space<vmem>>, vector<1x8x128xbf16>,
    %c7_i32 = arith.constant 7 : i32
    %50 = arith.subi %c7_i32, %arg1 : i32
    %c0_21 = arith.constant 0 : index
    %c0_22 = arith.constant 0 : index
    %51 = vector.load %arg12[%c0_21, %c0_22] : memref<8x128xf32, #tpu.memory_space<vmem>>, vector<8x128xf32>
    %52 = arith.truncf %51 : vector<8x128xf32> to vector<8x128xbf16>
    %c0_23 = arith.constant 0 : index
    %c0_24 = arith.constant 0 : index
    %53 = vector.load %arg6[%c0_23, %c0_24] : memref<128x384xbf16, #tpu.memory_space<vmem>>, vector<128x384xbf16>
    %cst_25 = arith.constant dense<0.000000e+00> : vector<8x384xf32>
    %54 = tpu.matmul %52, %53, %cst_25 {dimension_numbers = #tpu.dot_dimension_numbers<[1], [0], [0], [1], [0, 0, 1, 1], [], []>} : vector<8x128xbf16>, vector<128x384xbf16>, vector<8x384xf32> -> vector<8x384xf32>
    %c0_26 = arith.constant 0 : index
    %c0_27 = arith.constant 0 : index
    %55 = vector.load %arg8[%c0_26, %c0_27] : memref<1x384xf32, #tpu.memory_space<vmem>>, vector<1x384xf32>
    %56 = vector.broadcast %55 : vector<1x384xf32> to vector<8x384xf32>
    %57 = arith.addf %54, %56 : vector<8x384xf32>
    %c0_28 = arith.constant 0 : index
    %c0_29 = arith.constant 0 : index
    %c0_30 = arith.constant 0 : index
    %58 = vector.load %arg4[%c0_28, %c0_29, %c0_30] : memref<1x8x384xbf16, #tpu.memory_space<vmem>>, vector<1x8x384xbf16>
    %59 = vector.shape_cast %58 : vector<1x8x384xbf16> to vector<8x384xbf16>
    %60 = arith.extf %59 : vector<8x384xbf16> to vector<8x384xf32>
    %61 = vector.extract_strided_slice %60 {offsets = [0, 0], sizes = [8, 256], strides = [1, 1]} : vector<8x384xf32> to vector<8x256xf32>
    %62 = vector.extract_strided_slice %57 {offsets = [0, 0], sizes = [8, 256], strides = [1, 1]} : vector<8x384xf32> to vector<8x256xf32>
    %63 = arith.addf %61, %62 : vector<8x256xf32>
    %cst_31 = arith.constant 5.000000e-01 : f32
    %64 = vector.broadcast %cst_31 : f32 to vector<8x256xf32>
    %65 = arith.mulf %64, %63 : vector<8x256xf32>
    %66 = math.tanh %65 : vector<8x256xf32>
    %cst_32 = arith.constant 1.000000e+00 : f32
    %67 = vector.broadcast %cst_32 : f32 to vector<8x256xf32>
    %68 = arith.addf %66, %67 : vector<8x256xf32>
    %cst_33 = arith.constant 5.000000e-01 : f32
    %69 = vector.broadcast %cst_33 : f32 to vector<8x256xf32>
    %70 = arith.mulf %69, %68 : vector<8x256xf32>
    %71 = vector.extract_strided_slice %70 {offsets = [0, 0], sizes = [8, 128], strides = [1, 1]} : vector<8x256xf32> to vector<8x128xf32>
    %72 = vector.extract_strided_slice %70 {offsets = [0, 128], sizes = [8, 128], strides = [1, 1]} : vector<8x256xf32> to vector<8x128xf32>
    %73 = vector.extract_strided_slice %60 {offsets = [0, 256], sizes = [8, 128], strides = [1, 1]} : vector<8x384xf32> to vector<8x128xf32>
    %74 = vector.extract_strided_slice %57 {offsets = [0, 256], sizes = [8, 128], strides = [1, 1]} : vector<8x384xf32> to vector<8x128xf32>
    %75 = arith.mulf %71, %74 : vector<8x128xf32>
    %76 = arith.addf %73, %75 : vector<8x128xf32>
    %77 = math.tanh %76 : vector<8x128xf32>
    %cst_34 = arith.constant 1.000000e+00 : f32
    %78 = vector.broadcast %cst_34 : f32 to vector<8x128xf32>
    %79 = arith.subf %78, %72 : vector<8x128xf32>
    %80 = arith.mulf %79, %77 : vector<8x128xf32>
    %81 = arith.mulf %72, %51 : vector<8x128xf32>
    %82 = arith.addf %80, %81 : vector<8x128xf32>
    %83 = vector.broadcast %50 : i32 to vector<8x1xi32>
    %84 = arith.cmpi slt, %83, %3 : vector<8x1xi32>
    %85 = vector.shape_cast %84 : vector<8x1xi1> to vector<8x1xi1>
    %86 = vector.broadcast %85 : vector<8x1xi1> to vector<8x128xi1>
    %87 = arith.select %86, %82, %51 : vector<8x128xi1>, vector<8x128xf32>
    %c0_35 = arith.constant 0 : index
    %c0_36 = arith.constant 0 : index
    %88 = vector.load %arg12[%c0_35, %c0_36] : memref<8x128xf32, #tpu.memory_space<vmem>>, vector<8x128xf32>
    tpu.vector_store %arg12[%c0_35, %c0_36], %87 {strides = array<i32>} : memref<8x128xf32, #tpu.memory_space<vmem>>, vector<8x128xf32>,
    %cst_37 = arith.constant 0.000000e+00 : f32
    %89 = vector.shape_cast %84 : vector<8x1xi1> to vector<8x1xi1>
    %90 = vector.broadcast %89 : vector<8x1xi1> to vector<8x128xi1>
    %91 = vector.broadcast %cst_37 : f32 to vector<8x128xf32>
    %92 = arith.select %90, %82, %91 : vector<8x128xi1>, vector<8x128xf32>
    %93 = arith.truncf %92 : vector<8x128xf32> to vector<8x128xbf16>
    %c0_38 = arith.constant 0 : index
    %c0_39 = arith.constant 0 : index
    %c0_40 = arith.constant 0 : index
    %94 = vector.load %arg10[%c0_38, %c0_39, %c0_40] : memref<1x8x128xbf16, #tpu.memory_space<vmem>>, vector<1x8x128xbf16>
    %95 = vector.shape_cast %94 : vector<1x8x128xbf16> to vector<8x128xbf16>
    %96 = vector.shape_cast %93 : vector<8x128xbf16> to vector<1x8x128xbf16>
    tpu.vector_store %arg10[%c0_38, %c0_39, %c0_40], %96 {strides = array<i32>} : memref<1x8x128xbf16, #tpu.memory_space<vmem>>, vector<1x8x128xbf16>,
    return
  }
  func.func @transform_0(%arg0: i32, %arg1: i32) -> (i32, i32) {
    %c0_i32 = arith.constant 0 : i32
    %c0_i32_0 = arith.constant 0 : i32
    return %arg0, %c0_i32 : i32, i32
  }
  func.func @transform_1(%arg0: i32, %arg1: i32) -> (i32, i32, i32) {
    %c0_i32 = arith.constant 0 : i32
    %c0_i32_0 = arith.constant 0 : i32
    return %arg1, %arg0, %c0_i32 : i32, i32, i32
  }
  func.func @transform_2(%arg0: i32, %arg1: i32) -> (i32, i32, i32) {
    %c7_i32 = arith.constant 7 : i32
    %0 = arith.subi %c7_i32, %arg1 : i32
    %c1_i32 = arith.constant 1 : i32
    %c0_i32 = arith.constant 0 : i32
    return %0, %arg0, %c1_i32 : i32, i32, i32
  }
  func.func @transform_3(%arg0: i32, %arg1: i32) -> (i32, i32) {
    %c0_i32 = arith.constant 0 : i32
    %c0_i32_0 = arith.constant 0 : i32
    %c0_i32_1 = arith.constant 0 : i32
    return %c0_i32, %c0_i32_0 : i32, i32
  }
  func.func @transform_4(%arg0: i32, %arg1: i32) -> (i32, i32) {
    %c0_i32 = arith.constant 0 : i32
    %c0_i32_0 = arith.constant 0 : i32
    %c0_i32_1 = arith.constant 0 : i32
    return %c0_i32, %c0_i32_0 : i32, i32
  }
  func.func @transform_5(%arg0: i32, %arg1: i32) -> (i32, i32) {
    %c0_i32 = arith.constant 0 : i32
    %c0_i32_0 = arith.constant 0 : i32
    %c0_i32_1 = arith.constant 0 : i32
    return %c0_i32, %c0_i32_0 : i32, i32
  }
  func.func @transform_6(%arg0: i32, %arg1: i32) -> (i32, i32) {
    %c0_i32 = arith.constant 0 : i32
    %c0_i32_0 = arith.constant 0 : i32
    %c0_i32_1 = arith.constant 0 : i32
    return %c0_i32, %c0_i32_0 : i32, i32
  }
  func.func @transform_7(%arg0: i32, %arg1: i32) -> (i32, i32, i32) {
    %c0_i32 = arith.constant 0 : i32
    %c0_i32_0 = arith.constant 0 : i32
    return %arg1, %arg0, %c0_i32 : i32, i32, i32
  }
  func.func @transform_8(%arg0: i32, %arg1: i32) -> (i32, i32, i32) {
    %c7_i32 = arith.constant 7 : i32
    %0 = arith.subi %c7_i32, %arg1 : i32
    %c0_i32 = arith.constant 0 : i32
    %c0_i32_0 = arith.constant 0 : i32
    return %0, %arg0, %c0_i32 : i32, i32, i32
  }
}

module attributes {stable_mosaic.version = 11 : i64} {
  func.func @kernel(%arg0: i32, %arg1: i32, %arg2: i32, %arg3: memref<64x128xbf16, #tpu.memory_space<vmem>>, %arg4: memref<128x768xbf16, #tpu.memory_space<vmem>>, %arg5: memref<1x768xf32, #tpu.memory_space<vmem>>, %arg6: memref<64x768xbf16, #tpu.memory_space<vmem>>, %arg7: memref<64x768xf32, #tpu.memory_space<vmem>>) attributes {dimension_semantics = [#tpu.dimension_semantics<parallel>, #tpu.dimension_semantics<parallel>, #tpu.dimension_semantics<arbitrary>], iteration_bounds = array<i64: 1, 1, 1>, scalar_prefetch = 0 : i64, scratch_operands = 1 : i64, tpu.core_type = #tpu.core_type<tc>, window_params = [{transform_indices = @transform_0, window_bounds = array<i64: 64, 128>}, {transform_indices = @transform_1, window_bounds = array<i64: 128, 768>}, {transform_indices = @transform_2, window_bounds = array<i64: 1, 768>}, {transform_indices = @transform_3, window_bounds = array<i64: 64, 768>}]} {
    %c0_i32 = arith.constant 0 : i32
    %0 = arith.cmpi eq, %arg2, %c0_i32 : i32
    %1 = arith.extui %0 : i1 to i32
    %c0_i32_0 = arith.constant 0 : i32
    %2 = arith.cmpi ne, %1, %c0_i32_0 : i32
    scf.if %2 {
      %cst_10 = arith.constant 0.000000e+00 : f32
      %12 = vector.broadcast %cst_10 : f32 to vector<64x768xf32>
      %c0_11 = arith.constant 0 : index
      %c0_12 = arith.constant 0 : index
      %13 = vector.load %arg7[%c0_11, %c0_12] : memref<64x768xf32, #tpu.memory_space<vmem>>, vector<64x768xf32>
      tpu.vector_store %arg7[%c0_11, %c0_12], %12 {strides = array<i32>} : memref<64x768xf32, #tpu.memory_space<vmem>>, vector<64x768xf32>,
    } else {
    }
    %c0 = arith.constant 0 : index
    %c0_1 = arith.constant 0 : index
    %3 = vector.load %arg7[%c0, %c0_1] : memref<64x768xf32, #tpu.memory_space<vmem>>, vector<64x768xf32>
    %c0_2 = arith.constant 0 : index
    %c0_3 = arith.constant 0 : index
    %4 = vector.load %arg3[%c0_2, %c0_3] : memref<64x128xbf16, #tpu.memory_space<vmem>>, vector<64x128xbf16>
    %c0_4 = arith.constant 0 : index
    %c0_5 = arith.constant 0 : index
    %5 = vector.load %arg4[%c0_4, %c0_5] : memref<128x768xbf16, #tpu.memory_space<vmem>>, vector<128x768xbf16>
    %cst = arith.constant dense<0.000000e+00> : vector<64x768xf32>
    %6 = tpu.matmul %4, %5, %cst {dimension_numbers = #tpu.dot_dimension_numbers<[1], [0], [0], [1], [0, 0, 1, 1], [], []>} : vector<64x128xbf16>, vector<128x768xbf16>, vector<64x768xf32> -> vector<64x768xf32>
    %7 = arith.addf %3, %6 : vector<64x768xf32>
    %c0_6 = arith.constant 0 : index
    %c0_7 = arith.constant 0 : index
    %8 = vector.load %arg7[%c0_6, %c0_7] : memref<64x768xf32, #tpu.memory_space<vmem>>, vector<64x768xf32>
    tpu.vector_store %arg7[%c0_6, %c0_7], %7 {strides = array<i32>} : memref<64x768xf32, #tpu.memory_space<vmem>>, vector<64x768xf32>,
    %c0_i32_8 = arith.constant 0 : i32
    %9 = arith.cmpi eq, %arg2, %c0_i32_8 : i32
    %10 = arith.extui %9 : i1 to i32
    %c0_i32_9 = arith.constant 0 : i32
    %11 = arith.cmpi ne, %10, %c0_i32_9 : i32
    scf.if %11 {
      %c0_10 = arith.constant 0 : index
      %c0_11 = arith.constant 0 : index
      %12 = vector.load %arg7[%c0_10, %c0_11] : memref<64x768xf32, #tpu.memory_space<vmem>>, vector<64x768xf32>
      %c0_12 = arith.constant 0 : index
      %c0_13 = arith.constant 0 : index
      %13 = vector.load %arg5[%c0_12, %c0_13] : memref<1x768xf32, #tpu.memory_space<vmem>>, vector<1x768xf32>
      %14 = vector.broadcast %13 : vector<1x768xf32> to vector<64x768xf32>
      %15 = arith.addf %12, %14 : vector<64x768xf32>
      %16 = arith.truncf %15 : vector<64x768xf32> to vector<64x768xbf16>
      %c0_14 = arith.constant 0 : index
      %c0_15 = arith.constant 0 : index
      %17 = vector.load %arg6[%c0_14, %c0_15] : memref<64x768xbf16, #tpu.memory_space<vmem>>, vector<64x768xbf16>
      tpu.vector_store %arg6[%c0_14, %c0_15], %16 {strides = array<i32>} : memref<64x768xbf16, #tpu.memory_space<vmem>>, vector<64x768xbf16>,
    } else {
    }
    return
  }
  func.func @transform_0(%arg0: i32, %arg1: i32, %arg2: i32) -> (i32, i32) {
    %c0_i32 = arith.constant 0 : i32
    return %arg0, %arg2 : i32, i32
  }
  func.func @transform_1(%arg0: i32, %arg1: i32, %arg2: i32) -> (i32, i32) {
    %c0_i32 = arith.constant 0 : i32
    return %arg2, %arg1 : i32, i32
  }
  func.func @transform_2(%arg0: i32, %arg1: i32, %arg2: i32) -> (i32, i32) {
    %c0_i32 = arith.constant 0 : i32
    %c0_i32_0 = arith.constant 0 : i32
    return %c0_i32, %arg1 : i32, i32
  }
  func.func @transform_3(%arg0: i32, %arg1: i32, %arg2: i32) -> (i32, i32) {
    %c0_i32 = arith.constant 0 : i32
    return %arg0, %arg1 : i32, i32
  }
}

module attributes {stable_mosaic.version = 11 : i64} {
  func.func @kernel(%arg0: i32, %arg1: i32, %arg2: i32, %arg3: memref<64x128xbf16, #tpu.memory_space<vmem>>, %arg4: memref<128x128xbf16, #tpu.memory_space<vmem>>, %arg5: memref<1x128xf32, #tpu.memory_space<vmem>>, %arg6: memref<64x128xf32, #tpu.memory_space<vmem>>) attributes {dimension_semantics = [#tpu.dimension_semantics<parallel>, #tpu.dimension_semantics<parallel>, #tpu.dimension_semantics<arbitrary>], iteration_bounds = array<i64: 1, 1, 1>, scalar_prefetch = 0 : i64, scratch_operands = 0 : i64, tpu.core_type = #tpu.core_type<tc>, window_params = [{transform_indices = @transform_0, window_bounds = array<i64: 64, 128>}, {transform_indices = @transform_1, window_bounds = array<i64: 128, 128>}, {transform_indices = @transform_2, window_bounds = array<i64: 1, 128>}, {transform_indices = @transform_3, window_bounds = array<i64: 64, 128>}]} {
    %c0_i32 = arith.constant 0 : i32
    %0 = arith.cmpi eq, %arg2, %c0_i32 : i32
    %1 = arith.extui %0 : i1 to i32
    %c0_i32_0 = arith.constant 0 : i32
    %2 = arith.cmpi ne, %1, %c0_i32_0 : i32
    scf.if %2 {
      %cst_10 = arith.constant 0.000000e+00 : f32
      %12 = vector.broadcast %cst_10 : f32 to vector<64x128xf32>
      %c0_11 = arith.constant 0 : index
      %c0_12 = arith.constant 0 : index
      %13 = vector.load %arg6[%c0_11, %c0_12] : memref<64x128xf32, #tpu.memory_space<vmem>>, vector<64x128xf32>
      tpu.vector_store %arg6[%c0_11, %c0_12], %12 {strides = array<i32>} : memref<64x128xf32, #tpu.memory_space<vmem>>, vector<64x128xf32>,
    } else {
    }
    %c0 = arith.constant 0 : index
    %c0_1 = arith.constant 0 : index
    %3 = vector.load %arg6[%c0, %c0_1] : memref<64x128xf32, #tpu.memory_space<vmem>>, vector<64x128xf32>
    %c0_2 = arith.constant 0 : index
    %c0_3 = arith.constant 0 : index
    %4 = vector.load %arg3[%c0_2, %c0_3] : memref<64x128xbf16, #tpu.memory_space<vmem>>, vector<64x128xbf16>
    %c0_4 = arith.constant 0 : index
    %c0_5 = arith.constant 0 : index
    %5 = vector.load %arg4[%c0_4, %c0_5] : memref<128x128xbf16, #tpu.memory_space<vmem>>, vector<128x128xbf16>
    %cst = arith.constant dense<0.000000e+00> : vector<64x128xf32>
    %6 = tpu.matmul %4, %5, %cst {dimension_numbers = #tpu.dot_dimension_numbers<[1], [0], [0], [1], [0, 0, 1, 1], [], []>} : vector<64x128xbf16>, vector<128x128xbf16>, vector<64x128xf32> -> vector<64x128xf32>
    %7 = arith.addf %3, %6 : vector<64x128xf32>
    %c0_6 = arith.constant 0 : index
    %c0_7 = arith.constant 0 : index
    %8 = vector.load %arg6[%c0_6, %c0_7] : memref<64x128xf32, #tpu.memory_space<vmem>>, vector<64x128xf32>
    tpu.vector_store %arg6[%c0_6, %c0_7], %7 {strides = array<i32>} : memref<64x128xf32, #tpu.memory_space<vmem>>, vector<64x128xf32>,
    %c0_i32_8 = arith.constant 0 : i32
    %9 = arith.cmpi eq, %arg2, %c0_i32_8 : i32
    %10 = arith.extui %9 : i1 to i32
    %c0_i32_9 = arith.constant 0 : i32
    %11 = arith.cmpi ne, %10, %c0_i32_9 : i32
    scf.if %11 {
      %c0_10 = arith.constant 0 : index
      %c0_11 = arith.constant 0 : index
      %12 = vector.load %arg6[%c0_10, %c0_11] : memref<64x128xf32, #tpu.memory_space<vmem>>, vector<64x128xf32>
      %c0_12 = arith.constant 0 : index
      %c0_13 = arith.constant 0 : index
      %13 = vector.load %arg5[%c0_12, %c0_13] : memref<1x128xf32, #tpu.memory_space<vmem>>, vector<1x128xf32>
      %14 = vector.broadcast %13 : vector<1x128xf32> to vector<64x128xf32>
      %15 = arith.addf %12, %14 : vector<64x128xf32>
      %cst_14 = arith.constant dense<0xFF800000> : vector<64xf32>
      %16 = vector.multi_reduction <maximumf>, %15, %cst_14 [1] : vector<64x128xf32> to vector<64xf32>
      %17 = vector.shape_cast %16 : vector<64xf32> to vector<64x1xf32>
      %18 = vector.broadcast %17 : vector<64x1xf32> to vector<64x128xf32>
      %19 = arith.subf %15, %18 : vector<64x128xf32>
      %20 = math.exp %19 : vector<64x128xf32>
      %cst_15 = arith.constant dense<0.000000e+00> : vector<64xf32>
      %21 = vector.multi_reduction <add>, %20, %cst_15 [1] : vector<64x128xf32> to vector<64xf32>
      %22 = vector.shape_cast %21 : vector<64xf32> to vector<64x1xf32>
      %23 = math.log %22 : vector<64x1xf32>
      %24 = vector.broadcast %23 : vector<64x1xf32> to vector<64x128xf32>
      %25 = arith.subf %19, %24 : vector<64x128xf32>
      %c0_16 = arith.constant 0 : index
      %c0_17 = arith.constant 0 : index
      %26 = vector.load %arg6[%c0_16, %c0_17] : memref<64x128xf32, #tpu.memory_space<vmem>>, vector<64x128xf32>
      tpu.vector_store %arg6[%c0_16, %c0_17], %25 {strides = array<i32>} : memref<64x128xf32, #tpu.memory_space<vmem>>, vector<64x128xf32>,
    } else {
    }
    return
  }
  func.func @transform_0(%arg0: i32, %arg1: i32, %arg2: i32) -> (i32, i32) {
    %c0_i32 = arith.constant 0 : i32
    return %arg0, %arg2 : i32, i32
  }
  func.func @transform_1(%arg0: i32, %arg1: i32, %arg2: i32) -> (i32, i32) {
    %c0_i32 = arith.constant 0 : i32
    return %arg2, %arg1 : i32, i32
  }
  func.func @transform_2(%arg0: i32, %arg1: i32, %arg2: i32) -> (i32, i32) {
    %c0_i32 = arith.constant 0 : i32
    %c0_i32_0 = arith.constant 0 : i32
    return %c0_i32, %arg1 : i32, i32
  }
  func.func @transform_3(%arg0: i32, %arg1: i32, %arg2: i32) -> (i32, i32) {
    %c0_i32 = arith.constant 0 : i32
    return %arg0, %arg1 : i32, i32
  }
}

</mosaic_0001>

<bundles_post_ra>
// kernel: ds2_forward.7
= control target key start
LH: loop header
LB: loop body
LE: loop exit
PB: predicated region body
PF: predicated region fallthrough
CT: control target
= control target key end

     0   :  { %v1320_v25 = vmov 0   ;;  %s1727_s1 = inlined_call_operand.vmem [shape: bf16[512,128], index: 1, kind: input, shape index: {}]   ;;  %s1728_s3 = inlined_call_operand.vmem [shape: f32[128,1], index: 3, kind: input, shape index: {}]   ;;  %s1729_s0 = inlined_call_operand.vmem [shape: bf16[128,512], index: 0, kind: input, shape index: {}]   ;;  %s1730_s2 = inlined_call_operand.vmem [shape: f32[1,128], index: 2, kind: input, shape index: {}]   ;;  %s1731_s4 = inlined_call_operand.vmem [shape: bf16[128,128], index: 4, kind: output, shape index: {}]  }
   0x1   :  { %v1243_v0 = vld [vmem:[%s1727_s1 + $0x38] sm:$0xff]  ;;  %v1242_v4 = vld [vmem:[%s1727_s1 + $0x30] sm:$0xff]  ;;  %v1241_v8 = vld [vmem:[%s1727_s1 + $0x28] sm:$0xff]  ;;  %1316 = vset.pattern.permute.xlu0 %v1320_v25  ;;  %1317 = vset.pattern.permute.xlu1 %v1320_v25 }
   0x2   :  { %v1251_v1 = vld [vmem:[%s1727_s1 + $0x78] sm:$0xff]  ;;  %501 = vmatpush.bf16.msra.mxu0 %v1243_v0  ;;  %v1250_v5 = vld [vmem:[%s1727_s1 + $0x70] sm:$0xff]  ;;  %v1249_v9 = vld [vmem:[%s1727_s1 + $0x68] sm:$0xff]  ;;  %1318 = vset.pattern.permute.xlu2 %v1320_v25 }
   0x3   :  { %v1259_v2 = vld [vmem:[%s1727_s1 + $0xb8] sm:$0xff]  ;;  %550 = vmatpush.bf16.msra.mxu1 %v1251_v1  ;;  %v1258_v6 = vld [vmem:[%s1727_s1 + $0xb0] sm:$0xff]  ;;  %v1257_v10 = vld [vmem:[%s1727_s1 + $0xa8] sm:$0xff] }
   0x4   :  { %v1267_v3 = vld [vmem:[%s1727_s1 + $0xf8] sm:$0xff]  ;;  %599 = vmatpush.bf16.msra.mxu2 %v1259_v2  ;;  %v1266_v7 = vld [vmem:[%s1727_s1 + $0xf0] sm:$0xff]  ;;  %v1265_v11 = vld [vmem:[%s1727_s1 + $0xe8] sm:$0xff] }
   0x5   :  { %648 = vmatpush.bf16.msra.mxu3 %v1267_v3  ;;  %v1240_v12 = vld [vmem:[%s1727_s1 + $0x20] sm:$0xff]  ;;  %v1239_v16 = vld [vmem:[%s1727_s1 + $0x18] sm:$0xff]  ;;  %v1238_v20 = vld [vmem:[%s1727_s1 + $0x10] sm:$0xff] }
   0x6   :  { %502 = vmatpush.bf16.msra.mxu0 %v1242_v4  ;;  %v1248_v13 = vld [vmem:[%s1727_s1 + $0x60] sm:$0xff]  ;;  %v1247_v17 = vld [vmem:[%s1727_s1 + $0x58] sm:$0xff]  ;;  %v1246_v21 = vld [vmem:[%s1727_s1 + $0x50] sm:$0xff] }
   0x7   :  { %551 = vmatpush.bf16.msra.mxu1 %v1250_v5  ;;  %v1256_v14 = vld [vmem:[%s1727_s1 + $0xa0] sm:$0xff]  ;;  %v1255_v18 = vld [vmem:[%s1727_s1 + $0x98] sm:$0xff]  ;;  %v1254_v23 = vld [vmem:[%s1727_s1 + $0x90] sm:$0xff] }
   0x8   :  { %600 = vmatpush.bf16.msra.mxu2 %v1258_v6  ;;  %v1264_v15 = vld [vmem:[%s1727_s1 + $0xe0] sm:$0xff]  ;;  %v1263_v19 = vld [vmem:[%s1727_s1 + $0xd8] sm:$0xff]  ;;  %v1262_v24 = vld [vmem:[%s1727_s1 + $0xd0] sm:$0xff] }
   0x9   :  { %649 = vmatpush.bf16.msra.mxu3 %v1266_v7  ;;  %v800_v22 = vld [vmem:[%s1728_s3] sm:$0xff]  ;;  %v1237_v26 = vld [vmem:[%s1727_s1 + $0x8] sm:$0xff]  ;;  %v1206_v35 = vld [vmem:[%s1729_s0 + $0xc] sm:$0xf0] }
   0xa   :  { %503 = vmatpush.bf16.msra.mxu0 %v1241_v8  ;;  %818 = vperm.xlu0 %1316, %v800_v22   ;;  %v1245_v27 = vld [vmem:[%s1727_s1 + $0x48] sm:$0xff]  ;;  %v1236_v30 = vld [vmem:[%s1727_s1] sm:$0xff]  ;;  %v952_v37 = vld [vmem:[%s1729_s0 + $0x10] sm:$0xf0] }
   0xb   :  { %552 = vmatpush.bf16.msra.mxu1 %v1249_v9  ;;  %v1253_v28 = vld [vmem:[%s1727_s1 + $0x88] sm:$0xff]  ;;  %v1244_v31 = vld [vmem:[%s1727_s1 + $0x40] sm:$0xff]  ;;  %v1207_v39 = vld [vmem:[%s1729_s0 + $0x14] sm:$0xf0] }
   0xc   :  { %601 = vmatpush.bf16.msra.mxu2 %v1257_v10  ;;  %v1261_v29 = vld [vmem:[%s1727_s1 + $0xc8] sm:$0xff]  ;;  %v1252_v32 = vld [vmem:[%s1727_s1 + $0x80] sm:$0xff]  ;;  %v960_v41 = vld [vmem:[%s1729_s0 + $0x18] sm:$0xf0] }
   0xd   :  { %650 = vmatpush.bf16.msra.mxu3 %v1265_v11  ;;  %v1260_v33 = vld [vmem:[%s1727_s1 + $0xc0] sm:$0xff]  ;;  %v958_v38 = vld [vmem:[%s1729_s0 + $0x8] sm:$0xf]  ;;  %v1205_v40 = vld [vmem:[%s1729_s0 + $0xc] sm:$0xf] }
   0xe   :  { %504 = vmatpush.bf16.msra.mxu0 %v1240_v12  ;;  %v950_v34 = vld [vmem:[%s1729_s0] sm:$0xf]  ;;  %v1204_v36 = vld [vmem:[%s1729_s0 + $0x4] sm:$0xf]  ;;  %v959_v44 = vor.u32 %v1207_v39, %v958_v38  ;;  %v963_v45 = vor.u32 %v1205_v40, %v960_v41  ;;  %v801_v46 = vld [vmem:[%s1728_s3 + $0x8] sm:$0xff] }
   0xf   :  { %553 = vmatpush.bf16.msra.mxu1 %v1248_v13  ;;  %v951_v42 = vor.u32 %v1206_v35, %v950_v34  ;;  %v955_v43 = vor.u32 %v1204_v36, %v952_v37  ;;  %v802_v47 = vld [vmem:[%s1728_s3 + $0x10] sm:$0xff]  ;;  %v966_v48 = vld [vmem:[%s1729_s0 + $0x20] sm:$0xf]  ;;  %v1208_v50 = vld [vmem:[%s1729_s0 + $0x24] sm:$0xf] }
  0x10   :  { %602 = vmatpush.bf16.msra.mxu2 %v1256_v14  ;;  %828 = vperm.xlu1 %1317, %v802_v47   ;;  %v1210_v49 = vld [vmem:[%s1729_s0 + $0x2c] sm:$0xf0]  ;;  %v968_v51 = vld [vmem:[%s1729_s0 + $0x30] sm:$0xf0]  ;;  %v974_v52 = vld [vmem:[%s1729_s0 + $0x28] sm:$0xf] }
  0x11   :  { %651 = vmatpush.bf16.msra.mxu3 %v1264_v15  ;;  %v1211_v53 = vld [vmem:[%s1729_s0 + $0x34] sm:$0xf0]  ;;  %v1209_v54 = vld [vmem:[%s1729_s0 + $0x2c] sm:$0xf]  ;;  %v976_v55 = vld [vmem:[%s1729_s0 + $0x38] sm:$0xf0]  ;;  %v967_v56 = vor.u32 %v1210_v49, %v966_v48  ;;  %v971_v57 = vor.u32 %v1208_v50, %v968_v51 }
  0x12   :  { %505 = vmatpush.bf16.msra.mxu0 %v1239_v16  ;;  %823 = vperm.xlu0 %1316, %v801_v46   ;;  %v975_v58 = vor.u32 %v1211_v53, %v974_v52  ;;  %v979_v59 = vor.u32 %v1209_v54, %v976_v55  ;;  %v803_v60 = vld [vmem:[%s1728_s3 + $0x18] sm:$0xff]  ;;  %v982_v61 = vld [vmem:[%s1729_s0 + $0x40] sm:$0xf]  ;;  %v1214_v62 = vld [vmem:[%s1729_s0 + $0x4c] sm:$0xf0] }
  0x13   :  { %554 = vmatpush.bf16.msra.mxu1 %v1247_v17  ;;  %v1212_v63 = vld [vmem:[%s1729_s0 + $0x44] sm:$0xf]  ;;  %v984_v0 = vld [vmem:[%s1729_s0 + $0x50] sm:$0xf0]  ;;  %v990_v1 = vld [vmem:[%s1729_s0 + $0x48] sm:$0xf]  ;;  %v983_v5 = vor.u32 %v1214_v62, %v982_v61 }
  0x14   :  { %603 = vmatpush.bf16.msra.mxu2 %v1255_v18  ;;  %v1215_v2 = vld [vmem:[%s1729_s0 + $0x54] sm:$0xf0]  ;;  %v1213_v3 = vld [vmem:[%s1729_s0 + $0x4c] sm:$0xf]  ;;  %v992_v4 = vld [vmem:[%s1729_s0 + $0x58] sm:$0xf0]  ;;  %v987_v6 = vor.u32 %v1212_v63, %v984_v0 }
  0x15   :  { %652 = vmatpush.bf16.msra.mxu3 %v1263_v19  ;;  %v991_v7 = vor.u32 %v1215_v2, %v990_v1  ;;  %v995_v8 = vor.u32 %v1213_v3, %v992_v4  ;;  %v806_v9 = vld [vmem:[%s1728_s3 + $0x30] sm:$0xff]  ;;  %v998_v10 = vld [vmem:[%s1729_s0 + $0x60] sm:$0xf]  ;;  %v1216_v12 = vld [vmem:[%s1729_s0 + $0x64] sm:$0xf] }
  0x16   :  { %506 = vmatpush.bf16.msra.mxu0 %v1238_v20  ;;  %v1218_v11 = vld [vmem:[%s1729_s0 + $0x6c] sm:$0xf0]  ;;  %v1000_v13 = vld [vmem:[%s1729_s0 + $0x70] sm:$0xf0]  ;;  %v1006_v14 = vld [vmem:[%s1729_s0 + $0x68] sm:$0xf] }
  0x17   :  { %555 = vmatpush.bf16.msra.mxu1 %v1246_v21  ;;  %v1219_v15 = vld [vmem:[%s1729_s0 + $0x74] sm:$0xf0]  ;;  %v1217_v16 = vld [vmem:[%s1729_s0 + $0x6c] sm:$0xf]  ;;  %v1008_v17 = vld [vmem:[%s1729_s0 + $0x78] sm:$0xf0]  ;;  %v999_v18 = vor.u32 %v1218_v11, %v998_v10  ;;  %v1003_v19 = vor.u32 %v1216_v12, %v1000_v13 }
  0x18   :  { %604 = vmatpush.bf16.msra.mxu2 %v1254_v23  ;;  %833 = vperm.xlu1 %1317, %v803_v60   ;;  %v1007_v20 = vor.u32 %v1219_v15, %v1006_v14  ;;  %v1011_v21 = vor.u32 %v1217_v16, %v1008_v17  ;;  %v804_v22 = vld [vmem:[%s1728_s3 + $0x20] sm:$0xff]  ;;  %v807_v23 = vld [vmem:[%s1728_s3 + $0x38] sm:$0xff]  ;;  %v805_v25 = vld [vmem:[%s1728_s3 + $0x28] sm:$0xff] }
  0x19   :  { %653 = vmatpush.bf16.msra.mxu3 %v1262_v24  ;;  %838 = vperm.xlu2 %1318, %v804_v22   ;;  %v809_v24 = vld [vmem:[%s1728_s3 + $0x48] sm:$0xff]  ;;  %v812_v38 = vld [vmem:[%s1728_s3 + $0x60] sm:$0xff]  ;;  %v810_v39 = vld [vmem:[%s1728_s3 + $0x50] sm:$0xff] }
  0x1a   :  { %507 = vmatpush.bf16.msra.mxu0 %v1237_v26  ;;  %848 = vperm.xlu0 %1316, %v806_v9   ;;  %v1014_v26 = vld [vmem:[%s1729_s0 + $0x80] sm:$0xf]  ;;  %v815_v40 = vld [vmem:[%s1728_s3 + $0x78] sm:$0xff]  ;;  %v1225_v47 = vld [vmem:[%s1729_s0 + $0xac] sm:$0xf] }
  0x1b   :  { %556 = vmatpush.bf16.msra.mxu1 %v1245_v27  ;;  %v1222_v27 = vld [vmem:[%s1729_s0 + $0x8c] sm:$0xf0]  ;;  %v1030_v41 = vld [vmem:[%s1729_s0 + $0xa0] sm:$0xf]  ;;  %v1227_v46 = vld [vmem:[%s1729_s0 + $0xb4] sm:$0xf0] }
  0x1c   :  { %605 = vmatpush.bf16.msra.mxu2 %v1253_v28  ;;  %v1220_v28 = vld [vmem:[%s1729_s0 + $0x84] sm:$0xf]  ;;  %v1015_v34 = vor.u32 %v1222_v27, %v1014_v26  ;;  %v1040_v48 = vld [vmem:[%s1729_s0 + $0xb8] sm:$0xf0]  ;;  %v813_v54 = vld [vmem:[%s1728_s3 + $0x68] sm:$0xff] }
  0x1d   :  { %654 = vmatpush.bf16.msra.mxu3 %v1261_v29  ;;  %v1016_v29 = vld [vmem:[%s1729_s0 + $0x90] sm:$0xf0]  ;;  %v1043_v52 = vor.u32 %v1225_v47, %v1040_v48  ;;  %v808_v53 = vld [vmem:[%s1728_s3 + $0x40] sm:$0xff]  ;;  %v1231_v60 = vld [vmem:[%s1729_s0 + $0xd4] sm:$0xf0] }
  0x1e   :  { %508 = vmatpush.bf16.msra.mxu0 %v1236_v30  ;;  %v1022_v30 = vld [vmem:[%s1729_s0 + $0x88] sm:$0xf]  ;;  %v1019_v35 = vor.u32 %v1220_v28, %v1016_v29  ;;  %v1046_v55 = vld [vmem:[%s1729_s0 + $0xc0] sm:$0xf]  ;;  %v1229_v61 = vld [vmem:[%s1729_s0 + $0xcc] sm:$0xf] }
  0x1f   :  { %557 = vmatpush.bf16.msra.mxu1 %v1244_v31  ;;  %v1223_v31 = vld [vmem:[%s1729_s0 + $0x94] sm:$0xf0]  ;;  %v1056_v62 = vld [vmem:[%s1729_s0 + $0xd8] sm:$0xf0]  ;;  %v1062_v4 = vld [vmem:[%s1729_s0 + $0xe0] sm:$0xf] }
  0x20   :  { %606 = vmatpush.bf16.msra.mxu2 %v1252_v32  ;;  %853 = vperm.xlu1 %1317, %v807_v23   ;;  %v1221_v32 = vld [vmem:[%s1729_s0 + $0x8c] sm:$0xf]  ;;  %v1023_v36 = vor.u32 %v1223_v31, %v1022_v30  ;;  %v1059_v2 = vor.u32 %v1229_v61, %v1056_v62  ;;  %v811_v3 = vld [vmem:[%s1728_s3 + $0x58] sm:$0xff]  ;;  %v814_v9 = vld [vmem:[%s1728_s3 + $0x70] sm:$0xff] }
  0x21   :  { %655 = vmatpush.bf16.msra.mxu3 %v1260_v33  ;;  %509 = vmatmul.bf16.vlgmr.msra.gmra.mxu0 %v951_v42  ;;  %v1024_v33 = vld [vmem:[%s1729_s0 + $0x98] sm:$0xf0]  ;;  %v1226_v42 = vld [vmem:[%s1729_s0 + $0xac] sm:$0xf0]  ;;  %v1235_v10 = vld [vmem:[%s1729_s0 + $0xf4] sm:$0xf0] }
  0x22   :  { %558 = vmatmul.bf16.vlgmr.msra.gmra.mxu1 %v955_v43  ;;  %863 = vperm.xlu0 %1316, %v809_v24   ;;  %v1027_v37 = vor.u32 %v1221_v32, %v1024_v33  ;;  %v1224_v43 = vld [vmem:[%s1729_s0 + $0xa4] sm:$0xf]  ;;  %v1031_v49 = vor.u32 %v1226_v42, %v1030_v41  ;;  %v1233_v11 = vld [vmem:[%s1729_s0 + $0xec] sm:$0xf]  ;;  %v1072_v12 = vld [vmem:[%s1729_s0 + $0xf8] sm:$0xf0] }
  0x23   :  { %607 = vmatmul.bf16.vlgmr.msra.gmra.mxu2 %v959_v44  ;;  %843 = vperm.xlu2 %1318, %v805_v25   ;;  %v1032_v44 = vld [vmem:[%s1729_s0 + $0xb0] sm:$0xf0]  ;;  %v1075_v16 = vor.u32 %v1233_v11, %v1072_v12  ;;  %v1685_v26 = vld [vmem:[%s1730_s2] ss:$0 sm:$0xff] }
  0x24   :  { %656 = vmatmul.bf16.vlgmr.msra.gmra.mxu3 %v963_v45  ;;  %v1038_v45 = vld [vmem:[%s1729_s0 + $0xa8] sm:$0xf]  ;;  %v1035_v50 = vor.u32 %v1224_v43, %v1032_v44 }
  0x25   :  { %v1039_v51 = vor.u32 %v1227_v46, %v1038_v45 }
  0x28   :  { %868 = vperm.xlu1 %1317, %v810_v39  }
  0x2a   :  { %878 = vperm.xlu0 %1316, %v812_v38  }
  0x2b   :  { %858 = vperm.xlu2 %1318, %v808_v53  }
  0x30   :  { %883 = vperm.xlu1 %1317, %v813_v54  }
  0x31   :  { %514 = vmatmul.bf16.gmra.mxu0 %v967_v56  ;;  %v1230_v56 = vld [vmem:[%s1729_s0 + $0xcc] sm:$0xf0] }
  0x32   :  { %563 = vmatmul.bf16.gmra.mxu1 %v971_v57  ;;  %893 = vperm.xlu0 %1316, %v815_v40   ;;  %v1228_v57 = vld [vmem:[%s1729_s0 + $0xc4] sm:$0xf]  ;;  %v1047_v63 = vor.u32 %v1230_v56, %v1046_v55 }
  0x33   :  { %612 = vmatmul.bf16.gmra.mxu2 %v975_v58  ;;  %v1048_v58 = vld [vmem:[%s1729_s0 + $0xd0] sm:$0xf0]  ;;  %873 = vperm.xlu2 %1318, %v811_v3  }
  0x34   :  { %661 = vmatmul.bf16.gmra.mxu3 %v979_v59  ;;  %v1054_v59 = vld [vmem:[%s1729_s0 + $0xc8] sm:$0xf]  ;;  %v1051_v0 = vor.u32 %v1228_v57, %v1048_v58 }
  0x35   :  { %v1055_v1 = vor.u32 %v1231_v60, %v1054_v59 }
  0x3b   :  { %888 = vperm.xlu2 %1318, %v814_v9  }
  0x41   :  { %519 = vmatmul.bf16.gmra.mxu0 %v983_v5  ;;  %v1234_v5 = vld [vmem:[%s1729_s0 + $0xec] sm:$0xf0] }
  0x42   :  { %568 = vmatmul.bf16.gmra.mxu1 %v987_v6  ;;  %v1232_v6 = vld [vmem:[%s1729_s0 + $0xe4] sm:$0xf]  ;;  %v1063_v13 = vor.u32 %v1234_v5, %v1062_v4 }
  0x43   :  { %617 = vmatmul.bf16.gmra.mxu2 %v991_v7  ;;  %v1064_v7 = vld [vmem:[%s1729_s0 + $0xf0] sm:$0xf0] }
  0x44   :  { %666 = vmatmul.bf16.gmra.mxu3 %v995_v8  ;;  %v1070_v8 = vld [vmem:[%s1729_s0 + $0xe8] sm:$0xf]  ;;  %v1067_v14 = vor.u32 %v1232_v6, %v1064_v7 }
  0x45   :  { %v1071_v15 = vor.u32 %v1235_v10, %v1070_v8 }
  0x51   :  { %524 = vmatmul.bf16.gmra.mxu0 %v999_v18 }
  0x52   :  { %573 = vmatmul.bf16.gmra.mxu1 %v1003_v19 }
  0x53   :  { %622 = vmatmul.bf16.gmra.mxu2 %v1007_v20 }
  0x54   :  { %671 = vmatmul.bf16.gmra.mxu3 %v1011_v21 }
  0x61   :  { %529 = vmatmul.bf16.gmra.mxu0 %v1015_v34 }
  0x62   :  { %578 = vmatmul.bf16.gmra.mxu1 %v1019_v35 }
  0x63   :  { %627 = vmatmul.bf16.gmra.mxu2 %v1023_v36 }
  0x64   :  { %676 = vmatmul.bf16.gmra.mxu3 %v1027_v37 }
  0x71   :  { %534 = vmatmul.bf16.gmra.mxu0 %v1031_v49 }
  0x72   :  { %583 = vmatmul.bf16.gmra.mxu1 %v1035_v50 }
  0x73   :  { %632 = vmatmul.bf16.gmra.mxu2 %v1039_v51 }
  0x74   :  { %681 = vmatmul.bf16.gmra.mxu3 %v1043_v52 }
  0x7c   :  { %v819_v27 = vpop.permute.xlu0 %818 }
  0x81   :  { %539 = vmatmul.bf16.gmra.mxu0 %v1047_v63 }
  0x82   :  { %588 = vmatmul.bf16.gmra.mxu1 %v1051_v0  ;;  %v829_v52 = vpop.permute.xlu1 %828 }
  0x83   :  { %637 = vmatmul.bf16.gmra.mxu2 %v1055_v1 }
  0x84   :  { %686 = vmatmul.bf16.gmra.mxu3 %v1059_v2  ;;  %v824_v40 = vpop.permute.xlu0 %823 }
  0x8a   :  { %v834_v1 = vpop.permute.xlu1 %833 }
  0x91   :  { %544 = vmatmul.bf16.gmra.mxu0 %v1063_v13  ;;  %v839_v13 = vpop.permute.xlu2 %838 }
  0x92   :  { %593 = vmatmul.bf16.gmra.mxu1 %v1067_v14 }
  0x93   :  { %642 = vmatmul.bf16.gmra.mxu2 %v1071_v15 }
  0x94   :  { %691 = vmatmul.bf16.gmra.mxu3 %v1075_v16 }
  0x9e   :  { %v510_v17 = vpop.f32.mrf.mxu0 }
  0x9f   :  { %v559_v18 = vpop.f32.mrf.mxu1 }
  0xa0   :  { %v560_v19 = vadd.f32 %v559_v18, %v510_v17 }
  0xa6   :  { %v608_v20 = vpop.f32.mrf.mxu2  ;;  %v512_v23 = vpop.f32.mrf.mxu0 }
  0xa7   :  { %v657_v21 = vpop.f32.mrf.mxu3  ;;  %v609_v22 = vadd.f32 %v608_v20, %v560_v19  ;;  %v561_v24 = vpop.f32.mrf.mxu1 }
  0xa8   :  { %v562_v29 = vadd.f32 %v561_v24, %v512_v23 }
  0xa9   :  { %v658_v25 = vadd.f32 %v657_v21, %v609_v22 }
  0xab   :  { %v752_v28 = vadd.f32 %v1685_v26, %v658_v25 }
  0xad   :  { %v768_v36 = vmax.f32 %v752_v28, 0.0 }
  0xae   :  { %v610_v30 = vpop.f32.mrf.mxu2  ;;  %v515_v33 = vpop.f32.mrf.mxu0 }
  0xaf   :  { %v659_v31 = vpop.f32.mrf.mxu3  ;;  %v611_v32 = vadd.f32 %v610_v30, %v562_v29  ;;  %v564_v34 = vpop.f32.mrf.mxu1  ;;  %v784_v39 = vmin.f32 %v768_v36, 20.0 }
  0xb0   :  { %v565_v38 = vadd.f32 %v564_v34, %v515_v33 }
  0xb1   :  { %v660_v35 = vadd.f32 %v659_v31, %v611_v32  ;;  %v896_v48 = vmul.f32 %v819_v27, %v784_v39  ;;  %v844_v27 = vpop.permute.xlu2 %843 }
  0xb3   :  { %v753_v37 = vadd.f32 %v1685_v26, %v660_v35 }
  0xb5   :  { %v769_v41 = vmax.f32 %v753_v37, 0.0 }
  0xb6   :  { %v613_v42 = vpop.f32.mrf.mxu2  ;;  %v517_v46 = vpop.f32.mrf.mxu0 }
  0xb7   :  { %v662_v43 = vpop.f32.mrf.mxu3  ;;  %v614_v44 = vadd.f32 %v613_v42, %v565_v38  ;;  %v785_v45 = vmin.f32 %v769_v41, 20.0  ;;  %v566_v47 = vpop.f32.mrf.mxu1 }
  0xb8   :  { %v567_v54 = vadd.f32 %v566_v47, %v517_v46 }
  0xb9   :  { %v663_v49 = vadd.f32 %v662_v43, %v614_v44  ;;  %v897_v50 = vmul.f32 %v824_v40, %v785_v45 }
  0xbb   :  { %v1271_v51 = vpack.c.bf16 %v897_v50, %v896_v48  ;;  %v754_v53 = vadd.f32 %v1685_v26, %v663_v49  ;;  %v849_v50 = vpop.permute.xlu0 %848 }
  0xbd   :  { %1272 = vst [vmem:[%s1731_s4] sm:$0xff] %v1271_v51   ;;  %v770_v61 = vmax.f32 %v754_v53, 0.0 }
  0xbe   :  { %v615_v55 = vpop.f32.mrf.mxu2  ;;  %v520_v58 = vpop.f32.mrf.mxu0 }
  0xbf   :  { %v664_v56 = vpop.f32.mrf.mxu3  ;;  %v616_v57 = vadd.f32 %v615_v55, %v567_v54  ;;  %v569_v59 = vpop.f32.mrf.mxu1  ;;  %v786_v0 = vmin.f32 %v770_v61, 20.0 }
  0xc0   :  { %v570_v63 = vadd.f32 %v569_v59, %v520_v58 }
  0xc1   :  { %v665_v60 = vadd.f32 %v664_v56, %v616_v57  ;;  %v898_v9 = vmul.f32 %v829_v52, %v786_v0  ;;  %v854_v52 = vpop.permute.xlu1 %853 }
  0xc3   :  { %v755_v62 = vadd.f32 %v1685_v26, %v665_v60 }
  0xc5   :  { %v771_v2 = vmax.f32 %v755_v62, 0.0 }
  0xc6   :  { %v618_v3 = vpop.f32.mrf.mxu2  ;;  %v522_v7 = vpop.f32.mrf.mxu0 }
  0xc7   :  { %v667_v4 = vpop.f32.mrf.mxu3  ;;  %v619_v5 = vadd.f32 %v618_v3, %v570_v63  ;;  %v787_v6 = vmin.f32 %v771_v2, 20.0  ;;  %v571_v8 = vpop.f32.mrf.mxu1 }
  0xc8   :  { %v572_v15 = vadd.f32 %v571_v8, %v522_v7 }
  0xc9   :  { %v668_v10 = vadd.f32 %v667_v4, %v619_v5  ;;  %v899_v11 = vmul.f32 %v834_v1, %v787_v6 }
  0xcb   :  { %v1276_v12 = vpack.c.bf16 %v899_v11, %v898_v9  ;;  %v756_v14 = vadd.f32 %v1685_v26, %v668_v10  ;;  %v859_v11 = vpop.permute.xlu2 %858 }
  0xcd   :  { %1308 = vst [vmem:[%s1731_s4 + $0x8] sm:$0xff] %v1276_v12   ;;  %v772_v22 = vmax.f32 %v756_v14, 0.0 }
  0xce   :  { %v620_v16 = vpop.f32.mrf.mxu2  ;;  %v525_v19 = vpop.f32.mrf.mxu0 }
  0xcf   :  { %v669_v17 = vpop.f32.mrf.mxu3  ;;  %v621_v18 = vadd.f32 %v620_v16, %v572_v15  ;;  %v574_v20 = vpop.f32.mrf.mxu1  ;;  %v788_v25 = vmin.f32 %v772_v22, 20.0 }
  0xd0   :  { %v575_v24 = vadd.f32 %v574_v20, %v525_v19  ;;  %v864_v20 = vpop.permute.xlu0 %863 }
  0xd1   :  { %v670_v21 = vadd.f32 %v669_v17, %v621_v18  ;;  %v900_v35 = vmul.f32 %v839_v13, %v788_v25 }
  0xd3   :  { %v757_v23 = vadd.f32 %v1685_v26, %v670_v21 }
  0xd5   :  { %v773_v28 = vmax.f32 %v757_v23, 0.0 }
  0xd6   :  { %v623_v29 = vpop.f32.mrf.mxu2  ;;  %v527_v33 = vpop.f32.mrf.mxu0 }
  0xd7   :  { %v672_v30 = vpop.f32.mrf.mxu3  ;;  %v624_v31 = vadd.f32 %v623_v29, %v575_v24  ;;  %v789_v32 = vmin.f32 %v773_v28, 20.0  ;;  %v576_v34 = vpop.f32.mrf.mxu1 }
  0xd8   :  { %v577_v40 = vadd.f32 %v576_v34, %v527_v33 }
  0xd9   :  { %v673_v36 = vadd.f32 %v672_v30, %v624_v31  ;;  %v901_v37 = vmul.f32 %v844_v27, %v789_v32 }
  0xdb   :  { %v1281_v38 = vpack.c.bf16 %v901_v37, %v900_v35  ;;  %v758_v39 = vadd.f32 %v1685_v26, %v673_v36 }
  0xdd   :  { %1309 = vst [vmem:[%s1731_s4 + $0x10] sm:$0xff] %v1281_v38   ;;  %v774_v47 = vmax.f32 %v758_v39, 0.0  ;;  %v869_v38 = vpop.permute.xlu1 %868 }
  0xde   :  { %v625_v41 = vpop.f32.mrf.mxu2  ;;  %v530_v44 = vpop.f32.mrf.mxu0 }
  0xdf   :  { %v674_v42 = vpop.f32.mrf.mxu3  ;;  %v626_v43 = vadd.f32 %v625_v41, %v577_v40  ;;  %v579_v45 = vpop.f32.mrf.mxu1  ;;  %v790_v51 = vmin.f32 %v774_v47, 20.0 }
  0xe0   :  { %v580_v49 = vadd.f32 %v579_v45, %v530_v44 }
  0xe1   :  { %v675_v46 = vadd.f32 %v674_v42, %v626_v43  ;;  %v902_v60 = vmul.f32 %v849_v50, %v790_v51 }
  0xe3   :  { %v759_v48 = vadd.f32 %v1685_v26, %v675_v46  ;;  %v874_v46 = vpop.permute.xlu2 %873 }
  0xe5   :  { %v775_v53 = vmax.f32 %v759_v48, 0.0 }
  0xe6   :  { %v628_v54 = vpop.f32.mrf.mxu2  ;;  %v532_v58 = vpop.f32.mrf.mxu0 }
  0xe7   :  { %v677_v55 = vpop.f32.mrf.mxu3  ;;  %v629_v56 = vadd.f32 %v628_v54, %v580_v49  ;;  %v791_v57 = vmin.f32 %v775_v53, 20.0  ;;  %v581_v59 = vpop.f32.mrf.mxu1 }
  0xe8   :  { %v582_v1 = vadd.f32 %v581_v59, %v532_v58 }
  0xe9   :  { %v678_v61 = vadd.f32 %v677_v55, %v629_v56  ;;  %v903_v62 = vmul.f32 %v854_v52, %v791_v57 }
  0xeb   :  { %v1286_v63 = vpack.c.bf16 %v903_v62, %v902_v60  ;;  %v760_v0 = vadd.f32 %v1685_v26, %v678_v61 }
  0xed   :  { %1310 = vst [vmem:[%s1731_s4 + $0x18] sm:$0xff] %v1286_v63   ;;  %v776_v8 = vmax.f32 %v760_v0, 0.0 }
  0xee   :  { %v630_v2 = vpop.f32.mrf.mxu2  ;;  %v535_v5 = vpop.f32.mrf.mxu0 }
  0xef   :  { %v679_v3 = vpop.f32.mrf.mxu3  ;;  %v631_v4 = vadd.f32 %v630_v2, %v582_v1  ;;  %v584_v6 = vpop.f32.mrf.mxu1  ;;  %v792_v12 = vmin.f32 %v776_v8, 20.0 }
  0xf0   :  { %v585_v10 = vadd.f32 %v584_v6, %v535_v5  ;;  %v884_v5 = vpop.permute.xlu1 %883 }
  0xf1   :  { %v680_v7 = vadd.f32 %v679_v3, %v631_v4  ;;  %v904_v21 = vmul.f32 %v859_v11, %v792_v12  ;;  %v879_v4 = vpop.permute.xlu0 %878 }
  0xf3   :  { %v761_v9 = vadd.f32 %v1685_v26, %v680_v7 }
  0xf5   :  { %v777_v13 = vmax.f32 %v761_v9, 0.0 }
  0xf6   :  { %v633_v14 = vpop.f32.mrf.mxu2  ;;  %v537_v18 = vpop.f32.mrf.mxu0 }
  0xf7   :  { %v682_v15 = vpop.f32.mrf.mxu3  ;;  %v793_v16 = vmin.f32 %v777_v13, 20.0  ;;  %v634_v17 = vadd.f32 %v633_v14, %v585_v10  ;;  %v586_v19 = vpop.f32.mrf.mxu1 }
  0xf8   :  { %v587_v27 = vadd.f32 %v586_v19, %v537_v18 }
  0xf9   :  { %v905_v22 = vmul.f32 %v864_v20, %v793_v16  ;;  %v683_v23 = vadd.f32 %v682_v15, %v634_v17 }
  0xfb   :  { %v1291_v24 = vpack.c.bf16 %v905_v22, %v904_v21  ;;  %v762_v25 = vadd.f32 %v1685_v26, %v683_v23  ;;  %v894_v23 = vpop.permute.xlu0 %893 }
  0xfd   :  { %1311 = vst [vmem:[%s1731_s4 + $0x20] sm:$0xff] %v1291_v24   ;;  %v778_v34 = vmax.f32 %v762_v25, 0.0  ;;  %v889_v24 = vpop.permute.xlu2 %888 }
  0xfe   :  { %v635_v28 = vpop.f32.mrf.mxu2  ;;  %v540_v31 = vpop.f32.mrf.mxu0 }
  0xff   :  { %v684_v29 = vpop.f32.mrf.mxu3  ;;  %v636_v30 = vadd.f32 %v635_v28, %v587_v27  ;;  %v589_v32 = vpop.f32.mrf.mxu1  ;;  %v794_v39 = vmin.f32 %v778_v34, 20.0 }
 0x100   :  { %v590_v36 = vadd.f32 %v589_v32, %v540_v31 }
 0x101   :  { %v685_v33 = vadd.f32 %v684_v29, %v636_v30  ;;  %v906_v48 = vmul.f32 %v869_v38, %v794_v39 }
 0x103   :  { %v763_v35 = vadd.f32 %v1685_v26, %v685_v33 }
 0x105   :  { %v779_v37 = vmax.f32 %v763_v35, 0.0 }
 0x106   :  { %v638_v40 = vpop.f32.mrf.mxu2  ;;  %v542_v44 = vpop.f32.mrf.mxu0 }
 0x107   :  { %v687_v41 = vpop.f32.mrf.mxu3  ;;  %v795_v42 = vmin.f32 %v779_v37, 20.0  ;;  %v639_v43 = vadd.f32 %v638_v40, %v590_v36  ;;  %v591_v45 = vpop.f32.mrf.mxu1 }
 0x108   :  { %v592_v52 = vadd.f32 %v591_v45, %v542_v44 }
 0x109   :  { %v907_v47 = vmul.f32 %v874_v46, %v795_v42  ;;  %v688_v49 = vadd.f32 %v687_v41, %v639_v43 }
 0x10b   :  { %v1296_v50 = vpack.c.bf16 %v907_v47, %v906_v48  ;;  %v764_v51 = vadd.f32 %v1685_v26, %v688_v49 }
 0x10d   :  { %1312 = vst [vmem:[%s1731_s4 + $0x28] sm:$0xff] %v1296_v50   ;;  %v780_v58 = vmax.f32 %v764_v51, 0.0 }
 0x10e   :  { %v640_v53 = vpop.f32.mrf.mxu2  ;;  %v545_v56 = vpop.f32.mrf.mxu0 }
 0x10f   :  { %v689_v54 = vpop.f32.mrf.mxu3  ;;  %v641_v55 = vadd.f32 %v640_v53, %v592_v52  ;;  %v594_v57 = vpop.f32.mrf.mxu1  ;;  %v796_v62 = vmin.f32 %v780_v58, 20.0 }
 0x110   :  { %v595_v61 = vadd.f32 %v594_v57, %v545_v56 }
 0x111   :  { %v690_v59 = vadd.f32 %v689_v54, %v641_v55  ;;  %v908_v6 = vmul.f32 %v879_v4, %v796_v62 }
 0x113   :  { %v765_v60 = vadd.f32 %v1685_v26, %v690_v59 }
 0x115   :  { %v781_v63 = vmax.f32 %v765_v60, 0.0 }
 0x116   :  { %v643_v0 = vpop.f32.mrf.mxu2  ;;  %v547_v9 = vpop.f32.mrf.mxu0 }
 0x117   :  { %v692_v1 = vpop.f32.mrf.mxu3  ;;  %v797_v2 = vmin.f32 %v781_v63, 20.0  ;;  %v644_v3 = vadd.f32 %v643_v0, %v595_v61  ;;  %v596_v10 = vpop.f32.mrf.mxu1 }
 0x118   :  { %v597_v13 = vadd.f32 %v596_v10, %v547_v9 }
 0x119   :  { %v909_v7 = vmul.f32 %v884_v5, %v797_v2  ;;  %v693_v8 = vadd.f32 %v692_v1, %v644_v3 }
 0x11b   :  { %v1301_v11 = vpack.c.bf16 %v909_v7, %v908_v6  ;;  %v766_v12 = vadd.f32 %v1685_v26, %v693_v8 }
 0x11d   :  { %1313 = vst [vmem:[%s1731_s4 + $0x30] sm:$0xff] %v1301_v11   ;;  %v782_v17 = vmax.f32 %v766_v12, 0.0 }
 0x11e   :  { %v645_v14 = vpop.f32.mrf.mxu2 }
 0x11f   :  { %v646_v15 = vadd.f32 %v645_v14, %v597_v13  ;;  %v694_v16 = vpop.f32.mrf.mxu3  ;;  %v798_v20 = vmin.f32 %v782_v17, 20.0 }
 0x121   :  { %v695_v18 = vadd.f32 %v694_v16, %v646_v15  ;;  %v910_v25 = vmul.f32 %v889_v24, %v798_v20 }
 0x123   :  { %v767_v19 = vadd.f32 %v1685_v26, %v695_v18 }
 0x125   :  { %v783_v21 = vmax.f32 %v767_v19, 0.0 }
 0x127   :  { %v799_v22 = vmin.f32 %v783_v21, 20.0 }
 0x129   :  { %v911_v27 = vmul.f32 %v894_v23, %v799_v22 }
 0x12b   :  { %v1306_v28 = vpack.c.bf16 %v911_v27, %v910_v25 }
 0x12d   :  { %1314 = vst [vmem:[%s1731_s4 + $0x38] sm:$0xff] %v1306_v28  }

// kernel: ds2_forward.8
= control target key start
LH: loop header
LB: loop body
LE: loop exit
PB: predicated region body
PF: predicated region fallthrough
CT: control target
= control target key end

     0   :  { %s2229_s15 = smov 0   ;;  %s2231_s16 = smov 0   ;;  %s2574_s0 = inlined_call_operand.vmem [shape: bf16[64,8192], index: 0, kind: input, shape index: {}]   ;;  %s2575_s1 = inlined_call_operand.vmem [shape: bf16[8192,128], index: 1, kind: input, shape index: {}]   ;;  %s2576_s2 = inlined_call_operand.vmem [shape: f32[1,128], index: 2, kind: input, shape index: {}]   ;;  %s2577_s3 = inlined_call_operand.vmem [shape: f32[64,1], index: 3, kind: input, shape index: {}]   ;;  %s2578_s4 = inlined_call_operand.vmem [shape: bf16[64,128], index: 4, kind: output, shape index: {}]  }
   0x1   :  { %s2233_s17 = smov 0   ;;  %s2235_s18 = smov 0  }
   0x2   :  { %s2237_s19 = smov 0  }
   0x3 LB: > { %s26_s20 = sadd.s32 1, %s2196_s18  ;;  %p49_p1 = scmp.ne.s32.totalorder %s2188_s16, %s2184_s15  ;;  %s2200_s19 = sphi %s2237_s19, %s14_s19   ;;  %s2196_s18 = sphi %s2235_s18, %s2582_s18   ;;  %s2192_s17 = sphi %s2233_s17, %s2581_s17   ;;  %s2188_s16 = sphi %s2231_s16, %s2580_s16   ;;  %s2184_s15 = sphi %s2229_s15, %s2579_s15  }
   0x4   : > { %p27_p0 = scmp.ge.s32.totalorder %s26_s20, 8  ;;  %p50_p2 = scmp.eq.s32.totalorder %s2200_s19, 0 }
   0x5   : > { %s42_s22 = sadd.s32 1, %s2188_s16  ;;  %p1598_p5 = scmp.ge.s32.totalorder %s2200_s19, 8 }
   0x6   : > { %s2584_s20 = smov (%p27_p0, %s26_s20), 0  ;;  %p51_p3 = por %p50_p2, %p49_p1 }
   0x7   : > { %s38_s21 = ssub.s32 %s2196_s18, %s2584_s20  ;;  %198 = sbr.rel (%p1598_p5) target bundleno = 48 (0x30), region = 24 }
   0x8   : > { %p40_p4 = scmp.eq.s32.totalorder %s38_s21, 0 }
   0xa   : > { %s2264_s23 = scalar_select %p40_p4, %s2188_s16, %s42_s22  }
   0xc   : > { %201 = sbr.rel (!%p51_p3) target bundleno = 48 (0x30), region = 28  ;;  %s203_s24 = sand.u32 (%p51_p3), 1, %s2188_s16  }
   0xd   : > { %s1996_s25 = sshll.u32 (%p51_p3), %s2196_s18, 5  ;;  %s1599_s26 = sshll.u32 (%p51_p3), %s203_s24, 8 }
   0xe   : > { %s2272_s29 = scalar_lea.vmem (%p51_p3), %s2574_s0, %s1996_s25  ;;  %s2277_s30 = scalar_lea.vmem (%p51_p3), [#allocation3], %s1599_s26 }
   0xf   : > { %v224_v0 = vld [vmem:[%s2272_s29] sm:$0xff] (%p51_p3)  ;;  %v226_v1 = vld [vmem:[%s2272_s29 + $0x8] sm:$0xff] (%p51_p3)  ;;  %v228_v2 = vld [vmem:[%s2272_s29 + $0x10] sm:$0xff] (%p51_p3) }
  0x10   : > { %225 = vst [vmem:[%s2277_s30] sm:$0xff] (%p51_p3), %v224_v0  ;;  %v230_v3 = vld [vmem:[%s2272_s29 + $0x18] sm:$0xff] (%p51_p3)  ;;  %v232_v4 = vld [vmem:[%s2272_s29 + $0x100] sm:$0xff] (%p51_p3)  ;;  %v234_v5 = vld [vmem:[%s2272_s29 + $0x108] sm:$0xff] (%p51_p3) }
  0x11   : > { %227 = vst [vmem:[%s2277_s30 + $0x8] sm:$0xff] %v226_v1  ;;  %v236_v6 = vld [vmem:[%s2272_s29 + $0x110] sm:$0xff]  ;;  %v238_v7 = vld [vmem:[%s2272_s29 + $0x118] sm:$0xff]  ;;  %v240_v8 = vld [vmem:[%s2272_s29 + $0x200] sm:$0xff] }
  0x12   : > { %229 = vst [vmem:[%s2277_s30 + $0x10] sm:$0xff] %v228_v2  ;;  %v242_v9 = vld [vmem:[%s2272_s29 + $0x208] sm:$0xff]  ;;  %v244_v10 = vld [vmem:[%s2272_s29 + $0x210] sm:$0xff]  ;;  %v246_v11 = vld [vmem:[%s2272_s29 + $0x218] sm:$0xff] }
  0x13   : > { %231 = vst [vmem:[%s2277_s30 + $0x18] sm:$0xff] %v230_v3  ;;  %v248_v12 = vld [vmem:[%s2272_s29 + $0x300] sm:$0xff]  ;;  %v250_v13 = vld [vmem:[%s2272_s29 + $0x308] sm:$0xff]  ;;  %v252_v14 = vld [vmem:[%s2272_s29 + $0x310] sm:$0xff] }
  0x14   : > { %233 = vst [vmem:[%s2277_s30 + $0x20] sm:$0xff] %v232_v4  ;;  %v254_v15 = vld [vmem:[%s2272_s29 + $0x318] sm:$0xff]  ;;  %v256_v16 = vld [vmem:[%s2272_s29 + $0x400] sm:$0xff]  ;;  %v258_v17 = vld [vmem:[%s2272_s29 + $0x408] sm:$0xff] }
  0x15   : > { %235 = vst [vmem:[%s2277_s30 + $0x28] sm:$0xff] %v234_v5  ;;  %v260_v18 = vld [vmem:[%s2272_s29 + $0x410] sm:$0xff]  ;;  %v262_v19 = vld [vmem:[%s2272_s29 + $0x418] sm:$0xff]  ;;  %v264_v20 = vld [vmem:[%s2272_s29 + $0x500] sm:$0xff] }
  0x16   : > { %237 = vst [vmem:[%s2277_s30 + $0x30] sm:$0xff] %v236_v6  ;;  %v266_v21 = vld [vmem:[%s2272_s29 + $0x508] sm:$0xff]  ;;  %v268_v22 = vld [vmem:[%s2272_s29 + $0x510] sm:$0xff]  ;;  %v270_v23 = vld [vmem:[%s2272_s29 + $0x518] sm:$0xff] }
  0x17   : > { %239 = vst [vmem:[%s2277_s30 + $0x38] sm:$0xff] %v238_v7  ;;  %v272_v24 = vld [vmem:[%s2272_s29 + $0x600] sm:$0xff]  ;;  %v274_v25 = vld [vmem:[%s2272_s29 + $0x608] sm:$0xff]  ;;  %v276_v26 = vld [vmem:[%s2272_s29 + $0x610] sm:$0xff] }
  0x18   : > { %241 = vst [vmem:[%s2277_s30 + $0x40] sm:$0xff] %v240_v8  ;;  %v278_v27 = vld [vmem:[%s2272_s29 + $0x618] sm:$0xff]  ;;  %v280_v28 = vld [vmem:[%s2272_s29 + $0x700] sm:$0xff]  ;;  %v282_v29 = vld [vmem:[%s2272_s29 + $0x708] sm:$0xff] }
  0x19   : > { %243 = vst [vmem:[%s2277_s30 + $0x48] sm:$0xff] %v242_v9  ;;  %v284_v30 = vld [vmem:[%s2272_s29 + $0x710] sm:$0xff]  ;;  %v286_v31 = vld [vmem:[%s2272_s29 + $0x718] sm:$0xff] }
  0x1a   : > { %245 = vst [vmem:[%s2277_s30 + $0x50] sm:$0xff] %v244_v10 }
  0x1b   : > { %247 = vst [vmem:[%s2277_s30 + $0x58] sm:$0xff] %v246_v11 }
  0x1c   : > { %249 = vst [vmem:[%s2277_s30 + $0x60] sm:$0xff] %v248_v12 }
  0x1d   : > { %251 = vst [vmem:[%s2277_s30 + $0x68] sm:$0xff] %v250_v13 }
  0x1e   : > { %253 = vst [vmem:[%s2277_s30 + $0x70] sm:$0xff] %v252_v14 }
  0x1f   : > { %255 = vst [vmem:[%s2277_s30 + $0x78] sm:$0xff] %v254_v15 }
  0x20   : > { %257 = vst [vmem:[%s2277_s30 + $0x80] sm:$0xff] %v256_v16 }
  0x21   : > { %259 = vst [vmem:[%s2277_s30 + $0x88] sm:$0xff] %v258_v17 }
  0x22   : > { %261 = vst [vmem:[%s2277_s30 + $0x90] sm:$0xff] %v260_v18 }
  0x23   : > { %263 = vst [vmem:[%s2277_s30 + $0x98] sm:$0xff] %v262_v19 }
  0x24   : > { %265 = vst [vmem:[%s2277_s30 + $0xa0] sm:$0xff] %v264_v20 }
  0x25   : > { %267 = vst [vmem:[%s2277_s30 + $0xa8] sm:$0xff] %v266_v21 }
  0x26   : > { %269 = vst [vmem:[%s2277_s30 + $0xb0] sm:$0xff] %v268_v22 }
  0x27   : > { %271 = vst [vmem:[%s2277_s30 + $0xb8] sm:$0xff] %v270_v23 }
  0x28   : > { %273 = vst [vmem:[%s2277_s30 + $0xc0] sm:$0xff] %v272_v24 }
  0x29   : > { %275 = vst [vmem:[%s2277_s30 + $0xc8] sm:$0xff] %v274_v25 }
  0x2a   : > { %277 = vst [vmem:[%s2277_s30 + $0xd0] sm:$0xff] %v276_v26 }
  0x2b   : > { %279 = vst [vmem:[%s2277_s30 + $0xd8] sm:$0xff] %v278_v27 }
  0x2c   : > { %281 = vst [vmem:[%s2277_s30 + $0xe0] sm:$0xff] %v280_v28 }
  0x2d   : > { %283 = vst [vmem:[%s2277_s30 + $0xe8] sm:$0xff] %v282_v29 }
  0x2e   : > { %285 = vst [vmem:[%s2277_s30 + $0xf0] sm:$0xff] %v284_v30 }
  0x2f   : > { %287 = vst [vmem:[%s2277_s30 + $0xf8] sm:$0xff] %v286_v31 }
  0x30 PF: > { %p1602_p6 = scmp.ge.s32.totalorder %s2200_s19, 1  ;;  %p304_p7 = scmp.lt.s32.totalorder %s2200_s19, 9 }
  0x32   : > { %p305_p8 = pnand %p1602_p6, %p304_p7 }
  0x33   : > { %s311_s5 = sand.u32 (!%p305_p8), 1, %s2184_s15   ;;  %s1604_s6 = sshll.u32 (!%p305_p8), %s2192_s17, 7 }
  0x34   : > { %308 = sbr.rel (%p305_p8) target bundleno = 502 (0x1f6), region = 55  ;;  %s1603_s7 = sshll.u32 (!%p305_p8), %s311_s5, 8 }
  0x35   : > { %p358_p9 = scmp.lt.s32.totalorder (!%p305_p8), %s1604_s6, 1023  ;;  %s2349_s12 = scalar_lea.vmem (!%p305_p8), [#allocation3], %s1603_s7 }
  0x36   : > { %p1606_p10 = scmp.ne.s32.totalorder (!%p305_p8), %s2192_s17, 0 }
  0x39   : > { %s2586_s6 = smov (!%p358_p9, %s1604_s6), 1023  ;;  %387 = sbr.rel (%p1606_p10) target bundleno = 71 (0x47), region = 63 }
  0x3a   : > { %s1605_s8 = sshll.u32 %s2586_s6, 2 }
  0x3b   : > { %s2347_s11 = scalar_lea.vmem %s2575_s1, %s1605_s8 }
  0x3e   : > { %v2202_v32 = vmov 0.0  }
  0x3f   : > { %388 = vst [vmem:[#allocation2 + $0x30] sm:$0xff] %v2202_v32 }
  0x40   : > { %389 = vst [vmem:[#allocation2] sm:$0xff] %v2202_v32 }
  0x41   : > { %390 = vst [vmem:[#allocation2 + $0x18] sm:$0xff] %v2202_v32 }
  0x42   : > { %391 = vst [vmem:[#allocation2 + $0x10] sm:$0xff] %v2202_v32 }
  0x43   : > { %392 = vst [vmem:[#allocation2 + $0x8] sm:$0xff] %v2202_v32 }
  0x44   : > { %393 = vst [vmem:[#allocation2 + $0x20] sm:$0xff] %v2202_v32 }
  0x45   : > { %394 = vst [vmem:[#allocation2 + $0x28] sm:$0xff] %v2202_v32 }
  0x46   : > { %395 = vst [vmem:[#allocation2 + $0x38] sm:$0xff] %v2202_v32 }
  0x47 PF: > { %v2036_v33 = vld [vmem:[%s2347_s11 + $0x38] sm:$0xff]  ;;  %v2035_v37 = vld [vmem:[%s2347_s11 + $0x30] sm:$0xff]  ;;  %v2034_v41 = vld [vmem:[%s2347_s11 + $0x28] sm:$0xff]  ;;  %p1991_p11 = scmp.ne.s32.totalorder %s2192_s17, 7 }
  0x48   : > { %v2044_v34 = vld [vmem:[%s2347_s11 + $0x78] sm:$0xff]  ;;  %1108 = vmatpush.bf16.msra.mxu0 %v2036_v33  ;;  %v2043_v38 = vld [vmem:[%s2347_s11 + $0x70] sm:$0xff]  ;;  %v2042_v42 = vld [vmem:[%s2347_s11 + $0x68] sm:$0xff] }
  0x49   : > { %v2052_v35 = vld [vmem:[%s2347_s11 + $0xb8] sm:$0xff]  ;;  %1137 = vmatpush.bf16.msra.mxu1 %v2044_v34  ;;  %v2051_v39 = vld [vmem:[%s2347_s11 + $0xb0] sm:$0xff]  ;;  %v2050_v43 = vld [vmem:[%s2347_s11 + $0xa8] sm:$0xff] }
  0x4a   : > { %v2060_v36 = vld [vmem:[%s2347_s11 + $0xf8] sm:$0xff]  ;;  %1166 = vmatpush.bf16.msra.mxu2 %v2052_v35  ;;  %v2059_v40 = vld [vmem:[%s2347_s11 + $0xf0] sm:$0xff]  ;;  %v2058_v44 = vld [vmem:[%s2347_s11 + $0xe8] sm:$0xff] }
  0x4b   : > { %1195 = vmatpush.bf16.msra.mxu3 %v2060_v36  ;;  %v2033_v45 = vld [vmem:[%s2347_s11 + $0x20] sm:$0xff]  ;;  %v2032_v49 = vld [vmem:[%s2347_s11 + $0x18] sm:$0xff]  ;;  %v2031_v53 = vld [vmem:[%s2347_s11 + $0x10] sm:$0xff] }
  0x4c   : > { %1109 = vmatpush.bf16.msra.mxu0 %v2035_v37  ;;  %v2041_v46 = vld [vmem:[%s2347_s11 + $0x60] sm:$0xff]  ;;  %v2040_v50 = vld [vmem:[%s2347_s11 + $0x58] sm:$0xff]  ;;  %v2039_v54 = vld [vmem:[%s2347_s11 + $0x50] sm:$0xff] }
  0x4d   : > { %1138 = vmatpush.bf16.msra.mxu1 %v2043_v38  ;;  %v2049_v47 = vld [vmem:[%s2347_s11 + $0xa0] sm:$0xff]  ;;  %v2048_v51 = vld [vmem:[%s2347_s11 + $0x98] sm:$0xff]  ;;  %v2047_v55 = vld [vmem:[%s2347_s11 + $0x90] sm:$0xff] }
  0x4e   : > { %1167 = vmatpush.bf16.msra.mxu2 %v2051_v39  ;;  %v2057_v48 = vld [vmem:[%s2347_s11 + $0xe0] sm:$0xff]  ;;  %v2056_v52 = vld [vmem:[%s2347_s11 + $0xd8] sm:$0xff]  ;;  %v2055_v56 = vld [vmem:[%s2347_s11 + $0xd0] sm:$0xff] }
  0x4f   : > { %1196 = vmatpush.bf16.msra.mxu3 %v2059_v40  ;;  %v2030_v57 = vld [vmem:[%s2347_s11 + $0x8] sm:$0xff]  ;;  %v2029_v61 = vld [vmem:[%s2347_s11] sm:$0xff]  ;;  %v2084_v9 = vld [vmem:[%s2347_s11 + $0x1b8] sm:$0xff] }
  0x50   : > { %1110 = vmatpush.bf16.msra.mxu0 %v2034_v41  ;;  %v2038_v58 = vld [vmem:[%s2347_s11 + $0x48] sm:$0xff]  ;;  %v2037_v62 = vld [vmem:[%s2347_s11 + $0x40] sm:$0xff]  ;;  %v2068_v10 = vld [vmem:[%s2347_s11 + $0x138] sm:$0xff] }
  0x51   : > { %1139 = vmatpush.bf16.msra.mxu1 %v2042_v42  ;;  %v2046_v59 = vld [vmem:[%s2347_s11 + $0x88] sm:$0xff]  ;;  %v2045_v63 = vld [vmem:[%s2347_s11 + $0x80] sm:$0xff]  ;;  %v2092_v15 = vld [vmem:[%s2347_s11 + $0x1f8] sm:$0xff] }
  0x52   : > { %1168 = vmatpush.bf16.msra.mxu2 %v2050_v43  ;;  %v2054_v60 = vld [vmem:[%s2347_s11 + $0xc8] sm:$0xff]  ;;  %v2053_v0 = vld [vmem:[%s2347_s11 + $0xc0] sm:$0xff]  ;;  %v2076_v16 = vld [vmem:[%s2347_s11 + $0x178] sm:$0xff] }
  0x53   : > { %1197 = vmatpush.bf16.msra.mxu3 %v2058_v44  ;;  %v1609_v1 = vld [vmem:[%s2349_s12] sm:$0xf]  ;;  %v1997_v3 = vld [vmem:[%s2349_s12 + $0x4] sm:$0xf]  ;;  %v1617_v5 = vld [vmem:[%s2349_s12 + $0x8] sm:$0xf] }
  0x54   : > { %1111 = vmatpush.bf16.msra.mxu0 %v2033_v45  ;;  %v2001_v2 = vld [vmem:[%s2349_s12 + $0x1c] sm:$0xf0]  ;;  %v1611_v4 = vld [vmem:[%s2349_s12 + $0x20] sm:$0xf0]  ;;  %v2002_v6 = vld [vmem:[%s2349_s12 + $0x24] sm:$0xf0] }
  0x55   : > { %1140 = vmatpush.bf16.msra.mxu1 %v2041_v46  ;;  %v1998_v7 = vld [vmem:[%s2349_s12 + $0xc] sm:$0xf]  ;;  %v1610_v11 = vor.u32 %v2001_v2, %v1609_v1  ;;  %v1614_v12 = vor.u32 %v1997_v3, %v1611_v4  ;;  %v1618_v13 = vor.u32 %v2002_v6, %v1617_v5  ;;  %v2083_v17 = vld [vmem:[%s2347_s11 + $0x1b0] sm:$0xff]  ;;  %v1641_v25 = vld [vmem:[%s2349_s12 + $0x40] sm:$0xf] }
  0x56   : > { %1169 = vmatpush.bf16.msra.mxu2 %v2049_v47  ;;  %v1619_v8 = vld [vmem:[%s2349_s12 + $0x28] sm:$0xf0]  ;;  %v2067_v18 = vld [vmem:[%s2347_s11 + $0x130] sm:$0xff]  ;;  %v2081_v26 = vld [vmem:[%s2347_s11 + $0x1a0] sm:$0xff] }
  0x57   : > { %1198 = vmatpush.bf16.msra.mxu3 %v2057_v48  ;;  %v1622_v14 = vor.u32 %v1998_v7, %v1619_v8  ;;  %v2091_v19 = vld [vmem:[%s2347_s11 + $0x1f0] sm:$0xff]  ;;  %v2082_v21 = vld [vmem:[%s2347_s11 + $0x1a8] sm:$0xff]  ;;  %v2065_v27 = vld [vmem:[%s2347_s11 + $0x120] sm:$0xff] }
  0x58   : > { %1112 = vmatpush.bf16.msra.mxu0 %v2032_v49  ;;  %v2075_v20 = vld [vmem:[%s2347_s11 + $0x170] sm:$0xff]  ;;  %v2066_v22 = vld [vmem:[%s2347_s11 + $0x128] sm:$0xff]  ;;  %v2009_v28 = vld [vmem:[%s2349_s12 + $0x5c] sm:$0xf0] }
  0x59   : > { %1141 = vmatpush.bf16.msra.mxu1 %v2040_v50  ;;  %v2090_v23 = vld [vmem:[%s2347_s11 + $0x1e8] sm:$0xff]  ;;  %v2005_v29 = vld [vmem:[%s2349_s12 + $0x44] sm:$0xf]  ;;  %v2080_v37 = vld [vmem:[%s2347_s11 + $0x198] sm:$0xff]  ;;  %v1642_v39 = vor.u32 %v2009_v28, %v1641_v25 }
  0x5a   : > { %1170 = vmatpush.bf16.msra.mxu2 %v2048_v51  ;;  %v2074_v24 = vld [vmem:[%s2347_s11 + $0x168] sm:$0xff]  ;;  %v1643_v30 = vld [vmem:[%s2349_s12 + $0x60] sm:$0xf0]  ;;  %v2064_v38 = vld [vmem:[%s2347_s11 + $0x118] sm:$0xff] }
  0x5b   : > { %1199 = vmatpush.bf16.msra.mxu3 %v2056_v52  ;;  %v1649_v31 = vld [vmem:[%s2349_s12 + $0x48] sm:$0xf]  ;;  %v2006_v33 = vld [vmem:[%s2349_s12 + $0x4c] sm:$0xf]  ;;  %v2089_v35 = vld [vmem:[%s2347_s11 + $0x1e0] sm:$0xff]  ;;  %v1646_v40 = vor.u32 %v2005_v29, %v1643_v30 }
  0x5c   : > { %1113 = vmatpush.bf16.msra.mxu0 %v2031_v53  ;;  %v2010_v32 = vld [vmem:[%s2349_s12 + $0x64] sm:$0xf0]  ;;  %v1651_v34 = vld [vmem:[%s2349_s12 + $0x68] sm:$0xf0]  ;;  %v2073_v36 = vld [vmem:[%s2347_s11 + $0x160] sm:$0xff] }
  0x5d   : > { %1142 = vmatpush.bf16.msra.mxu1 %v2039_v54  ;;  %v1650_v41 = vor.u32 %v2010_v32, %v1649_v31  ;;  %v1654_v42 = vor.u32 %v2006_v33, %v1651_v34  ;;  %v2088_v43 = vld [vmem:[%s2347_s11 + $0x1d8] sm:$0xff]  ;;  %v2079_v45 = vld [vmem:[%s2347_s11 + $0x190] sm:$0xff]  ;;  %v2078_v49 = vld [vmem:[%s2347_s11 + $0x188] sm:$0xff] }
  0x5e   : > { %1171 = vmatpush.bf16.msra.mxu2 %v2047_v55  ;;  %v2072_v44 = vld [vmem:[%s2347_s11 + $0x158] sm:$0xff]  ;;  %v2063_v46 = vld [vmem:[%s2347_s11 + $0x110] sm:$0xff]  ;;  %v2062_v50 = vld [vmem:[%s2347_s11 + $0x108] sm:$0xff] }
  0x5f   : > { %1200 = vmatpush.bf16.msra.mxu3 %v2055_v56  ;;  %v2087_v47 = vld [vmem:[%s2347_s11 + $0x1d0] sm:$0xff]  ;;  %v2086_v51 = vld [vmem:[%s2347_s11 + $0x1c8] sm:$0xff]  ;;  %v1673_v53 = vld [vmem:[%s2349_s12 + $0x80] sm:$0xf] }
  0x60   : > { %1114 = vmatpush.bf16.msra.mxu0 %v2030_v57  ;;  %v2071_v48 = vld [vmem:[%s2347_s11 + $0x150] sm:$0xff]  ;;  %v2070_v52 = vld [vmem:[%s2347_s11 + $0x148] sm:$0xff]  ;;  %v2077_v54 = vld [vmem:[%s2347_s11 + $0x180] sm:$0xff] }
  0x61   : > { %1143 = vmatpush.bf16.msra.mxu1 %v2038_v58  ;;  %v2061_v55 = vld [vmem:[%s2347_s11 + $0x100] sm:$0xff]  ;;  %v1657_v29 = vld [vmem:[%s2349_s12 + $0x50] sm:$0xf]  ;;  %v2007_v31 = vld [vmem:[%s2349_s12 + $0x54] sm:$0xf] }
  0x62   : > { %1172 = vmatpush.bf16.msra.mxu2 %v2046_v59  ;;  %v2017_v56 = vld [vmem:[%s2349_s12 + $0x9c] sm:$0xf0]  ;;  %v2013_v57 = vld [vmem:[%s2349_s12 + $0x84] sm:$0xf]  ;;  %v1681_v59 = vld [vmem:[%s2349_s12 + $0x88] sm:$0xf] }
  0x63   : > { %1201 = vmatpush.bf16.msra.mxu3 %v2054_v60  ;;  %v1675_v58 = vld [vmem:[%s2349_s12 + $0xa0] sm:$0xf0]  ;;  %v2018_v60 = vld [vmem:[%s2349_s12 + $0xa4] sm:$0xf0]  ;;  %v1674_v1 = vor.u32 %v2017_v56, %v1673_v53  ;;  %v1705_v5 = vld [vmem:[%s2349_s12 + $0xc0] sm:$0xf] }
  0x64   : > { %1115 = vmatpush.bf16.msra.mxu0 %v2029_v61  ;;  %v2014_v61 = vld [vmem:[%s2349_s12 + $0x8c] sm:$0xf]  ;;  %v1678_v2 = vor.u32 %v2013_v57, %v1675_v58  ;;  %v1682_v3 = vor.u32 %v2018_v60, %v1681_v59  ;;  %v2025_v6 = vld [vmem:[%s2349_s12 + $0xdc] sm:$0xf0]  ;;  %v2021_v7 = vld [vmem:[%s2349_s12 + $0xc4] sm:$0xf] }
  0x65   : > { %1144 = vmatpush.bf16.msra.mxu1 %v2037_v62  ;;  %v1683_v62 = vld [vmem:[%s2349_s12 + $0xa8] sm:$0xf0]  ;;  %v1707_v8 = vld [vmem:[%s2349_s12 + $0xe0] sm:$0xf0]  ;;  %v2011_v30 = vld [vmem:[%s2349_s12 + $0x6c] sm:$0xf0] }
  0x66   : > { %1173 = vmatpush.bf16.msra.mxu2 %v2045_v63  ;;  %v2085_v63 = vld [vmem:[%s2347_s11 + $0x1c0] sm:$0xff]  ;;  %v1686_v4 = vor.u32 %v2014_v61, %v1683_v62  ;;  %v1659_v32 = vld [vmem:[%s2349_s12 + $0x70] sm:$0xf0]  ;;  %v1665_v33 = vld [vmem:[%s2349_s12 + $0x58] sm:$0xf] }
  0x67   : > { %1202 = vmatpush.bf16.msra.mxu3 %v2053_v0  ;;  %1116 = vmatmul.bf16.vlgmr.msra.gmra.mxu0 %v1610_v11  ;;  %v2069_v0 = vld [vmem:[%s2347_s11 + $0x140] sm:$0xff]  ;;  %v2022_v11 = vld [vmem:[%s2349_s12 + $0xcc] sm:$0xf]  ;;  %v2012_v34 = vld [vmem:[%s2349_s12 + $0x74] sm:$0xf0] }
  0x68   : > { %1224 = vmatpush.bf16.msrb.mxu0 %v2068_v10  ;;  %1145 = vmatmul.bf16.vlgmr.msra.gmra.mxu1 %v1614_v12  ;;  %v2026_v10 = vld [vmem:[%s2349_s12 + $0xe4] sm:$0xf0]  ;;  %v1715_v12 = vld [vmem:[%s2349_s12 + $0xe8] sm:$0xf0]  ;;  %v1721_v53 = vld [vmem:[%s2349_s12 + $0xd0] sm:$0xf] }
  0x69   : > { %1174 = vmatmul.bf16.vlgmr.msra.gmra.mxu2 %v1618_v13  ;;  %1253 = vmatpush.bf16.msrb.mxu1 %v2076_v16  ;;  %v1706_v13 = vor.u32 %v2025_v6, %v1705_v5  ;;  %v1718_v16 = vor.u32 %v2022_v11, %v1715_v12  ;;  %v1723_v56 = vld [vmem:[%s2349_s12 + $0xf0] sm:$0xf0]  ;;  %v1729_v57 = vld [vmem:[%s2349_s12 + $0xd8] sm:$0xf]  ;;  %v2024_v59 = vld [vmem:[%s2349_s12 + $0xdc] sm:$0xf] }
  0x6a   : > { %1282 = vmatpush.bf16.msrb.mxu2 %v2084_v9  ;;  %1203 = vmatmul.bf16.vlgmr.msra.gmra.mxu3 %v1622_v14  ;;  %v1713_v9 = vld [vmem:[%s2349_s12 + $0xc8] sm:$0xf]  ;;  %v1710_v14 = vor.u32 %v2021_v7, %v1707_v8  ;;  %v2028_v58 = vld [vmem:[%s2349_s12 + $0xf4] sm:$0xf0]  ;;  %v1731_v60 = vld [vmem:[%s2349_s12 + $0xf8] sm:$0xf0] }
  0x6b   : > { %1311 = vmatpush.bf16.msrb.mxu3 %v2092_v15  ;;  %v1714_v15 = vor.u32 %v2026_v10, %v1713_v9 }
  0x6c   : > { %1225 = vmatpush.bf16.msrb.mxu0 %v2067_v18  ;;  %v2003_v18 = vld [vmem:[%s2349_s12 + $0x2c] sm:$0xf0] }
  0x6d   : > { %1254 = vmatpush.bf16.msrb.mxu1 %v2075_v20  ;;  %v1627_v20 = vld [vmem:[%s2349_s12 + $0x30] sm:$0xf0] }
  0x6e   : > { %1283 = vmatpush.bf16.msrb.mxu2 %v2083_v17  ;;  %v1625_v17 = vld [vmem:[%s2349_s12 + $0x10] sm:$0xf] }
  0x6f   : > { %1312 = vmatpush.bf16.msrb.mxu3 %v2091_v19  ;;  %v1999_v19 = vld [vmem:[%s2349_s12 + $0x14] sm:$0xf]  ;;  %v1626_v25 = vor.u32 %v2003_v18, %v1625_v17 }
  0x70   : > { %1226 = vmatpush.bf16.msrb.mxu0 %v2066_v22  ;;  %v2004_v22 = vld [vmem:[%s2349_s12 + $0x34] sm:$0xf0] }
  0x71   : > { %1255 = vmatpush.bf16.msrb.mxu1 %v2074_v24  ;;  %v1635_v24 = vld [vmem:[%s2349_s12 + $0x38] sm:$0xf0] }
  0x72   : > { %1284 = vmatpush.bf16.msrb.mxu2 %v2082_v21  ;;  %v1633_v21 = vld [vmem:[%s2349_s12 + $0x18] sm:$0xf] }
  0x73   : > { %1313 = vmatpush.bf16.msrb.mxu3 %v2090_v23  ;;  %v2000_v23 = vld [vmem:[%s2349_s12 + $0x1c] sm:$0xf] }
  0x74   : > { %1227 = vmatpush.bf16.msrb.mxu0 %v2065_v27  ;;  %v1634_v27 = vor.u32 %v2004_v22, %v1633_v21  ;;  %v1638_v28 = vor.u32 %v2000_v23, %v1635_v24 }
  0x75   : > { %1256 = vmatpush.bf16.msrb.mxu1 %v2073_v36  ;;  %v1667_v36 = vld [vmem:[%s2349_s12 + $0x78] sm:$0xf0] }
  0x76   : > { %1285 = vmatpush.bf16.msrb.mxu2 %v2081_v26  ;;  %v1630_v26 = vor.u32 %v1999_v19, %v1627_v20 }
  0x77   : > { %1314 = vmatpush.bf16.msrb.mxu3 %v2089_v35  ;;  %1121 = vmatmul.bf16.gmra.mxu0 %v1642_v39  ;;  %v2008_v35 = vld [vmem:[%s2349_s12 + $0x5c] sm:$0xf]  ;;  %v1666_v39 = vor.u32 %v2012_v34, %v1665_v33 }
  0x78   : > { %1228 = vmatpush.bf16.msrb.mxu0 %v2064_v38  ;;  %1150 = vmatmul.bf16.gmra.mxu1 %v1646_v40  ;;  %v1662_v38 = vor.u32 %v2007_v31, %v1659_v32  ;;  %v1670_v40 = vor.u32 %v2008_v35, %v1667_v36 }
  0x79   : > { %1179 = vmatmul.bf16.gmra.mxu2 %v1650_v41  ;;  %1257 = vmatpush.bf16.msrb.mxu1 %v2072_v44  ;;  %v1689_v41 = vld [vmem:[%s2349_s12 + $0x90] sm:$0xf]  ;;  %v1691_v44 = vld [vmem:[%s2349_s12 + $0xb0] sm:$0xf0] }
  0x7a   : > { %1286 = vmatpush.bf16.msrb.mxu2 %v2080_v37  ;;  %1208 = vmatmul.bf16.gmra.mxu3 %v1654_v42  ;;  %v1658_v37 = vor.u32 %v2011_v30, %v1657_v29  ;;  %v2019_v42 = vld [vmem:[%s2349_s12 + $0xac] sm:$0xf0] }
  0x7b   : > { %1315 = vmatpush.bf16.msrb.mxu3 %v2088_v43  ;;  %v2015_v43 = vld [vmem:[%s2349_s12 + $0x94] sm:$0xf] }
  0x7c   : > { %1229 = vmatpush.bf16.msrb.mxu0 %v2063_v46  ;;  %v2020_v46 = vld [vmem:[%s2349_s12 + $0xb4] sm:$0xf0] }
  0x7d   : > { %1258 = vmatpush.bf16.msrb.mxu1 %v2071_v48  ;;  %v1699_v48 = vld [vmem:[%s2349_s12 + $0xb8] sm:$0xf0] }
  0x7e   : > { %1287 = vmatpush.bf16.msrb.mxu2 %v2079_v45  ;;  %v1697_v45 = vld [vmem:[%s2349_s12 + $0x98] sm:$0xf] }
  0x7f   : > { %1316 = vmatpush.bf16.msrb.mxu3 %v2087_v47  ;;  %v2016_v47 = vld [vmem:[%s2349_s12 + $0x9c] sm:$0xf] }
  0x80   : > { %1230 = vmatpush.bf16.msrb.mxu0 %v2062_v50  ;;  %v1694_v50 = vor.u32 %v2015_v43, %v1691_v44 }
  0x81   : > { %1259 = vmatpush.bf16.msrb.mxu1 %v2070_v52  ;;  %v1702_v52 = vor.u32 %v2016_v47, %v1699_v48  ;;  %v396_v48 = vld [vmem:[#allocation2 + $0x30] sm:$0xff] }
  0x82   : > { %1288 = vmatpush.bf16.msrb.mxu2 %v2078_v49  ;;  %v1690_v49 = vor.u32 %v2019_v42, %v1689_v41 }
  0x83   : > { %1317 = vmatpush.bf16.msrb.mxu3 %v2086_v51  ;;  %v1698_v51 = vor.u32 %v2020_v46, %v1697_v45 }
  0x84   : > { %1231 = vmatpush.bf16.msrb.mxu0 %v2061_v55  ;;  %v2023_v55 = vld [vmem:[%s2349_s12 + $0xd4] sm:$0xf] }
  0x85   : > { %1260 = vmatpush.bf16.msrb.mxu1 %v2069_v0  ;;  %v1726_v62 = vor.u32 %v2023_v55, %v1723_v56  ;;  %v1734_v0 = vor.u32 %v2024_v59, %v1731_v60 }
  0x86   : > { %1289 = vmatpush.bf16.msrb.mxu2 %v2077_v54  ;;  %v2027_v54 = vld [vmem:[%s2349_s12 + $0xec] sm:$0xf0] }
  0x87   : > { %1318 = vmatpush.bf16.msrb.mxu3 %v2085_v63  ;;  %1126 = vmatmul.bf16.gmra.mxu0 %v1674_v1  ;;  %v1722_v61 = vor.u32 %v2027_v54, %v1721_v53  ;;  %v1730_v63 = vor.u32 %v2028_v58, %v1729_v57 }
  0x88   : > { %1155 = vmatmul.bf16.gmra.mxu1 %v1678_v2 }
  0x89   : > { %1184 = vmatmul.bf16.gmra.mxu2 %v1682_v3 }
  0x8a   : > { %1213 = vmatmul.bf16.gmra.mxu3 %v1686_v4 }
  0x97   : > { %1131 = vmatmul.bf16.gmra.mxu0 %v1706_v13 }
  0x98   : > { %1160 = vmatmul.bf16.gmra.mxu1 %v1710_v14 }
  0x99   : > { %1189 = vmatmul.bf16.gmra.mxu2 %v1714_v15 }
  0x9a   : > { %1218 = vmatmul.bf16.gmra.mxu3 %v1718_v16 }
  0xa7   : > { %1232 = vmatmul.bf16.vlgmr.msrb.gmra.mxu0 %v1626_v25 }
  0xa8   : > { %1261 = vmatmul.bf16.vlgmr.msrb.gmra.mxu1 %v1630_v26 }
  0xa9   : > { %1290 = vmatmul.bf16.vlgmr.msrb.gmra.mxu2 %v1634_v27 }
  0xaa   : > { %1319 = vmatmul.bf16.vlgmr.msrb.gmra.mxu3 %v1638_v28 }
  0xb7   : > { %1237 = vmatmul.bf16.gmra.mxu0 %v1658_v37 }
  0xb8   : > { %1266 = vmatmul.bf16.gmra.mxu1 %v1662_v38 }
  0xb9   : > { %1295 = vmatmul.bf16.gmra.mxu2 %v1666_v39 }
  0xba   : > { %1324 = vmatmul.bf16.gmra.mxu3 %v1670_v40 }
  0xc7   : > { %1242 = vmatmul.bf16.gmra.mxu0 %v1690_v49 }
  0xc8   : > { %1271 = vmatmul.bf16.gmra.mxu1 %v1694_v50 }
  0xc9   : > { %1300 = vmatmul.bf16.gmra.mxu2 %v1698_v51 }
  0xca   : > { %1329 = vmatmul.bf16.gmra.mxu3 %v1702_v52 }
  0xd7   : > { %1247 = vmatmul.bf16.gmra.mxu0 %v1722_v61  ;;  %v397_v61 = vld [vmem:[#allocation2] sm:$0xff] }
  0xd8   : > { %1276 = vmatmul.bf16.gmra.mxu1 %v1726_v62 }
  0xd9   : > { %1305 = vmatmul.bf16.gmra.mxu2 %v1730_v63 }
  0xda   : > { %1334 = vmatmul.bf16.gmra.mxu3 %v1734_v0 }
  0xe4   : > { %v1117_v1 = vpop.f32.mrf.mxu0 }
  0xe5   : > { %v1146_v2 = vpop.f32.mrf.mxu1 }
  0xe6   : > { %v1147_v31 = vadd.f32 %v1146_v2, %v1117_v1 }
  0xec   : > { %v1175_v3 = vpop.f32.mrf.mxu2  ;;  %v1119_v5 = vpop.f32.mrf.mxu0 }
  0xed   : > { %v1204_v4 = vpop.f32.mrf.mxu3  ;;  %v1148_v6 = vpop.f32.mrf.mxu1  ;;  %v1176_v32 = vadd.f32 %v1175_v3, %v1147_v31 }
  0xee   : > { %v1149_v38 = vadd.f32 %v1148_v6, %v1119_v5 }
  0xef   : > { %v1205_v35 = vadd.f32 %v1204_v4, %v1176_v32 }
  0xf4   : > { %v1177_v7 = vpop.f32.mrf.mxu2  ;;  %v1122_v9 = vpop.f32.mrf.mxu0 }
  0xf5   : > { %v1206_v8 = vpop.f32.mrf.mxu3  ;;  %v1151_v10 = vpop.f32.mrf.mxu1  ;;  %v1178_v40 = vadd.f32 %v1177_v7, %v1149_v38 }
  0xf6   : > { %v1152_v49 = vadd.f32 %v1151_v10, %v1122_v9  ;;  %v398_v10 = vld [vmem:[#allocation2 + $0x18] sm:$0xff] }
  0xf7   : > { %v1207_v44 = vadd.f32 %v1206_v8, %v1178_v40  ;;  %v399_v40 = vld [vmem:[#allocation2 + $0x10] sm:$0xff] }
  0xfc   : > { %v1180_v11 = vpop.f32.mrf.mxu2  ;;  %v1124_v13 = vpop.f32.mrf.mxu0 }
  0xfd   : > { %v1209_v12 = vpop.f32.mrf.mxu3  ;;  %v1153_v14 = vpop.f32.mrf.mxu1  ;;  %v1181_v52 = vadd.f32 %v1180_v11, %v1152_v49 }
  0xfe   : > { %v1154_v62 = vadd.f32 %v1153_v14, %v1124_v13 }
  0xff   : > { %v1210_v57 = vadd.f32 %v1209_v12, %v1181_v52 }
 0x104   : > { %v1182_v15 = vpop.f32.mrf.mxu2  ;;  %v1127_v17 = vpop.f32.mrf.mxu0 }
 0x105   : > { %v1211_v16 = vpop.f32.mrf.mxu3  ;;  %v1156_v18 = vpop.f32.mrf.mxu1  ;;  %v1183_v1 = vadd.f32 %v1182_v15, %v1154_v62 }
 0x106   : > { %v1157_v11 = vadd.f32 %v1156_v18, %v1127_v17 }
 0x107   : > { %v1212_v6 = vadd.f32 %v1211_v16, %v1183_v1  ;;  %v402_v1 = vld [vmem:[#allocation2 + $0x28] sm:$0xff] }
 0x10c   : > { %v1185_v19 = vpop.f32.mrf.mxu2  ;;  %v2482_v21 = vpop.f32.mrf.mxu0 }
 0x10d   : > { %v2480_v20 = vpop.f32.mrf.mxu3  ;;  %v2484_v22 = vpop.f32.mrf.mxu1  ;;  %v1186_v32 = vadd.f32 %v1185_v19, %v1157_v11 }
 0x10e   : > { %v1159_v16 = vadd.f32 %v2484_v22, %v2482_v21 }
 0x10f   : > { %v1215_v15 = vadd.f32 %v2480_v20, %v1186_v32 }
 0x114   : > { %v2486_v23 = vpop.f32.mrf.mxu2  ;;  %v2490_v25 = vpop.f32.mrf.mxu0 }
 0x115   : > { %v2488_v24 = vpop.f32.mrf.mxu3  ;;  %v2492_v26 = vpop.f32.mrf.mxu1  ;;  %v1188_v17 = vadd.f32 %v2486_v23, %v1159_v16 }
 0x116   : > { %v1162_v49 = vadd.f32 %v2492_v26, %v2490_v25 }
 0x11c   : > { %v2494_v27 = vpop.f32.mrf.mxu2  ;;  %v2498_v29 = vpop.f32.mrf.mxu0 }
 0x11d   : > { %v2496_v28 = vpop.f32.mrf.mxu3  ;;  %v2500_v30 = vpop.f32.mrf.mxu1  ;;  %v1191_v22 = vadd.f32 %v2494_v27, %v1162_v49 }
 0x124   : > { %v2502_v33 = vpop.f32.mrf.mxu2  ;;  %v1233_v36 = vpop.f32.mrf.mxu0 }
 0x125   : > { %v2504_v34 = vpop.f32.mrf.mxu3  ;;  %v1262_v37 = vpop.f32.mrf.mxu1  ;;  %v1234_v39 = vadd.f32 %v1233_v36, %v1205_v35 }
 0x127   : > { %v1263_v41 = vadd.f32 %v1262_v37, %v1234_v39 }
 0x12c   : > { %v1291_v42 = vpop.f32.mrf.mxu2  ;;  %v1235_v46 = vpop.f32.mrf.mxu0 }
 0x12d   : > { %v1320_v43 = vpop.f32.mrf.mxu3  ;;  %v1292_v45 = vadd.f32 %v1291_v42, %v1263_v41  ;;  %v1264_v47 = vpop.f32.mrf.mxu1  ;;  %v1236_v51 = vadd.f32 %v1235_v46, %v1207_v44 }
 0x12f   : > { %v1321_v50 = vadd.f32 %v1320_v43, %v1292_v45  ;;  %v1265_v54 = vadd.f32 %v1264_v47, %v1236_v51  ;;  %v1217_v45 = vadd.f32 %v2488_v24, %v1188_v17  ;;  %v400_v47 = vld [vmem:[#allocation2 + $0x8] sm:$0xff] }
 0x131   : > { %v1340_v53 = vadd.f32 %v1321_v50, %v396_v48 }
 0x133   : > { %1348 = vst [vmem:[#allocation2 + $0x30] sm:$0xff] %v1340_v53 }
 0x134   : > { %v1293_v55 = vpop.f32.mrf.mxu2  ;;  %v1238_v59 = vpop.f32.mrf.mxu0 }
 0x135   : > { %v1322_v56 = vpop.f32.mrf.mxu3  ;;  %v1294_v58 = vadd.f32 %v1293_v55, %v1265_v54  ;;  %v1267_v60 = vpop.f32.mrf.mxu1  ;;  %v1239_v0 = vadd.f32 %v1238_v59, %v1210_v57  ;;  %v1220_v54 = vadd.f32 %v2496_v28, %v1191_v22  ;;  %v1164_v57 = vadd.f32 %v2500_v30, %v2498_v29 }
 0x137   : > { %v1323_v63 = vadd.f32 %v1322_v56, %v1294_v58  ;;  %v1268_v3 = vadd.f32 %v1267_v60, %v1239_v0  ;;  %v401_v56 = vld [vmem:[#allocation2 + $0x20] sm:$0xff]  ;;  %v1193_v26 = vadd.f32 %v2502_v33, %v1164_v57 }
 0x139   : > { %v1341_v2 = vadd.f32 %v1323_v63, %v397_v61  ;;  %v1222_v63 = vadd.f32 %v2504_v34, %v1193_v26 }
 0x13b   : > { %1349 = vst [vmem:[#allocation2] sm:$0xff] %v1341_v2 }
 0x13c   : > { %v1296_v4 = vpop.f32.mrf.mxu2  ;;  %v1240_v8 = vpop.f32.mrf.mxu0 }
 0x13d   : > { %v1325_v5 = vpop.f32.mrf.mxu3  ;;  %v1297_v7 = vadd.f32 %v1296_v4, %v1268_v3  ;;  %v1269_v9 = vpop.f32.mrf.mxu1  ;;  %v1241_v31 = vadd.f32 %v1240_v8, %v1212_v6 }
 0x13f   : > { %v1326_v12 = vadd.f32 %v1325_v5, %v1297_v7  ;;  %v1270_v13 = vadd.f32 %v1269_v9, %v1241_v31  ;;  %v403_v7 = vld [vmem:[#allocation2 + $0x38] sm:$0xff] }
 0x141   : > { %v1342_v35 = vadd.f32 %v1326_v12, %v398_v10 }
 0x143   : > { %1350 = vst [vmem:[#allocation2 + $0x18] sm:$0xff] %v1342_v35 }
 0x144   : > { %v1298_v14 = vpop.f32.mrf.mxu2  ;;  %v1243_v38 = vpop.f32.mrf.mxu0 }
 0x145   : > { %v1327_v36 = vpop.f32.mrf.mxu3  ;;  %v1299_v37 = vadd.f32 %v1298_v14, %v1270_v13  ;;  %v1272_v39 = vpop.f32.mrf.mxu1  ;;  %v1244_v42 = vadd.f32 %v1243_v38, %v1215_v15 }
 0x147   : > { %v1328_v41 = vadd.f32 %v1327_v36, %v1299_v37  ;;  %v1273_v19 = vadd.f32 %v1272_v39, %v1244_v42 }
 0x149   : > { %v1343_v18 = vadd.f32 %v1328_v41, %v399_v40 }
 0x14b   : > { %1351 = vst [vmem:[#allocation2 + $0x10] sm:$0xff] %v1343_v18 }
 0x14c   : > { %v1301_v43 = vpop.f32.mrf.mxu2  ;;  %v1245_v20 = vpop.f32.mrf.mxu0 }
 0x14d   : > { %v1330_v44 = vpop.f32.mrf.mxu3  ;;  %v1302_v46 = vadd.f32 %v1301_v43, %v1273_v19  ;;  %v1274_v48 = vpop.f32.mrf.mxu1  ;;  %v1246_v21 = vadd.f32 %v1245_v20, %v1217_v45 }
 0x14f   : > { %v1331_v50 = vadd.f32 %v1330_v44, %v1302_v46  ;;  %v1275_v23 = vadd.f32 %v1274_v48, %v1246_v21 }
 0x151   : > { %v1344_v51 = vadd.f32 %v1331_v50, %v400_v47 }
 0x153   : > { %1352 = vst [vmem:[#allocation2 + $0x8] sm:$0xff] %v1344_v51 }
 0x154   : > { %v1303_v52 = vpop.f32.mrf.mxu2  ;;  %v1248_v24 = vpop.f32.mrf.mxu0 }
 0x155   : > { %v1332_v53 = vpop.f32.mrf.mxu3  ;;  %v1304_v55 = vadd.f32 %v1303_v52, %v1275_v23  ;;  %v1249_v59 = vadd.f32 %v1248_v24, %v1220_v54  ;;  %v1277_v25 = vpop.f32.mrf.mxu1 }
 0x157   : > { %v1333_v58 = vadd.f32 %v1332_v53, %v1304_v55  ;;  %v1278_v27 = vadd.f32 %v1277_v25, %v1249_v59 }
 0x159   : > { %v1345_v60 = vadd.f32 %v1333_v58, %v401_v56 }
 0x15b   : > { %1353 = vst [vmem:[#allocation2 + $0x20] sm:$0xff] %v1345_v60 }
 0x15c   : > { %v1306_v61 = vpop.f32.mrf.mxu2  ;;  %v1250_v28 = vpop.f32.mrf.mxu0 }
 0x15d   : > { %v1335_v62 = vpop.f32.mrf.mxu3  ;;  %v1307_v0 = vadd.f32 %v1306_v61, %v1278_v27  ;;  %v1251_v3 = vadd.f32 %v1250_v28, %v1222_v63  ;;  %v1279_v5 = vpop.f32.mrf.mxu1 }
 0x15f   : > { %v1336_v2 = vadd.f32 %v1335_v62, %v1307_v0  ;;  %v1280_v29 = vadd.f32 %v1279_v5, %v1251_v3 }
 0x161   : > { %v1346_v4 = vadd.f32 %v1336_v2, %v402_v1 }
 0x163   : > { %1354 = vst [vmem:[#allocation2 + $0x28] sm:$0xff] %v1346_v4 }
 0x164   : > { %v1308_v30 = vpop.f32.mrf.mxu2 }
 0x165   : > { %v1309_v6 = vadd.f32 %v1308_v30, %v1280_v29  ;;  %v1337_v33 = vpop.f32.mrf.mxu3 }
 0x167   : > { %v1338_v8 = vadd.f32 %v1337_v33, %v1309_v6  ;;  %1359 = sbr.rel (%p1991_p11) target bundleno = 502 (0x1f6), region = 67 }
 0x169   : > { %v1347_v9 = vadd.f32 %v1338_v8, %v403_v7 }
 0x16b   : > { %1355 = vst [vmem:[#allocation2 + $0x38] sm:$0xff] %v1347_v9 }
 0x16c   : > { %v1398_v34 = vld [vmem:[%s2577_s3 + $0x10] sm:$0xff]  ;;  %v1396_v10 = vld [vmem:[%s2577_s3] sm:$0xff]  ;;  %v2203_v11 = vmov 0   ;;  %v1399_v31 = vld [vmem:[%s2577_s3 + $0x18] sm:$0xff] }
 0x16d   : > { %2159 = vset.pattern.permute.xlu1 %v2203_v11  ;;  %2158 = vset.pattern.permute.xlu0 %v2203_v11  ;;  %v1400_v12 = vld [vmem:[%s2577_s3 + $0x20] sm:$0xff]  ;;  %v1397_v32 = vld [vmem:[%s2577_s3 + $0x8] sm:$0xff]  ;;  %v1403_v13 = vld [vmem:[%s2577_s3 + $0x38] sm:$0xff] }
 0x16e   : > { %1416 = vperm.xlu1 %2159, %v1398_v34   ;;  %1406 = vperm.xlu0 %2158, %v1396_v10   ;;  %v1401_v35 = vld [vmem:[%s2577_s3 + $0x28] sm:$0xff]  ;;  %v1402_v14 = vld [vmem:[%s2577_s3 + $0x30] sm:$0xff]  ;;  %v2161_v15 = vld [vmem:[%s2576_s2] ss:$0 sm:$0xff] }
 0x16f   : > { %2160 = vset.pattern.permute.xlu2 %v2203_v11  ;;  %v1364_v36 = vld [vmem:[#allocation2 + $0x8] sm:$0xff]  ;;  %v1365_v37 = vld [vmem:[#allocation2 + $0x20] sm:$0xff]  ;;  %v1362_v45 = vld [vmem:[#allocation2 + $0x18] sm:$0xff] }
 0x170   : > { %1426 = vperm.xlu2 %2160, %v1400_v12   ;;  %v1376_v38 = vadd.f32 %v2161_v15, %v1364_v36  ;;  %v1377_v39 = vadd.f32 %v2161_v15, %v1365_v37  ;;  %v1360_v46 = vld [vmem:[#allocation2 + $0x30] sm:$0xff]  ;;  %v1361_v47 = vld [vmem:[#allocation2] sm:$0xff]  ;;  %v1374_v48 = vadd.f32 %v2161_v15, %v1362_v45  ;;  %v1366_v24 = vld [vmem:[#allocation2 + $0x28] sm:$0xff] }
 0x171   : > { %v1363_v20 = vld [vmem:[#allocation2 + $0x10] sm:$0xff]  ;;  %v1372_v49 = vadd.f32 %v2161_v15, %v1360_v46  ;;  %v1373_v21 = vadd.f32 %v2161_v15, %v1361_v47  ;;  %v1378_v57 = vadd.f32 %v2161_v15, %v1366_v24 }
 0x172   : > { %v1384_v40 = vmax.f32 %v1376_v38, 0.0  ;;  %v1385_v41 = vmax.f32 %v1377_v39, 0.0  ;;  %v1375_v50 = vadd.f32 %v2161_v15, %v1363_v20  ;;  %v1382_v23 = vmax.f32 %v1374_v48, 0.0  ;;  %v1367_v55 = vld [vmem:[#allocation2 + $0x38] sm:$0xff] }
 0x173   : > { %v1380_v52 = vmax.f32 %v1372_v49, 0.0  ;;  %v1381_v54 = vmax.f32 %v1373_v21, 0.0  ;;  %v1379_v56 = vadd.f32 %v2161_v15, %v1367_v55  ;;  %v1386_v62 = vmax.f32 %v1378_v57, 0.0 }
 0x174   : > { %v1392_v42 = vmin.f32 %v1384_v40, 20.0  ;;  %v1393_v17 = vmin.f32 %v1385_v41, 20.0  ;;  %v1383_v53 = vmax.f32 %v1375_v50, 0.0  ;;  %v1390_v58 = vmin.f32 %v1382_v23, 20.0 }
 0x175   : > { %v1388_v59 = vmin.f32 %v1380_v52, 20.0  ;;  %v1389_v26 = vmin.f32 %v1381_v54, 20.0  ;;  %v1387_v61 = vmax.f32 %v1379_v56, 0.0  ;;  %v1394_v5 = vmin.f32 %v1386_v62, 20.0 }
 0x176   : > { %1421 = vperm.xlu1 %2159, %v1399_v31   ;;  %1411 = vperm.xlu0 %2158, %v1397_v32   ;;  %v1391_v25 = vmin.f32 %v1383_v53, 20.0 }
 0x177   : > { %v1395_v4 = vmin.f32 %v1387_v61, 20.0 }
 0x178   : > { %1431 = vperm.xlu2 %2160, %v1401_v35  }
 0x17e   : > { %1441 = vperm.xlu1 %2159, %v1403_v13   ;;  %1436 = vperm.xlu0 %2158, %v1402_v14  }
 0x1ca   : > { %v1427_v16 = vpop.permute.xlu2 %1426 }
 0x1cb   : > { %v1448_v18 = vmul.f32 %v1427_v16, %v1392_v42 }
 0x1d2   : > { %v1432_v19 = vpop.permute.xlu2 %1431 }
 0x1d3   : > { %v1449_v43 = vmul.f32 %v1432_v19, %v1393_v17 }
 0x1d5   : > { %v2106_v44 = vpack.c.bf16 %v1449_v43, %v1448_v18 }
 0x1d7   : > { %2114 = vst [vmem:[%s2578_s4 + $0x10] sm:$0xff] %v2106_v44  }
 0x1e0   : > { %v1417_v22 = vpop.permute.xlu1 %1416  ;;  %v1407_v51 = vpop.permute.xlu0 %1406 }
 0x1e1   : > { %v1446_v63 = vmul.f32 %v1417_v22, %v1390_v58  ;;  %v1444_v0 = vmul.f32 %v1407_v51, %v1388_v59 }
 0x1e8   : > { %v1422_v60 = vpop.permute.xlu1 %1421  ;;  %v1412_v27 = vpop.permute.xlu0 %1411 }
 0x1e9   : > { %v1447_v28 = vmul.f32 %v1422_v60, %v1391_v25  ;;  %v1445_v1 = vmul.f32 %v1412_v27, %v1389_v26 }
 0x1eb   : > { %v2101_v2 = vpack.c.bf16 %v1447_v28, %v1446_v63  ;;  %v2096_v3 = vpack.c.bf16 %v1445_v1, %v1444_v0 }
 0x1ed   : > { %2113 = vst [vmem:[%s2578_s4 + $0x8] sm:$0xff] %v2101_v2  }
 0x1ee   : > { %2097 = vst [vmem:[%s2578_s4] sm:$0xff] %v2096_v3  }
 0x1f0   : > { %v1442_v29 = vpop.permute.xlu1 %1441  ;;  %v1437_v30 = vpop.permute.xlu0 %1436 }
 0x1f1   : > { %v1451_v6 = vmul.f32 %v1442_v29, %v1395_v4  ;;  %v1450_v7 = vmul.f32 %v1437_v30, %v1394_v5 }
 0x1f3   : > { %v2111_v33 = vpack.c.bf16 %v1451_v6, %v1450_v7 }
 0x1f5   : > { %2115 = vst [vmem:[%s2578_s4 + $0x18] sm:$0xff] %v2111_v33  }
 0x1f6 PF: > { %s14_s19 = sadd.s32 1, %s2200_s19   ;;  %s2579_s15 = smov %s2188_s16 }
 0x1f7   : > { %p11_p12 = scmp.ge.s32.totalorder %s14_s19, 10   ;;  %s2580_s16 = smov %s2264_s23 }
 0x1f8   : > { %s2581_s17 = smov %s2196_s18  ;;  %s2582_s18 = smov %s2584_s20 }
 0x1f9   :  { %13 = sbr.rel (!%p11_p12) target bundleno = 3 (0x3), region = 111 }

// kernel: ds2_forward.10
= control target key start
LH: loop header
LB: loop body
LE: loop exit
PB: predicated region body
PF: predicated region fallthrough
CT: control target
= control target key end

     0   :  { %s1447_s27 = smov 0   ;;  %s1449_s28 = smov 0   ;;  %s1826_s0 = inlined_call_operand.vmem [shape: s32[8,1], index: 0, kind: input, shape index: {}]   ;;  %s1827_s1 = inlined_call_operand.vmem [shape: bf16[8,8,768], index: 1, kind: input, shape index: {}, may-alias: {1,2}]   ;;  %s1828_s2 = inlined_call_operand.vmem [shape: bf16[8,8,768], index: 2, kind: input, shape index: {}, may-alias: {1,2}]   ;;  %s1829_s3 = inlined_call_operand.vmem [shape: bf16[128,384], index: 3, kind: input, shape index: {}]   ;;  %s1830_s4 = inlined_call_operand.vmem [shape: bf16[128,384], index: 4, kind: input, shape index: {}]   ;;  %s1831_s5 = inlined_call_operand.vmem [shape: f32[1,384], index: 5, kind: input, shape index: {}]   ;;  %s1832_s6 = inlined_call_operand.vmem [shape: f32[1,384], index: 6, kind: input, shape index: {}]   ;;  %s1833_s7 = inlined_call_operand.vmem [shape: bf16[8,8,128], index: 7, kind: output, shape index: {0}]   ;;  %s1834_s8 = inlined_call_operand.vmem [shape: bf16[8,8,128], index: 8, kind: output, shape index: {1}]  }
   0x1   :  { %s1451_s29 = smov 0  }
   0x2 LB: > { %s28_s30 = sadd.s32 1, %s1394_s28  ;;  %p1086_p0 = scmp.ge.s32.totalorder %s1398_s29, 1  ;;  %s1398_s29 = sphi %s1451_s29, %s19_s29   ;;  %s1394_s28 = sphi %s1449_s28, %s1836_s28   ;;  %s1390_s27 = sphi %s1447_s27, %s1835_s27  }
   0x3   : > { %p29_p1 = scmp.ge.s32.totalorder %s28_s30, 8  ;;  %p319_p2 = scmp.lt.s32.totalorder %s1398_s29, 9 }
   0x5   : > { %s1838_s30 = smov (%p29_p1, %s28_s30), 0  ;;  %p320_p3 = pnand %p1086_p0, %p319_p2 }
   0x6   : > { %p386_p4 = scmp.lt.s32.totalorder (!%p320_p3), %s1390_s27, 7  ;;  %s1469_s9 = ssub.s32 (!%p320_p3), 7, %s1390_s27 }
   0x7   : > { %323 = sbr.rel (%p320_p3) target bundleno = 245 (0xf5), region = 48  ;;  %p396_p5 = scmp.lt.s32.totalorder (!%p320_p3), %s1469_s9, 7 }
   0x8   : > { %p1091_p6 = scmp.ne.s32.totalorder (!%p320_p3), %s1390_s27, 0 }
   0xc   : > { %s387_s10 = scalar_select %p386_p4, %s1390_s27, 7 }
   0xd   : > { %s397_s11 = scalar_select %p396_p5, %s1469_s9, 7 }
   0xe   : > { %s1336_s12 = smul.u32 24, %s387_s10  ;;  %s1089_s13 = sshll.u32 %s387_s10, 2 }
   0xf   : > { %s1088_s14 = smul.u32 24, %s397_s11  ;;  %s1477_s17 = scalar_lea.vmem %s1833_s7, %s1089_s13 }
  0x10   : > { %s1482_s20 = scalar_lea.vmem %s1827_s1, %s1336_s12  ;;  %s1090_s21 = sshll.u32 %s397_s11, 2 }
  0x11   : > { %s1487_s24 = scalar_lea.vmem %s1828_s2, %s1088_s14  ;;  %s1492_s10 = scalar_lea.vmem %s1834_s8, %s1090_s21 }
  0x12   : > { %426 = sbr.rel (%p1091_p6) target bundleno = 26 (0x1a), region = 52 }
  0x17   : > { %v1400_v0 = vmov 0.0  }
  0x18   : > { %427 = vst [vmem:[#allocation2] sm:$0xff] %v1400_v0 }
  0x19   : > { %428 = vst [vmem:[#allocation3] sm:$0xff] %v1400_v0 }
  0x1a PF: > { %v1178_v1 = vld [vmem:[%s1829_s3 + $0xa8] sm:$0xf]  ;;  %v1310_v2 = vld [vmem:[%s1829_s3 + $0xb0] sm:$0xf0]  ;;  %v1309_v3 = vld [vmem:[%s1829_s3 + $0xac] sm:$0xf] }
  0x1b   : > { %v1179_v4 = vor.u32 %v1310_v2, %v1178_v1  ;;  %v1180_v5 = vld [vmem:[%s1829_s3 + $0xb4] sm:$0xf0]  ;;  %v1166_v6 = vld [vmem:[%s1829_s3 + $0x90] sm:$0xf]  ;;  %v1307_v7 = vld [vmem:[%s1829_s3 + $0x98] sm:$0xf0] }
  0x1c   : > { %v1183_v8 = vor.u32 %v1309_v3, %v1180_v5  ;;  %v1306_v9 = vld [vmem:[%s1829_s3 + $0x94] sm:$0xf]  ;;  %v1168_v10 = vld [vmem:[%s1829_s3 + $0x9c] sm:$0xf0]  ;;  %v1274_v11 = vld [vmem:[%s1830_s4 + $0xa8] sm:$0xf]  ;;  %v1167_v12 = vor.u32 %v1307_v7, %v1166_v6 }
  0x1d   : > { %600 = vmatpush.bf16.msra.mxu0 %v1179_v4  ;;  %v1334_v13 = vld [vmem:[%s1830_s4 + $0xb0] sm:$0xf0]  ;;  %v1171_v14 = vor.u32 %v1306_v9, %v1168_v10  ;;  %v1154_v16 = vld [vmem:[%s1829_s3 + $0x78] sm:$0xf]  ;;  %v1304_v17 = vld [vmem:[%s1829_s3 + $0x80] sm:$0xf0] }
  0x1e   : > { %613 = vmatpush.bf16.msra.mxu1 %v1183_v8  ;;  %v1275_v15 = vor.u32 %v1334_v13, %v1274_v11  ;;  %v1262_v18 = vld [vmem:[%s1830_s4 + $0x90] sm:$0xf]  ;;  %v1303_v19 = vld [vmem:[%s1829_s3 + $0x7c] sm:$0xf]  ;;  %v1156_v20 = vld [vmem:[%s1829_s3 + $0x84] sm:$0xf0]  ;;  %v1155_v23 = vor.u32 %v1304_v17, %v1154_v16 }
  0x1f   : > { %v1331_v21 = vld [vmem:[%s1830_s4 + $0x98] sm:$0xf0]  ;;  %v1250_v24 = vld [vmem:[%s1830_s4 + $0x78] sm:$0xf]  ;;  %v1328_v25 = vld [vmem:[%s1830_s4 + $0x80] sm:$0xf0]  ;;  %v1159_v26 = vor.u32 %v1303_v19, %v1156_v20 }
  0x20   : > { %844 = vmatpush.bf16.msra.mxu3 %v1275_v15  ;;  %v1263_v22 = vor.u32 %v1331_v21, %v1262_v18  ;;  %v1142_v27 = vld [vmem:[%s1829_s3 + $0x60] sm:$0xf]  ;;  %v1301_v28 = vld [vmem:[%s1829_s3 + $0x68] sm:$0xf0]  ;;  %v1186_v29 = vld [vmem:[%s1829_s3 + $0xb0] sm:$0xf]  ;;  %v1251_v33 = vor.u32 %v1328_v25, %v1250_v24 }
  0x21   : > { %601 = vmatpush.bf16.msra.mxu0 %v1167_v12  ;;  %v1300_v30 = vld [vmem:[%s1829_s3 + $0x64] sm:$0xf]  ;;  %v1144_v31 = vld [vmem:[%s1829_s3 + $0x6c] sm:$0xf0]  ;;  %v1311_v32 = vld [vmem:[%s1829_s3 + $0xb8] sm:$0xf0]  ;;  %v1143_v36 = vor.u32 %v1301_v28, %v1142_v27 }
  0x22   : > { %614 = vmatpush.bf16.msra.mxu1 %v1171_v14  ;;  %v1187_v34 = vor.u32 %v1311_v32, %v1186_v29  ;;  %v1238_v35 = vld [vmem:[%s1830_s4 + $0x60] sm:$0xf]  ;;  %v1325_v37 = vld [vmem:[%s1830_s4 + $0x68] sm:$0xf0]  ;;  %v1174_v38 = vld [vmem:[%s1829_s3 + $0x98] sm:$0xf]  ;;  %v1147_v40 = vor.u32 %v1300_v30, %v1144_v31 }
  0x23   : > { %v1308_v39 = vld [vmem:[%s1829_s3 + $0xa0] sm:$0xf0]  ;;  %v1130_v41 = vld [vmem:[%s1829_s3 + $0x48] sm:$0xf]  ;;  %v1298_v42 = vld [vmem:[%s1829_s3 + $0x50] sm:$0xf0]  ;;  %v1239_v46 = vor.u32 %v1325_v37, %v1238_v35 }
  0x24   : > { %845 = vmatpush.bf16.msra.mxu3 %v1263_v22  ;;  %626 = vmatpush.bf16.msra.mxu2 %v1187_v34  ;;  %v1175_v43 = vor.u32 %v1308_v39, %v1174_v38  ;;  %v1297_v44 = vld [vmem:[%s1829_s3 + $0x4c] sm:$0xf]  ;;  %v1132_v45 = vld [vmem:[%s1829_s3 + $0x54] sm:$0xf0]  ;;  %v1162_v47 = vld [vmem:[%s1829_s3 + $0x80] sm:$0xf]  ;;  %v1131_v49 = vor.u32 %v1298_v42, %v1130_v41 }
  0x25   : > { %602 = vmatpush.bf16.msra.mxu0 %v1155_v23  ;;  %v1305_v48 = vld [vmem:[%s1829_s3 + $0x88] sm:$0xf0]  ;;  %v1226_v50 = vld [vmem:[%s1830_s4 + $0x48] sm:$0xf]  ;;  %v1322_v51 = vld [vmem:[%s1830_s4 + $0x50] sm:$0xf0]  ;;  %v1135_v52 = vor.u32 %v1297_v44, %v1132_v45  ;;  %v661_v44 = vstv %s1390_s27 }
  0x26   : > { %615 = vmatpush.bf16.msra.mxu1 %v1159_v26  ;;  %v1118_v53 = vld [vmem:[%s1829_s3 + $0x30] sm:$0xf]  ;;  %v1295_v54 = vld [vmem:[%s1829_s3 + $0x38] sm:$0xf0]  ;;  %v1294_v55 = vld [vmem:[%s1829_s3 + $0x34] sm:$0xf]  ;;  %v1163_v56 = vor.u32 %v1305_v48, %v1162_v47  ;;  %v1227_v60 = vor.u32 %v1322_v51, %v1226_v50 }
  0x27   : > { %v1120_v57 = vld [vmem:[%s1829_s3 + $0x3c] sm:$0xf0]  ;;  %v1150_v58 = vld [vmem:[%s1829_s3 + $0x68] sm:$0xf]  ;;  %v1302_v59 = vld [vmem:[%s1829_s3 + $0x70] sm:$0xf0]  ;;  %v1119_v61 = vor.u32 %v1295_v54, %v1118_v53 }
  0x28   : > { %846 = vmatpush.bf16.msra.mxu3 %v1251_v33  ;;  %627 = vmatpush.bf16.msra.mxu2 %v1175_v43  ;;  %v1214_v62 = vld [vmem:[%s1830_s4 + $0x30] sm:$0xf]  ;;  %v1319_v63 = vld [vmem:[%s1830_s4 + $0x38] sm:$0xf0]  ;;  %v1123_v0 = vor.u32 %v1294_v55, %v1120_v57  ;;  %v1106_v1 = vld [vmem:[%s1829_s3 + $0x18] sm:$0xf]  ;;  %v1151_v4 = vor.u32 %v1302_v59, %v1150_v58 }
  0x29   : > { %603 = vmatpush.bf16.msra.mxu0 %v1143_v36  ;;  %v1292_v2 = vld [vmem:[%s1829_s3 + $0x20] sm:$0xf0]  ;;  %v1291_v3 = vld [vmem:[%s1829_s3 + $0x1c] sm:$0xf]  ;;  %v1108_v5 = vld [vmem:[%s1829_s3 + $0x24] sm:$0xf0]  ;;  %v1215_v8 = vor.u32 %v1319_v63, %v1214_v62 }
  0x2a   : > { %616 = vmatpush.bf16.msra.mxu1 %v1147_v40  ;;  %v1138_v6 = vld [vmem:[%s1829_s3 + $0x50] sm:$0xf]  ;;  %v1299_v7 = vld [vmem:[%s1829_s3 + $0x58] sm:$0xf0]  ;;  %v1107_v9 = vor.u32 %v1292_v2, %v1106_v1  ;;  %v1094_v10 = vld [vmem:[%s1829_s3] sm:$0xf]  ;;  %v1111_v13 = vor.u32 %v1291_v3, %v1108_v5 }
  0x2b   : > { %v1202_v11 = vld [vmem:[%s1830_s4 + $0x18] sm:$0xf]  ;;  %v1316_v12 = vld [vmem:[%s1830_s4 + $0x20] sm:$0xf0]  ;;  %v1289_v14 = vld [vmem:[%s1829_s3 + $0x8] sm:$0xf0]  ;;  %v1139_v17 = vor.u32 %v1299_v7, %v1138_v6 }
  0x2c   : > { %847 = vmatpush.bf16.msra.mxu3 %v1239_v46  ;;  %628 = vmatpush.bf16.msra.mxu2 %v1163_v56  ;;  %v1288_v15 = vld [vmem:[%s1829_s3 + $0x4] sm:$0xf]  ;;  %v1096_v16 = vld [vmem:[%s1829_s3 + $0xc] sm:$0xf0]  ;;  %v1333_v18 = vld [vmem:[%s1830_s4 + $0xac] sm:$0xf]  ;;  %v1203_v22 = vor.u32 %v1316_v12, %v1202_v11  ;;  %v1095_v25 = vor.u32 %v1289_v14, %v1094_v10  ;;  %v905_v56 = vstv %s1469_s9 }
  0x2d   : > { %604 = vmatpush.bf16.msra.mxu0 %v1131_v49  ;;  %v1276_v19 = vld [vmem:[%s1830_s4 + $0xb4] sm:$0xf0]  ;;  %v1282_v20 = vld [vmem:[%s1830_s4 + $0xb0] sm:$0xf]  ;;  %v1335_v21 = vld [vmem:[%s1830_s4 + $0xb8] sm:$0xf0]  ;;  %v1099_v29 = vor.u32 %v1288_v15, %v1096_v16 }
  0x2e   : > { %617 = vmatpush.bf16.msra.mxu1 %v1135_v52  ;;  %v1126_v23 = vld [vmem:[%s1829_s3 + $0x38] sm:$0xf]  ;;  %v1296_v24 = vld [vmem:[%s1829_s3 + $0x40] sm:$0xf0]  ;;  %v1190_v26 = vld [vmem:[%s1830_s4] sm:$0xf]  ;;  %v1279_v30 = vor.u32 %v1333_v18, %v1276_v19  ;;  %v1283_v31 = vor.u32 %v1335_v21, %v1282_v20 }
  0x2f   : > { %v1313_v27 = vld [vmem:[%s1830_s4 + $0x8] sm:$0xf0]  ;;  %v1687_v28 = vld [vmem:[#allocation2] sm:$0xff]  ;;  %v1330_v32 = vld [vmem:[%s1830_s4 + $0x94] sm:$0xf]  ;;  %v1127_v34 = vor.u32 %v1296_v24, %v1126_v23  ;;  %v1401_v52 = vmov 0  }
  0x30   : > { %848 = vmatpush.bf16.msra.mxu3 %v1227_v60  ;;  %629 = vmatpush.bf16.msra.mxu2 %v1151_v4  ;;  %v1264_v33 = vld [vmem:[%s1830_s4 + $0x9c] sm:$0xf0]  ;;  %v1270_v35 = vld [vmem:[%s1830_s4 + $0x98] sm:$0xf]  ;;  %v1332_v36 = vld [vmem:[%s1830_s4 + $0xa0] sm:$0xf0]  ;;  %v1191_v37 = vor.u32 %v1313_v27, %v1190_v26  ;;  %v431_v38 = vpack.c.bf16 %v1687_v28, %v1687_v28 }
  0x31   : > { %605 = vmatpush.bf16.msra.mxu0 %v1119_v61  ;;  %v1703_v39 = vld [vmem:[#allocation3] sm:$0xff]  ;;  %v1114_v40 = vld [vmem:[%s1829_s3 + $0x20] sm:$0xf]  ;;  %v1267_v42 = vor.u32 %v1330_v32, %v1264_v33  ;;  %v1271_v45 = vor.u32 %v1332_v36, %v1270_v35  ;;  %v1327_v47 = vld [vmem:[%s1830_s4 + $0x7c] sm:$0xf]  ;;  %1363 = vset.pattern.permute.xlu0 %v1401_v52 }
  0x32   : > { %618 = vmatpush.bf16.msra.mxu1 %v1123_v0  ;;  %v1293_v41 = vld [vmem:[%s1829_s3 + $0x28] sm:$0xf0]  ;;  %v429_v43 = vld [vmem:[%s1826_s0] sm:$0xff]  ;;  %v1717_v46 = vpack.c.bf16 %v1703_v39, %v1703_v39  ;;  %v1252_v48 = vld [vmem:[%s1830_s4 + $0x84] sm:$0xf0] }
  0x33   : > { %vm662_vm0 = vcmp.lt.s32.totalorder %v661_v44, %v429_v43  ;;  %v1258_v49 = vld [vmem:[%s1830_s4 + $0x80] sm:$0xf]  ;;  %v1329_v50 = vld [vmem:[%s1830_s4 + $0x88] sm:$0xf0]  ;;  %v1115_v51 = vor.u32 %v1293_v41, %v1114_v40  ;;  %v1102_v54 = vld [vmem:[%s1829_s3 + $0x8] sm:$0xf]  ;;  %v1255_v57 = vor.u32 %v1327_v47, %v1252_v48  ;;  %vm906_vm1 = vcmp.lt.s32.totalorder %v905_v56, %v429_v43 }
  0x34   : > { %849 = vmatpush.bf16.msra.mxu3 %v1215_v8  ;;  %630 = vmatpush.bf16.msra.mxu2 %v1139_v17  ;;  %v663_v53 = vsel %vm662_vm0, 1, %v1401_v52  ;;  %v1290_v55 = vld [vmem:[%s1829_s3 + $0x10] sm:$0xf0]  ;;  %v1259_v58 = vor.u32 %v1329_v50, %v1258_v49  ;;  %v1324_v59 = vld [vmem:[%s1830_s4 + $0x64] sm:$0xf]  ;;  %v907_v4 = vsel %vm906_vm1, 1, %v1401_v52 }
  0x35   : > { %606 = vmatpush.bf16.msra.mxu0 %v1107_v9  ;;  %665 = vperm.xlu0 %1363, %v663_v53   ;;  %v1240_v60 = vld [vmem:[%s1830_s4 + $0x6c] sm:$0xf0]  ;;  %v1246_v61 = vld [vmem:[%s1830_s4 + $0x68] sm:$0xf]  ;;  %v1326_v62 = vld [vmem:[%s1830_s4 + $0x70] sm:$0xf0]  ;;  %v1103_v63 = vor.u32 %v1290_v55, %v1102_v54 }
  0x36   : > { %619 = vmatpush.bf16.msra.mxu1 %v1111_v13  ;;  %v1243_v0 = vor.u32 %v1324_v59, %v1240_v60  ;;  %v1247_v1 = vor.u32 %v1326_v62, %v1246_v61  ;;  %v1321_v2 = vld [vmem:[%s1830_s4 + $0x4c] sm:$0xf]  ;;  %v1228_v3 = vld [vmem:[%s1830_s4 + $0x54] sm:$0xf0]  ;;  %v1234_v5 = vld [vmem:[%s1830_s4 + $0x50] sm:$0xf] }
  0x37   : > { %v1323_v6 = vld [vmem:[%s1830_s4 + $0x58] sm:$0xf0]  ;;  %v1231_v7 = vor.u32 %v1321_v2, %v1228_v3  ;;  %v1318_v9 = vld [vmem:[%s1830_s4 + $0x34] sm:$0xf]  ;;  %v1216_v10 = vld [vmem:[%s1830_s4 + $0x3c] sm:$0xf0] }
  0x38   : > { %850 = vmatpush.bf16.msra.mxu3 %v1203_v22  ;;  %631 = vmatpush.bf16.msra.mxu2 %v1127_v34  ;;  %v1235_v8 = vor.u32 %v1323_v6, %v1234_v5  ;;  %v1222_v11 = vld [vmem:[%s1830_s4 + $0x38] sm:$0xf]  ;;  %v1320_v12 = vld [vmem:[%s1830_s4 + $0x40] sm:$0xf0]  ;;  %v1219_v13 = vor.u32 %v1318_v9, %v1216_v10  ;;  %v1315_v15 = vld [vmem:[%s1830_s4 + $0x1c] sm:$0xf] }
  0x39   : > { %607 = vmatpush.bf16.msra.mxu0 %v1095_v25  ;;  %v1223_v14 = vor.u32 %v1320_v12, %v1222_v11  ;;  %v1204_v16 = vld [vmem:[%s1830_s4 + $0x24] sm:$0xf0]  ;;  %v1210_v17 = vld [vmem:[%s1830_s4 + $0x20] sm:$0xf]  ;;  %v1317_v18 = vld [vmem:[%s1830_s4 + $0x28] sm:$0xf0] }
  0x3a   : > { %620 = vmatpush.bf16.msra.mxu1 %v1099_v29  ;;  %v1207_v19 = vor.u32 %v1315_v15, %v1204_v16  ;;  %v1211_v20 = vor.u32 %v1317_v18, %v1210_v17  ;;  %v1312_v21 = vld [vmem:[%s1830_s4 + $0x4] sm:$0xf]  ;;  %v1192_v22 = vld [vmem:[%s1830_s4 + $0xc] sm:$0xf0]  ;;  %v1198_v23 = vld [vmem:[%s1830_s4 + $0x8] sm:$0xf] }
  0x3b   : > { %v1314_v24 = vld [vmem:[%s1830_s4 + $0x10] sm:$0xf0]  ;;  %v1195_v25 = vor.u32 %v1312_v21, %v1192_v22  ;;  %v464_v27 = vld [vmem:[%s1831_s5] sm:$0x7]  ;;  %v1284_v43 = vld [vmem:[%s1487_s24 + $0xc] sm:$0xff] }
  0x3c   : > { %851 = vmatpush.bf16.msra.mxu3 %v1191_v37  ;;  %608 = vmatmul.bf16.vlgmr.msra.gmra.mxu0 %v431_v38  ;;  %v1199_v26 = vor.u32 %v1314_v24, %v1198_v23  ;;  %v639_v29 = vld [vmem:[%s1482_s20] sm:$0xff]  ;;  %v468_v54 = vperm.slane %v464_v27, 2  ;;  %v640_v56 = vld [vmem:[%s1482_s20 + $0x8] sm:$0xf]  ;;  %v886_v9 = vunpack.c.h.bf16 %v1284_v43  ;;  %v1285_v11 = vld [vmem:[%s1487_s24 + $0x14] sm:$0xf] }
  0x3d   : > { %857 = vmatpush.bf16.msrb.mxu0 %v1279_v30  ;;  %621 = vmatmul.bf16.vlgmr.msra.gmra.mxu1 %v431_v38  ;;  %v466_v30 = vperm.slane %v464_v27, 0  ;;  %v641_v32 = vunpack.c.l.bf16 %v639_v29  ;;  %v642_v34 = vunpack.c.h.bf16 %v639_v29  ;;  %v708_v40 = vld [vmem:[%s1832_s6] sm:$0x7]  ;;  %v643_v62 = vunpack.c.l.bf16 %v640_v56 }
  0x3e   : > { %870 = vmatpush.bf16.msrb.mxu1 %v1283_v31  ;;  %632 = vmatpush.bf16.msra.mxu2 %v1115_v51  ;;  %v467_v31 = vperm.slane %v464_v27, 1  ;;  %v711_v6 = vperm.slane %v708_v40, 1  ;;  %v887_v21 = vunpack.c.l.bf16 %v1285_v11 }
  0x3f   : > { %852 = vmatmul.bf16.vlgmr.msra.gmra.mxu3 %v1717_v46  ;;  %909 = vperm.xlu0 %1363, %v907_v4  }
  0x41   : > { %858 = vmatpush.bf16.msrb.mxu0 %v1267_v42 }
  0x42   : > { %871 = vmatpush.bf16.msrb.mxu1 %v1271_v45  ;;  %633 = vmatpush.bf16.msra.mxu2 %v1103_v63  ;;  %v710_v45 = vperm.slane %v708_v40, 0 }
  0x45   : > { %859 = vmatpush.bf16.msrb.mxu0 %v1255_v57  ;;  %634 = vmatmul.bf16.vlgmr.msra.gmra.mxu2 %v431_v38 }
  0x46   : > { %872 = vmatpush.bf16.msrb.mxu1 %v1259_v58 }
  0x49   : > { %860 = vmatpush.bf16.msrb.mxu0 %v1243_v0 }
  0x4a   : > { %873 = vmatpush.bf16.msrb.mxu1 %v1247_v1 }
  0x4d   : > { %861 = vmatpush.bf16.msrb.mxu0 %v1231_v7  ;;  %v712_v7 = vperm.slane %v708_v40, 2 }
  0x4e   : > { %874 = vmatpush.bf16.msrb.mxu1 %v1235_v8 }
  0x51   : > { %862 = vmatpush.bf16.msrb.mxu0 %v1219_v13 }
  0x52   : > { %875 = vmatpush.bf16.msrb.mxu1 %v1223_v14 }
  0x55   : > { %863 = vmatpush.bf16.msrb.mxu0 %v1207_v19 }
  0x56   : > { %876 = vmatpush.bf16.msrb.mxu1 %v1211_v20 }
  0x59   : > { %864 = vmatpush.bf16.msrb.mxu0 %v1195_v25 }
  0x5a   : > { %877 = vmatpush.bf16.msrb.mxu1 %v1199_v26 }
  0x5c   : > { %865 = vmatmul.bf16.vlgmr.msrb.gmra.mxu0 %v1717_v46 }
  0x5d   : > { %878 = vmatmul.bf16.vlgmr.msrb.gmra.mxu1 %v1717_v46  ;;  %v885_v46 = vunpack.c.l.bf16 %v1284_v43 }
  0xa7   : > { %v666_v19 = vpop.permute.xlu0 %665 }
  0xa8   : > { %vm667_vm2 = vcmp.eq.s32.totalorder %v666_v19, 1 }
  0xb1   : > { %v910_v40 = vpop.permute.xlu0 %909 }
  0xb2   : > { %vm911_vm3 = vcmp.eq.s32.totalorder %v910_v40, 1 }
  0xb9   : > { %v609_v33 = vpop.f32.mrf.mxu0 }
  0xba   : > { %v610_v35 = vadd.f32 %v609_v33, %v466_v30  ;;  %v622_v36 = vpop.f32.mrf.mxu1 }
  0xbb   : > { %v623_v37 = vadd.f32 %v622_v36, %v467_v31 }
  0xbc   : > { %v644_v38 = vadd.f32 %v641_v32, %v610_v35 }
  0xbd   : > { %v645_v41 = vadd.f32 %v642_v34, %v623_v37 }
  0xbe   : > { %v646_v42 = vmul.f32 0.5, %v644_v38 }
  0xbf   : > { %v647_v44 = vmul.f32 0.5, %v645_v41 }
  0xc0   : > { %1364 = vtanh.f32 %v646_v42 }
  0xc1   : > { %v611_v47 = vpop.f32.mrf.mxu0  ;;  %1366 = vtanh.f32 %v647_v44 }
  0xc2   : > { %v853_v48 = vpop.f32.mrf.mxu3  ;;  %v624_v49 = vpop.f32.mrf.mxu1 }
  0xc3   : > { %v854_v50 = vadd.f32 %v853_v48, %v710_v45 }
  0xc5   : > { %v888_v51 = vadd.f32 %v885_v46, %v854_v50 }
  0xc6   : > { %v1365_v52 = vpop.eup %1364 }
  0xc7   : > { %v890_v53 = vmul.f32 0.5, %v888_v51  ;;  %v650_v55 = vadd.f32 1.0, %v1365_v52  ;;  %v1367_v57 = vpop.eup %1366 }
  0xc8   : > { %v635_v60 = vpop.f32.mrf.mxu2  ;;  %v651_v63 = vadd.f32 1.0, %v1367_v57 }
  0xc9   : > { %1368 = vtanh.f32 %v890_v53  ;;  %v652_v58 = vmul.f32 0.5, %v650_v55  ;;  %v636_v61 = vadd.f32 %v635_v60, %v468_v54 }
  0xca   : > { %v855_v59 = vpop.f32.mrf.mxu3  ;;  %v653_v3 = vmul.f32 0.5, %v651_v63 }
  0xcb   : > { %v654_v0 = vmul.f32 %v652_v58, %v636_v61 }
  0xcc   : > { %v657_v8 = vsub.f32 1.0, %v653_v3  ;;  %v659_v13 = vmul.f32 %v653_v3, %v1687_v28 }
  0xcd   : > { %v655_v2 = vadd.f32 %v654_v0, %v643_v62 }
  0xcf   : > { %v1369_v1 = vpop.eup %1368  ;;  %1370 = vtanh.f32 %v655_v2 }
  0xd0   : > { %v894_v4 = vadd.f32 1.0, %v1369_v1  ;;  %v637_v5 = vpop.f32.mrf.mxu2 }
  0xd2   : > { %v896_v12 = vmul.f32 0.5, %v894_v4 }
  0xd5   : > { %v1371_v14 = vpop.eup %1370 }
  0xd6   : > { %v658_v18 = vmul.f32 %v1371_v14, %v657_v8 }
  0xd8   : > { %v660_v23 = vadd.f32 %v659_v13, %v658_v18 }
  0xd9   : > { %v866_v10 = vpop.f32.mrf.mxu0 }
  0xda   : > { %v867_v15 = vadd.f32 %v866_v10, %v711_v6  ;;  %v879_v16 = vpop.f32.mrf.mxu1  ;;  %v668_v25 = vsel %vm667_vm2, %v660_v23, %v1687_v28  ;;  %v670_v26 = vsel %vm667_vm2, %v660_v23, 0.0 }
  0xdb   : > { %v880_v17 = vadd.f32 %v879_v16, %v712_v7  ;;  %669 = vst [vmem:[#allocation2] sm:$0xff] %v668_v25  ;;  %v671_v29 = vpack.c.bf16 %v670_v26, %v670_v26 }
  0xdc   : > { %v889_v20 = vadd.f32 %v886_v9, %v867_v15 }
  0xdd   : > { %v898_v22 = vmul.f32 %v896_v12, %v880_v17  ;;  %672 = vst [vmem:[%s1477_s17] sm:$0xf] %v671_v29 }
  0xde   : > { %v891_v24 = vmul.f32 0.5, %v889_v20 }
  0xdf   : > { %v899_v27 = vadd.f32 %v898_v22, %v887_v21 }
  0xe0   : > { %1372 = vtanh.f32 %v891_v24 }
  0xe1   : > { %v868_v30 = vpop.f32.mrf.mxu0  ;;  %1374 = vtanh.f32 %v899_v27 }
  0xe2   : > { %v881_v31 = vpop.f32.mrf.mxu1 }
  0xe6   : > { %v1373_v32 = vpop.eup %1372 }
  0xe7   : > { %v895_v33 = vadd.f32 1.0, %v1373_v32  ;;  %v1375_v35 = vpop.eup %1374 }
  0xe9   : > { %v897_v34 = vmul.f32 0.5, %v895_v33 }
  0xeb   : > { %v901_v36 = vsub.f32 1.0, %v897_v34  ;;  %v903_v38 = vmul.f32 %v897_v34, %v1703_v39 }
  0xed   : > { %v902_v37 = vmul.f32 %v1375_v35, %v901_v36 }
  0xef   : > { %v904_v28 = vadd.f32 %v903_v38, %v902_v37 }
  0xf1   : > { %v912_v41 = vsel %vm911_vm3, %v904_v28, %v1703_v39  ;;  %v914_v42 = vsel %vm911_vm3, %v904_v28, 0.0 }
  0xf2   : > { %913 = vst [vmem:[#allocation3] sm:$0xff] %v912_v41  ;;  %v915_v43 = vpack.c.bf16 %v914_v42, %v914_v42 }
  0xf4   : > { %916 = vst [vmem:[%s1492_s10] sm:$0xf] %v915_v43 }
  0xf5 PF: > { %s19_s29 = sadd.s32 1, %s1398_s29   ;;  %s1835_s27 = smov %s1394_s28 }
  0xf6   : > { %p16_p7 = scmp.ge.s32.totalorder %s19_s29, 10   ;;  %s1836_s28 = smov %s1838_s30 }
  0xf8   :  { %18 = sbr.rel (!%p16_p7) target bundleno = 2 (0x2), region = 100 }

// kernel: ds2_forward.9
= control target key start
LH: loop header
LB: loop body
LE: loop exit
PB: predicated region body
PF: predicated region fallthrough
CT: control target
= control target key end

     0   :  { %s1612_s1 = inlined_call_operand.vmem [shape: bf16[128,768], index: 1, kind: input, shape index: {}]   ;;  %s1613_s0 = inlined_call_operand.vmem [shape: bf16[64,128], index: 0, kind: input, shape index: {}]   ;;  %s1614_s2 = inlined_call_operand.vmem [shape: f32[1,768], index: 2, kind: input, shape index: {}]   ;;  %s1615_s3 = inlined_call_operand.vmem [shape: bf16[64,768], index: 3, kind: output, shape index: {}]  }
   0x1   :  { %v1055_v0 = vld [vmem:[%s1612_s1 + $0x150] sm:$0xf]  ;;  %v1126_v1 = vld [vmem:[%s1612_s1 + $0x164] sm:$0xf0]  ;;  %v1123_v2 = vld [vmem:[%s1612_s1 + $0x154] sm:$0xf] }
   0x2   :  { %v1056_v3 = vor.u32 %v1126_v1, %v1055_v0  ;;  %v1057_v4 = vld [vmem:[%s1612_s1 + $0x168] sm:$0xf0]  ;;  %v1031_v5 = vld [vmem:[%s1612_s1 + $0x120] sm:$0xf]  ;;  %v1120_v6 = vld [vmem:[%s1612_s1 + $0x134] sm:$0xf0] }
   0x3   :  { %v1060_v7 = vor.u32 %v1123_v2, %v1057_v4  ;;  %v1117_v8 = vld [vmem:[%s1612_s1 + $0x124] sm:$0xf]  ;;  %v1033_v9 = vld [vmem:[%s1612_s1 + $0x138] sm:$0xf0]  ;;  %v1032_v10 = vor.u32 %v1120_v6, %v1031_v5  ;;  %v1007_v12 = vld [vmem:[%s1612_s1 + $0xf0] sm:$0xf] }
   0x4   :  { %434 = vmatpush.bf16.msra.mxu0 %v1056_v3  ;;  %1129 = vmatpush.bf16.msra.mxu2 %v1056_v3  ;;  %v1036_v11 = vor.u32 %v1117_v8, %v1033_v9  ;;  %v1114_v13 = vld [vmem:[%s1612_s1 + $0x104] sm:$0xf0]  ;;  %v1111_v14 = vld [vmem:[%s1612_s1 + $0xf4] sm:$0xf]  ;;  %v1009_v15 = vld [vmem:[%s1612_s1 + $0x108] sm:$0xf0] }
   0x5   :  { %463 = vmatpush.bf16.msra.mxu1 %v1060_v7  ;;  %1137 = vmatpush.bf16.msra.mxu3 %v1060_v7  ;;  %v1008_v16 = vor.u32 %v1114_v13, %v1007_v12  ;;  %v1012_v17 = vor.u32 %v1111_v14, %v1009_v15  ;;  %v983_v18 = vld [vmem:[%s1612_s1 + $0xc0] sm:$0xf]  ;;  %v1108_v19 = vld [vmem:[%s1612_s1 + $0xd4] sm:$0xf0]  ;;  %v1105_v20 = vld [vmem:[%s1612_s1 + $0xc4] sm:$0xf] }
   0x6   :  { %v985_v21 = vld [vmem:[%s1612_s1 + $0xd8] sm:$0xf0]  ;;  %v984_v22 = vor.u32 %v1108_v19, %v983_v18  ;;  %v959_v24 = vld [vmem:[%s1612_s1 + $0x90] sm:$0xf]  ;;  %v1102_v25 = vld [vmem:[%s1612_s1 + $0xa4] sm:$0xf0] }
   0x7   :  { %v988_v23 = vor.u32 %v1105_v20, %v985_v21  ;;  %v1099_v26 = vld [vmem:[%s1612_s1 + $0x94] sm:$0xf]  ;;  %v961_v27 = vld [vmem:[%s1612_s1 + $0xa8] sm:$0xf0]  ;;  %v960_v28 = vor.u32 %v1102_v25, %v959_v24  ;;  %v935_v30 = vld [vmem:[%s1612_s1 + $0x60] sm:$0xf] }
   0x8   :  { %435 = vmatpush.bf16.msra.mxu0 %v1032_v10  ;;  %1130 = vmatpush.bf16.msra.mxu2 %v1032_v10  ;;  %v964_v29 = vor.u32 %v1099_v26, %v961_v27  ;;  %v1096_v31 = vld [vmem:[%s1612_s1 + $0x74] sm:$0xf0]  ;;  %v1093_v32 = vld [vmem:[%s1612_s1 + $0x64] sm:$0xf]  ;;  %v937_v33 = vld [vmem:[%s1612_s1 + $0x78] sm:$0xf0] }
   0x9   :  { %464 = vmatpush.bf16.msra.mxu1 %v1036_v11  ;;  %1138 = vmatpush.bf16.msra.mxu3 %v1036_v11  ;;  %v936_v34 = vor.u32 %v1096_v31, %v935_v30  ;;  %v940_v35 = vor.u32 %v1093_v32, %v937_v33  ;;  %v911_v36 = vld [vmem:[%s1612_s1 + $0x30] sm:$0xf]  ;;  %v1090_v37 = vld [vmem:[%s1612_s1 + $0x44] sm:$0xf0]  ;;  %v1087_v38 = vld [vmem:[%s1612_s1 + $0x34] sm:$0xf] }
   0xa   :  { %v913_v39 = vld [vmem:[%s1612_s1 + $0x48] sm:$0xf0]  ;;  %v912_v40 = vor.u32 %v1090_v37, %v911_v36  ;;  %v887_v42 = vld [vmem:[%s1612_s1] sm:$0xf]  ;;  %v1084_v43 = vld [vmem:[%s1612_s1 + $0x14] sm:$0xf0] }
   0xb   :  { %v916_v41 = vor.u32 %v1087_v38, %v913_v39  ;;  %v1081_v44 = vld [vmem:[%s1612_s1 + $0x4] sm:$0xf]  ;;  %v889_v45 = vld [vmem:[%s1612_s1 + $0x18] sm:$0xf0]  ;;  %v1063_v46 = vld [vmem:[%s1612_s1 + $0x158] sm:$0xf]  ;;  %v888_v50 = vor.u32 %v1084_v43, %v887_v42 }
   0xc   :  { %436 = vmatpush.bf16.msra.mxu0 %v1008_v16  ;;  %1131 = vmatpush.bf16.msra.mxu2 %v1008_v16  ;;  %v1127_v47 = vld [vmem:[%s1612_s1 + $0x16c] sm:$0xf0]  ;;  %v1124_v48 = vld [vmem:[%s1612_s1 + $0x15c] sm:$0xf]  ;;  %v1065_v49 = vld [vmem:[%s1612_s1 + $0x170] sm:$0xf0]  ;;  %v892_v51 = vor.u32 %v1081_v44, %v889_v45 }
   0xd   :  { %465 = vmatpush.bf16.msra.mxu1 %v1012_v17  ;;  %1139 = vmatpush.bf16.msra.mxu3 %v1012_v17  ;;  %v1276_v52 = vld [vmem:[%s1613_s0] sm:$0xff]  ;;  %v1281_v53 = vld [vmem:[%s1613_s0 + $0x10] sm:$0xff]  ;;  %v1128_v55 = vld [vmem:[%s1612_s1 + $0x174] sm:$0xf0]  ;;  %v1064_v56 = vor.u32 %v1127_v47, %v1063_v46  ;;  %v1068_v57 = vor.u32 %v1124_v48, %v1065_v49 }
   0xe   :  { %v1071_v54 = vld [vmem:[%s1612_s1 + $0x160] sm:$0xf]  ;;  %v1125_v58 = vld [vmem:[%s1612_s1 + $0x164] sm:$0xf]  ;;  %v1073_v59 = vld [vmem:[%s1612_s1 + $0x178] sm:$0xf0] }
   0xf   :  { %v1039_v60 = vld [vmem:[%s1612_s1 + $0x128] sm:$0xf]  ;;  %v1121_v61 = vld [vmem:[%s1612_s1 + $0x13c] sm:$0xf0]  ;;  %v1118_v62 = vld [vmem:[%s1612_s1 + $0x12c] sm:$0xf]  ;;  %v1072_v0 = vor.u32 %v1128_v55, %v1071_v54  ;;  %v1076_v1 = vor.u32 %v1125_v58, %v1073_v59 }
  0x10   :  { %437 = vmatpush.bf16.msra.mxu0 %v984_v22  ;;  %1132 = vmatpush.bf16.msra.mxu2 %v984_v22  ;;  %v1041_v63 = vld [vmem:[%s1612_s1 + $0x140] sm:$0xf0]  ;;  %v1047_v2 = vld [vmem:[%s1612_s1 + $0x130] sm:$0xf]  ;;  %v1122_v3 = vld [vmem:[%s1612_s1 + $0x144] sm:$0xf0]  ;;  %v1040_v4 = vor.u32 %v1121_v61, %v1039_v60 }
  0x11   :  { %466 = vmatpush.bf16.msra.mxu1 %v988_v23  ;;  %1140 = vmatpush.bf16.msra.mxu3 %v988_v23  ;;  %v1044_v5 = vor.u32 %v1118_v62, %v1041_v63  ;;  %v1119_v6 = vld [vmem:[%s1612_s1 + $0x134] sm:$0xf]  ;;  %v1049_v7 = vld [vmem:[%s1612_s1 + $0x148] sm:$0xf0]  ;;  %v1015_v8 = vld [vmem:[%s1612_s1 + $0xf8] sm:$0xf]  ;;  %v1048_v12 = vor.u32 %v1122_v3, %v1047_v2 }
  0x12   :  { %v1115_v9 = vld [vmem:[%s1612_s1 + $0x10c] sm:$0xf0]  ;;  %v1112_v10 = vld [vmem:[%s1612_s1 + $0xfc] sm:$0xf]  ;;  %v1017_v11 = vld [vmem:[%s1612_s1 + $0x110] sm:$0xf0]  ;;  %v1052_v13 = vor.u32 %v1119_v6, %v1049_v7 }
  0x13   :  { %v1023_v14 = vld [vmem:[%s1612_s1 + $0x100] sm:$0xf]  ;;  %v1116_v15 = vld [vmem:[%s1612_s1 + $0x114] sm:$0xf0]  ;;  %v1016_v16 = vor.u32 %v1115_v9, %v1015_v8  ;;  %v1020_v17 = vor.u32 %v1112_v10, %v1017_v11  ;;  %v1113_v18 = vld [vmem:[%s1612_s1 + $0x104] sm:$0xf] }
  0x14   :  { %438 = vmatpush.bf16.msra.mxu0 %v960_v28  ;;  %1133 = vmatpush.bf16.msra.mxu2 %v960_v28  ;;  %v1025_v19 = vld [vmem:[%s1612_s1 + $0x118] sm:$0xf0]  ;;  %v991_v20 = vld [vmem:[%s1612_s1 + $0xc8] sm:$0xf]  ;;  %v1109_v21 = vld [vmem:[%s1612_s1 + $0xdc] sm:$0xf0]  ;;  %v1024_v24 = vor.u32 %v1116_v15, %v1023_v14 }
  0x15   :  { %467 = vmatpush.bf16.msra.mxu1 %v964_v29  ;;  %1141 = vmatpush.bf16.msra.mxu3 %v964_v29  ;;  %v1106_v22 = vld [vmem:[%s1612_s1 + $0xcc] sm:$0xf]  ;;  %v993_v23 = vld [vmem:[%s1612_s1 + $0xe0] sm:$0xf0]  ;;  %v1028_v25 = vor.u32 %v1113_v18, %v1025_v19  ;;  %v999_v26 = vld [vmem:[%s1612_s1 + $0xd0] sm:$0xf]  ;;  %v992_v28 = vor.u32 %v1109_v21, %v991_v20 }
  0x16   :  { %v1110_v27 = vld [vmem:[%s1612_s1 + $0xe4] sm:$0xf0]  ;;  %v996_v29 = vor.u32 %v1106_v22, %v993_v23  ;;  %v1107_v30 = vld [vmem:[%s1612_s1 + $0xd4] sm:$0xf]  ;;  %v1001_v31 = vld [vmem:[%s1612_s1 + $0xe8] sm:$0xf0] }
  0x17   :  { %v967_v32 = vld [vmem:[%s1612_s1 + $0x98] sm:$0xf]  ;;  %v1103_v33 = vld [vmem:[%s1612_s1 + $0xac] sm:$0xf0]  ;;  %v1000_v36 = vor.u32 %v1110_v27, %v999_v26  ;;  %v1004_v37 = vor.u32 %v1107_v30, %v1001_v31  ;;  %v1386_v38 = vld [vmem:[%s1613_s0 + $0x8] sm:$0xff] }
  0x18   :  { %439 = vmatpush.bf16.msra.mxu0 %v936_v34  ;;  %1134 = vmatpush.bf16.msra.mxu2 %v936_v34  ;;  %v1100_v34 = vld [vmem:[%s1612_s1 + $0x9c] sm:$0xf]  ;;  %v968_v42 = vor.u32 %v1103_v33, %v967_v32  ;;  %v1101_v44 = vld [vmem:[%s1612_s1 + $0xa4] sm:$0xf]  ;;  %v943_v46 = vld [vmem:[%s1612_s1 + $0x68] sm:$0xf] }
  0x19   :  { %468 = vmatpush.bf16.msra.mxu1 %v940_v35  ;;  %1142 = vmatpush.bf16.msra.mxu3 %v940_v35  ;;  %v969_v35 = vld [vmem:[%s1612_s1 + $0xb0] sm:$0xf0]  ;;  %v1391_v39 = vld [vmem:[%s1613_s0 + $0x18] sm:$0xff]  ;;  %v1097_v47 = vld [vmem:[%s1612_s1 + $0x7c] sm:$0xf0] }
  0x1a   :  { %v972_v43 = vor.u32 %v1100_v34, %v969_v35  ;;  %v977_v45 = vld [vmem:[%s1612_s1 + $0xb8] sm:$0xf0]  ;;  %v1094_v48 = vld [vmem:[%s1612_s1 + $0x6c] sm:$0xf]  ;;  %v945_v49 = vld [vmem:[%s1612_s1 + $0x80] sm:$0xf0] }
  0x1b   :  { %v951_v54 = vld [vmem:[%s1612_s1 + $0x70] sm:$0xf]  ;;  %v1098_v55 = vld [vmem:[%s1612_s1 + $0x84] sm:$0xf0]  ;;  %v1095_v58 = vld [vmem:[%s1612_s1 + $0x74] sm:$0xf] }
  0x1c   :  { %440 = vmatpush.bf16.msra.mxu0 %v912_v40  ;;  %1135 = vmatpush.bf16.msra.mxu2 %v912_v40  ;;  %v975_v40 = vld [vmem:[%s1612_s1 + $0xa0] sm:$0xf]  ;;  %v953_v59 = vld [vmem:[%s1612_s1 + $0x88] sm:$0xf0]  ;;  %v919_v60 = vld [vmem:[%s1612_s1 + $0x38] sm:$0xf] }
  0x1d   :  { %469 = vmatpush.bf16.msra.mxu1 %v916_v41  ;;  %1143 = vmatpush.bf16.msra.mxu3 %v916_v41  ;;  %v1104_v41 = vld [vmem:[%s1612_s1 + $0xb4] sm:$0xf0]  ;;  %v1091_v61 = vld [vmem:[%s1612_s1 + $0x4c] sm:$0xf0]  ;;  %v1088_v62 = vld [vmem:[%s1612_s1 + $0x3c] sm:$0xf] }
  0x1e   :  { %v921_v63 = vld [vmem:[%s1612_s1 + $0x50] sm:$0xf0]  ;;  %v927_v2 = vld [vmem:[%s1612_s1 + $0x40] sm:$0xf]  ;;  %v1092_v3 = vld [vmem:[%s1612_s1 + $0x54] sm:$0xf0] }
  0x1f   :  { %v1089_v6 = vld [vmem:[%s1612_s1 + $0x44] sm:$0xf]  ;;  %v929_v7 = vld [vmem:[%s1612_s1 + $0x58] sm:$0xf0]  ;;  %v895_v8 = vld [vmem:[%s1612_s1 + $0x8] sm:$0xf] }
  0x20   :  { %441 = vmatpush.bf16.msra.mxu0 %v888_v50  ;;  %1136 = vmatpush.bf16.msra.mxu2 %v888_v50  ;;  %v976_v50 = vor.u32 %v1104_v41, %v975_v40  ;;  %v1085_v9 = vld [vmem:[%s1612_s1 + $0x1c] sm:$0xf0]  ;;  %v1082_v10 = vld [vmem:[%s1612_s1 + $0xc] sm:$0xf]  ;;  %v897_v11 = vld [vmem:[%s1612_s1 + $0x20] sm:$0xf0] }
  0x21   :  { %470 = vmatpush.bf16.msra.mxu1 %v892_v51  ;;  %1144 = vmatpush.bf16.msra.mxu3 %v892_v51  ;;  %v980_v51 = vor.u32 %v1101_v44, %v977_v45  ;;  %v903_v14 = vld [vmem:[%s1612_s1 + $0x10] sm:$0xf]  ;;  %v896_v15 = vor.u32 %v1085_v9, %v895_v8  ;;  %v1083_v18 = vld [vmem:[%s1612_s1 + $0x14] sm:$0xf]  ;;  %v905_v19 = vld [vmem:[%s1612_s1 + $0x28] sm:$0xf0] }
  0x22   :  { %v908_v21 = vor.u32 %v1083_v18, %v905_v19 }
  0x23   :  { %442 = vmatmul.bf16.vlgmr.msra.gmra.mxu0 %v1276_v52  ;;  %452 = vmatmul.bf16.vlgmr.msra.gmra.mxu2 %v1281_v53 }
  0x24   :  { %492 = vmatpush.bf16.msrb.mxu2 %v1064_v56  ;;  %471 = vmatmul.bf16.vlgmr.msra.gmra.mxu1 %v1276_v52  ;;  %v944_v56 = vor.u32 %v1097_v47, %v943_v46 }
  0x25   :  { %521 = vmatpush.bf16.msrb.mxu3 %v1068_v57  ;;  %550 = vmatpush.bf16.msrb.mxu0 %v1072_v0  ;;  %v948_v57 = vor.u32 %v1094_v48, %v945_v49  ;;  %v952_v0 = vor.u32 %v1098_v55, %v951_v54 }
  0x26   :  { %481 = vmatmul.bf16.vlgmr.msra.gmra.mxu3 %v1281_v53  ;;  %579 = vmatpush.bf16.msrb.mxu1 %v1076_v1  ;;  %v956_v1 = vor.u32 %v1095_v58, %v953_v59 }
  0x28   :  { %493 = vmatpush.bf16.msrb.mxu2 %v1040_v4  ;;  %v920_v4 = vor.u32 %v1091_v61, %v919_v60 }
  0x29   :  { %522 = vmatpush.bf16.msrb.mxu3 %v1044_v5  ;;  %551 = vmatpush.bf16.msrb.mxu0 %v1048_v12  ;;  %v924_v5 = vor.u32 %v1088_v62, %v921_v63  ;;  %v928_v12 = vor.u32 %v1092_v3, %v927_v2 }
  0x2a   :  { %580 = vmatpush.bf16.msrb.mxu1 %v1052_v13  ;;  %v932_v13 = vor.u32 %v1089_v6, %v929_v7 }
  0x2c   :  { %494 = vmatpush.bf16.msrb.mxu2 %v1016_v16  ;;  %v900_v16 = vor.u32 %v1082_v10, %v897_v11 }
  0x2d   :  { %523 = vmatpush.bf16.msrb.mxu3 %v1020_v17  ;;  %552 = vmatpush.bf16.msrb.mxu0 %v1024_v24  ;;  %v1086_v17 = vld [vmem:[%s1612_s1 + $0x24] sm:$0xf0] }
  0x2e   :  { %581 = vmatpush.bf16.msrb.mxu1 %v1028_v25  ;;  %v904_v20 = vor.u32 %v1086_v17, %v903_v14 }
  0x30   :  { %495 = vmatpush.bf16.msrb.mxu2 %v992_v28 }
  0x31   :  { %524 = vmatpush.bf16.msrb.mxu3 %v996_v29  ;;  %553 = vmatpush.bf16.msrb.mxu0 %v1000_v36 }
  0x32   :  { %582 = vmatpush.bf16.msrb.mxu1 %v1004_v37 }
  0x33   :  { %447 = vmatmul.bf16.gmra.mxu0 %v1386_v38  ;;  %457 = vmatmul.bf16.gmra.mxu2 %v1391_v39 }
  0x34   :  { %496 = vmatpush.bf16.msrb.mxu2 %v968_v42  ;;  %476 = vmatmul.bf16.gmra.mxu1 %v1386_v38 }
  0x35   :  { %525 = vmatpush.bf16.msrb.mxu3 %v972_v43  ;;  %554 = vmatpush.bf16.msrb.mxu0 %v976_v50 }
  0x36   :  { %486 = vmatmul.bf16.gmra.mxu3 %v1391_v39  ;;  %583 = vmatpush.bf16.msrb.mxu1 %v980_v51 }
  0x38   :  { %497 = vmatpush.bf16.msrb.mxu2 %v944_v56 }
  0x39   :  { %526 = vmatpush.bf16.msrb.mxu3 %v948_v57  ;;  %555 = vmatpush.bf16.msrb.mxu0 %v952_v0 }
  0x3a   :  { %584 = vmatpush.bf16.msrb.mxu1 %v956_v1 }
  0x3c   :  { %498 = vmatpush.bf16.msrb.mxu2 %v920_v4 }
  0x3d   :  { %527 = vmatpush.bf16.msrb.mxu3 %v924_v5  ;;  %556 = vmatpush.bf16.msrb.mxu0 %v928_v12 }
  0x3e   :  { %585 = vmatpush.bf16.msrb.mxu1 %v932_v13 }
  0x40   :  { %499 = vmatpush.bf16.msrb.mxu2 %v896_v15 }
  0x41   :  { %528 = vmatpush.bf16.msrb.mxu3 %v900_v16  ;;  %557 = vmatpush.bf16.msrb.mxu0 %v904_v20 }
  0x42   :  { %586 = vmatpush.bf16.msrb.mxu1 %v908_v21 }
  0x43   :  { %500 = vmatmul.bf16.vlgmr.msrb.gmra.mxu2 %v1276_v52 }
  0x44   :  { %558 = vmatmul.bf16.vlgmr.msrb.gmra.mxu0 %v1276_v52 }
  0x45   :  { %587 = vmatmul.bf16.vlgmr.msrb.gmra.mxu1 %v1276_v52 }
  0x46   :  { %529 = vmatmul.bf16.vlgmr.msrb.gmra.mxu3 %v1276_v52  ;;  %v755_v52 = vld [vmem:[%s1614_s2] sm:$0x3f] }
  0x47   :  { %v757_v22 = vperm.slane %v755_v52, 0  ;;  %v758_v23 = vperm.slane %v755_v52, 1  ;;  %v1521_v61 = vperm.slane %v755_v52, 4  ;;  %v1523_v0 = vperm.slane %v755_v52, 5 }
  0x48   :  { %v1527_v7 = vperm.slane %v755_v52, 2  ;;  %v1532_v8 = vperm.slane %v755_v52, 3 }
  0x53   :  { %505 = vmatmul.bf16.gmra.mxu2 %v1386_v38 }
  0x54   :  { %563 = vmatmul.bf16.gmra.mxu0 %v1386_v38 }
  0x55   :  { %592 = vmatmul.bf16.gmra.mxu1 %v1386_v38 }
  0x56   :  { %534 = vmatmul.bf16.gmra.mxu3 %v1386_v38 }
  0x63   :  { %510 = vmatmul.bf16.gmra.mxu2 %v1281_v53 }
  0x64   :  { %568 = vmatmul.bf16.gmra.mxu0 %v1281_v53 }
  0x65   :  { %597 = vmatmul.bf16.gmra.mxu1 %v1281_v53 }
  0x66   :  { %539 = vmatmul.bf16.gmra.mxu3 %v1281_v53 }
  0x73   :  { %515 = vmatmul.bf16.gmra.mxu2 %v1391_v39 }
  0x74   :  { %573 = vmatmul.bf16.gmra.mxu0 %v1391_v39 }
  0x75   :  { %602 = vmatmul.bf16.gmra.mxu1 %v1391_v39 }
  0x76   :  { %544 = vmatmul.bf16.gmra.mxu3 %v1391_v39 }
  0xa0   :  { %v443_v24 = vpop.f32.mrf.mxu0 }
  0xa1   :  { %v769_v25 = vadd.f32 %v757_v22, %v443_v24  ;;  %v472_v26 = vpop.f32.mrf.mxu1 }
  0xa2   :  { %v770_v27 = vadd.f32 %v758_v23, %v472_v26 }
  0xa4   :  { %v817_v28 = vpack.c.bf16 %v770_v27, %v769_v25 }
  0xa6   :  { %841 = vst [vmem:[%s1615_s3] sm:$0xff] %v817_v28  ;;  %v453_v53 = vpop.f32.mrf.mxu2 }
  0xa7   :  { %v793_v29 = vadd.f32 %v757_v22, %v453_v53 }
  0xa8   :  { %v445_v32 = vpop.f32.mrf.mxu0 }
  0xa9   :  { %v482_v30 = vpop.f32.mrf.mxu3  ;;  %v775_v33 = vadd.f32 %v757_v22, %v445_v32  ;;  %v474_v34 = vpop.f32.mrf.mxu1 }
  0xaa   :  { %v794_v31 = vadd.f32 %v758_v23, %v482_v30  ;;  %v776_v36 = vadd.f32 %v758_v23, %v474_v34 }
  0xac   :  { %v829_v35 = vpack.c.bf16 %v794_v31, %v793_v29  ;;  %v820_v37 = vpack.c.bf16 %v776_v36, %v775_v33 }
  0xae   :  { %853 = vst [vmem:[%s1615_s3 + $0x60] sm:$0xff] %v829_v35  ;;  %v455_v38 = vpop.f32.mrf.mxu2 }
  0xaf   :  { %844 = vst [vmem:[%s1615_s3 + $0x18] sm:$0xff] %v820_v37  ;;  %v799_v39 = vadd.f32 %v757_v22, %v455_v38 }
  0xb0   :  { %v448_v42 = vpop.f32.mrf.mxu0 }
  0xb1   :  { %v484_v40 = vpop.f32.mrf.mxu3  ;;  %v781_v43 = vadd.f32 %v757_v22, %v448_v42  ;;  %v477_v44 = vpop.f32.mrf.mxu1 }
  0xb2   :  { %v800_v41 = vadd.f32 %v758_v23, %v484_v40  ;;  %v782_v46 = vadd.f32 %v758_v23, %v477_v44 }
  0xb4   :  { %v832_v45 = vpack.c.bf16 %v800_v41, %v799_v39  ;;  %v823_v47 = vpack.c.bf16 %v782_v46, %v781_v43 }
  0xb6   :  { %856 = vst [vmem:[%s1615_s3 + $0x78] sm:$0xff] %v832_v45  ;;  %v458_v48 = vpop.f32.mrf.mxu2 }
  0xb7   :  { %847 = vst [vmem:[%s1615_s3 + $0x30] sm:$0xff] %v823_v47  ;;  %v805_v49 = vadd.f32 %v757_v22, %v458_v48 }
  0xb8   :  { %v450_v54 = vpop.f32.mrf.mxu0 }
  0xb9   :  { %v487_v50 = vpop.f32.mrf.mxu3  ;;  %v787_v55 = vadd.f32 %v757_v22, %v450_v54  ;;  %v479_v56 = vpop.f32.mrf.mxu1 }
  0xba   :  { %v806_v51 = vadd.f32 %v758_v23, %v487_v50  ;;  %v788_v58 = vadd.f32 %v758_v23, %v479_v56 }
  0xbc   :  { %v835_v57 = vpack.c.bf16 %v806_v51, %v805_v49  ;;  %v826_v59 = vpack.c.bf16 %v788_v58, %v787_v55 }
  0xbe   :  { %859 = vst [vmem:[%s1615_s3 + $0x90] sm:$0xff] %v835_v57  ;;  %v460_v60 = vpop.f32.mrf.mxu2 }
  0xbf   :  { %850 = vst [vmem:[%s1615_s3 + $0x48] sm:$0xff] %v826_v59  ;;  %v811_v62 = vadd.f32 %v757_v22, %v460_v60 }
  0xc1   :  { %v489_v63 = vpop.f32.mrf.mxu3  ;;  %v559_v2 = vpop.f32.mrf.mxu0 }
  0xc2   :  { %v812_v1 = vadd.f32 %v758_v23, %v489_v63  ;;  %v773_v4 = vadd.f32 %v1521_v61, %v559_v2  ;;  %v588_v5 = vpop.f32.mrf.mxu1 }
  0xc3   :  { %v774_v6 = vadd.f32 %v1523_v0, %v588_v5 }
  0xc4   :  { %v838_v3 = vpack.c.bf16 %v812_v1, %v811_v62 }
  0xc5   :  { %v819_v9 = vpack.c.bf16 %v774_v6, %v773_v4 }
  0xc6   :  { %862 = vst [vmem:[%s1615_s3 + $0xa8] sm:$0xff] %v838_v3  ;;  %v501_v10 = vpop.f32.mrf.mxu2 }
  0xc7   :  { %843 = vst [vmem:[%s1615_s3 + $0x10] sm:$0xff] %v819_v9  ;;  %v771_v11 = vadd.f32 %v1527_v7, %v501_v10 }
  0xc9   :  { %v530_v12 = vpop.f32.mrf.mxu3  ;;  %v561_v14 = vpop.f32.mrf.mxu0 }
  0xca   :  { %v772_v13 = vadd.f32 %v1532_v8, %v530_v12  ;;  %v779_v16 = vadd.f32 %v1521_v61, %v561_v14  ;;  %v590_v17 = vpop.f32.mrf.mxu1 }
  0xcb   :  { %v780_v18 = vadd.f32 %v1523_v0, %v590_v17 }
  0xcc   :  { %v818_v15 = vpack.c.bf16 %v772_v13, %v771_v11 }
  0xcd   :  { %v822_v19 = vpack.c.bf16 %v780_v18, %v779_v16 }
  0xce   :  { %842 = vst [vmem:[%s1615_s3 + $0x8] sm:$0xff] %v818_v15  ;;  %v503_v20 = vpop.f32.mrf.mxu2 }
  0xcf   :  { %846 = vst [vmem:[%s1615_s3 + $0x28] sm:$0xff] %v822_v19  ;;  %v777_v21 = vadd.f32 %v1527_v7, %v503_v20 }
  0xd1   :  { %v532_v52 = vpop.f32.mrf.mxu3  ;;  %v564_v23 = vpop.f32.mrf.mxu0 }
  0xd2   :  { %v778_v22 = vadd.f32 %v1532_v8, %v532_v52  ;;  %v785_v25 = vadd.f32 %v1521_v61, %v564_v23  ;;  %v593_v26 = vpop.f32.mrf.mxu1 }
  0xd3   :  { %v786_v27 = vadd.f32 %v1523_v0, %v593_v26 }
  0xd4   :  { %v821_v24 = vpack.c.bf16 %v778_v22, %v777_v21 }
  0xd5   :  { %v825_v28 = vpack.c.bf16 %v786_v27, %v785_v25 }
  0xd6   :  { %845 = vst [vmem:[%s1615_s3 + $0x20] sm:$0xff] %v821_v24  ;;  %v506_v53 = vpop.f32.mrf.mxu2 }
  0xd7   :  { %849 = vst [vmem:[%s1615_s3 + $0x40] sm:$0xff] %v825_v28  ;;  %v783_v29 = vadd.f32 %v1527_v7, %v506_v53 }
  0xd9   :  { %v535_v30 = vpop.f32.mrf.mxu3  ;;  %v566_v32 = vpop.f32.mrf.mxu0 }
  0xda   :  { %v784_v31 = vadd.f32 %v1532_v8, %v535_v30  ;;  %v791_v34 = vadd.f32 %v1521_v61, %v566_v32  ;;  %v595_v35 = vpop.f32.mrf.mxu1 }
  0xdb   :  { %v792_v36 = vadd.f32 %v1523_v0, %v595_v35 }
  0xdc   :  { %v824_v33 = vpack.c.bf16 %v784_v31, %v783_v29 }
  0xdd   :  { %v828_v37 = vpack.c.bf16 %v792_v36, %v791_v34 }
  0xde   :  { %848 = vst [vmem:[%s1615_s3 + $0x38] sm:$0xff] %v824_v33  ;;  %v508_v38 = vpop.f32.mrf.mxu2 }
  0xdf   :  { %852 = vst [vmem:[%s1615_s3 + $0x58] sm:$0xff] %v828_v37  ;;  %v789_v39 = vadd.f32 %v1527_v7, %v508_v38 }
  0xe1   :  { %v537_v40 = vpop.f32.mrf.mxu3  ;;  %v569_v42 = vpop.f32.mrf.mxu0 }
  0xe2   :  { %v790_v41 = vadd.f32 %v1532_v8, %v537_v40  ;;  %v797_v44 = vadd.f32 %v1521_v61, %v569_v42  ;;  %v598_v45 = vpop.f32.mrf.mxu1 }
  0xe3   :  { %v798_v46 = vadd.f32 %v1523_v0, %v598_v45 }
  0xe4   :  { %v827_v43 = vpack.c.bf16 %v790_v41, %v789_v39 }
  0xe5   :  { %v831_v47 = vpack.c.bf16 %v798_v46, %v797_v44 }
  0xe6   :  { %851 = vst [vmem:[%s1615_s3 + $0x50] sm:$0xff] %v827_v43  ;;  %v511_v48 = vpop.f32.mrf.mxu2 }
  0xe7   :  { %855 = vst [vmem:[%s1615_s3 + $0x70] sm:$0xff] %v831_v47  ;;  %v795_v49 = vadd.f32 %v1527_v7, %v511_v48 }
  0xe9   :  { %v540_v50 = vpop.f32.mrf.mxu3  ;;  %v571_v54 = vpop.f32.mrf.mxu0 }
  0xea   :  { %v796_v51 = vadd.f32 %v1532_v8, %v540_v50  ;;  %v803_v56 = vadd.f32 %v1521_v61, %v571_v54  ;;  %v600_v57 = vpop.f32.mrf.mxu1 }
  0xeb   :  { %v804_v58 = vadd.f32 %v1523_v0, %v600_v57 }
  0xec   :  { %v830_v55 = vpack.c.bf16 %v796_v51, %v795_v49 }
  0xed   :  { %v834_v59 = vpack.c.bf16 %v804_v58, %v803_v56 }
  0xee   :  { %854 = vst [vmem:[%s1615_s3 + $0x68] sm:$0xff] %v830_v55  ;;  %v513_v60 = vpop.f32.mrf.mxu2 }
  0xef   :  { %858 = vst [vmem:[%s1615_s3 + $0x88] sm:$0xff] %v834_v59  ;;  %v801_v62 = vadd.f32 %v1527_v7, %v513_v60 }
  0xf1   :  { %v542_v63 = vpop.f32.mrf.mxu3  ;;  %v574_v2 = vpop.f32.mrf.mxu0 }
  0xf2   :  { %v802_v1 = vadd.f32 %v1532_v8, %v542_v63  ;;  %v809_v4 = vadd.f32 %v1521_v61, %v574_v2  ;;  %v603_v5 = vpop.f32.mrf.mxu1 }
  0xf3   :  { %v810_v6 = vadd.f32 %v1523_v0, %v603_v5 }
  0xf4   :  { %v833_v3 = vpack.c.bf16 %v802_v1, %v801_v62 }
  0xf5   :  { %v837_v9 = vpack.c.bf16 %v810_v6, %v809_v4 }
  0xf6   :  { %857 = vst [vmem:[%s1615_s3 + $0x80] sm:$0xff] %v833_v3  ;;  %v516_v10 = vpop.f32.mrf.mxu2 }
  0xf7   :  { %861 = vst [vmem:[%s1615_s3 + $0xa0] sm:$0xff] %v837_v9  ;;  %v807_v11 = vadd.f32 %v1527_v7, %v516_v10 }
  0xf9   :  { %v545_v12 = vpop.f32.mrf.mxu3  ;;  %v576_v14 = vpop.f32.mrf.mxu0 }
  0xfa   :  { %v808_v13 = vadd.f32 %v1532_v8, %v545_v12  ;;  %v815_v16 = vadd.f32 %v1521_v61, %v576_v14  ;;  %v605_v17 = vpop.f32.mrf.mxu1 }
  0xfb   :  { %v816_v18 = vadd.f32 %v1523_v0, %v605_v17 }
  0xfc   :  { %v836_v15 = vpack.c.bf16 %v808_v13, %v807_v11 }
  0xfd   :  { %v840_v19 = vpack.c.bf16 %v816_v18, %v815_v16 }
  0xfe   :  { %860 = vst [vmem:[%s1615_s3 + $0x98] sm:$0xff] %v836_v15  ;;  %v518_v20 = vpop.f32.mrf.mxu2 }
  0xff   :  { %864 = vst [vmem:[%s1615_s3 + $0xb8] sm:$0xff] %v840_v19  ;;  %v813_v21 = vadd.f32 %v1527_v7, %v518_v20 }
 0x101   :  { %v547_v52 = vpop.f32.mrf.mxu3 }
 0x102   :  { %v814_v22 = vadd.f32 %v1532_v8, %v547_v52 }
 0x104   :  { %v839_v23 = vpack.c.bf16 %v814_v22, %v813_v21 }
 0x106   :  { %863 = vst [vmem:[%s1615_s3 + $0xb0] sm:$0xff] %v839_v23 }

// kernel: ds2_forward.13
= control target key start
LH: loop header
LB: loop body
LE: loop exit
PB: predicated region body
PF: predicated region fallthrough
CT: control target
= control target key end

     0   :  { %s511_s1 = inlined_call_operand.vmem [shape: bf16[128,128], index: 1, kind: input, shape index: {}]   ;;  %s512_s0 = inlined_call_operand.vmem [shape: bf16[64,128], index: 0, kind: input, shape index: {}]   ;;  %s513_s2 = inlined_call_operand.vmem [shape: f32[1,128], index: 2, kind: input, shape index: {}]   ;;  %s514_s3 = inlined_call_operand.vmem [shape: f32[64,128], index: 3, kind: output, shape index: {}]  }
   0x1   :  { %v349_v0 = vld [vmem:[%s511_s1 + $0x38] sm:$0xff]  ;;  %v348_v1 = vld [vmem:[%s511_s1 + $0x30] sm:$0xff]  ;;  %v347_v2 = vld [vmem:[%s511_s1 + $0x28] sm:$0xff] }
   0x2   :  { %130 = vmatpush.bf16.msra.mxu0 %v349_v0  ;;  %350 = vmatpush.bf16.msra.mxu1 %v349_v0  ;;  %v346_v3 = vld [vmem:[%s511_s1 + $0x20] sm:$0xff]  ;;  %v345_v4 = vld [vmem:[%s511_s1 + $0x18] sm:$0xff]  ;;  %v344_v5 = vld [vmem:[%s511_s1 + $0x10] sm:$0xff] }
   0x3   :  { %351 = vmatpush.bf16.msra.mxu2 %v349_v0  ;;  %352 = vmatpush.bf16.msra.mxu3 %v349_v0  ;;  %v343_v6 = vld [vmem:[%s511_s1 + $0x8] sm:$0xff]  ;;  %v342_v7 = vld [vmem:[%s511_s1] sm:$0xff]  ;;  %v340_v10 = vld [vmem:[%s512_s0 + $0x10] sm:$0xff] }
   0x4   :  { %v338_v8 = vld [vmem:[%s512_s0] sm:$0xff]  ;;  %v339_v9 = vld [vmem:[%s512_s0 + $0x8] sm:$0xff]  ;;  %v341_v11 = vld [vmem:[%s512_s0 + $0x18] sm:$0xff] }
   0x5   :  { %v375_v12 = vld [vmem:[%s513_s2] ss:$0 sm:$0xff] }
   0x6   :  { %131 = vmatpush.bf16.msra.mxu0 %v348_v1  ;;  %353 = vmatpush.bf16.msra.mxu1 %v348_v1 }
   0x7   :  { %354 = vmatpush.bf16.msra.mxu2 %v348_v1  ;;  %355 = vmatpush.bf16.msra.mxu3 %v348_v1 }
   0xa   :  { %132 = vmatpush.bf16.msra.mxu0 %v347_v2  ;;  %356 = vmatpush.bf16.msra.mxu1 %v347_v2 }
   0xb   :  { %357 = vmatpush.bf16.msra.mxu2 %v347_v2  ;;  %358 = vmatpush.bf16.msra.mxu3 %v347_v2 }
   0xe   :  { %133 = vmatpush.bf16.msra.mxu0 %v346_v3  ;;  %359 = vmatpush.bf16.msra.mxu1 %v346_v3 }
   0xf   :  { %360 = vmatpush.bf16.msra.mxu2 %v346_v3  ;;  %361 = vmatpush.bf16.msra.mxu3 %v346_v3 }
  0x12   :  { %134 = vmatpush.bf16.msra.mxu0 %v345_v4  ;;  %362 = vmatpush.bf16.msra.mxu1 %v345_v4 }
  0x13   :  { %363 = vmatpush.bf16.msra.mxu2 %v345_v4  ;;  %364 = vmatpush.bf16.msra.mxu3 %v345_v4 }
  0x16   :  { %135 = vmatpush.bf16.msra.mxu0 %v344_v5  ;;  %365 = vmatpush.bf16.msra.mxu1 %v344_v5 }
  0x17   :  { %366 = vmatpush.bf16.msra.mxu2 %v344_v5  ;;  %367 = vmatpush.bf16.msra.mxu3 %v344_v5 }
  0x1a   :  { %136 = vmatpush.bf16.msra.mxu0 %v343_v6  ;;  %368 = vmatpush.bf16.msra.mxu1 %v343_v6 }
  0x1b   :  { %369 = vmatpush.bf16.msra.mxu2 %v343_v6  ;;  %370 = vmatpush.bf16.msra.mxu3 %v343_v6 }
  0x1e   :  { %137 = vmatpush.bf16.msra.mxu0 %v342_v7  ;;  %371 = vmatpush.bf16.msra.mxu1 %v342_v7 }
  0x1f   :  { %372 = vmatpush.bf16.msra.mxu2 %v342_v7  ;;  %373 = vmatpush.bf16.msra.mxu3 %v342_v7 }
  0x21   :  { %138 = vmatmul.bf16.vlgmr.msra.gmra.mxu0 %v338_v8  ;;  %143 = vmatmul.bf16.vlgmr.msra.gmra.mxu1 %v339_v9 }
  0x22   :  { %148 = vmatmul.bf16.vlgmr.msra.gmra.mxu2 %v340_v10  ;;  %153 = vmatmul.bf16.vlgmr.msra.gmra.mxu3 %v341_v11 }
  0x9e   :  { %v139_v13 = vpop.f32.mrf.mxu0  ;;  %v144_v14 = vpop.f32.mrf.mxu1 }
  0x9f   :  { %v192_v15 = vadd.f32 %v375_v12, %v144_v14  ;;  %v190_v16 = vadd.f32 %v375_v12, %v139_v13 }
  0xa1   :  { %202 = vmax.xlane.f32.xlu1 %v192_v15  ;;  %198 = vmax.xlane.f32.xlu0 %v190_v16 }
  0xa5   :  { %v149_v17 = vpop.f32.mrf.mxu2  ;;  %v154_v18 = vpop.f32.mrf.mxu3 }
  0xa6   :  { %v141_v19 = vpop.f32.mrf.mxu0  ;;  %v146_v20 = vpop.f32.mrf.mxu1  ;;  %v194_v21 = vadd.f32 %v375_v12, %v149_v17  ;;  %v196_v28 = vadd.f32 %v375_v12, %v154_v18 }
  0xa7   :  { %v193_v22 = vadd.f32 %v375_v12, %v146_v20  ;;  %v191_v23 = vadd.f32 %v375_v12, %v141_v19 }
  0xa8   :  { %206 = vmax.xlane.f32.xlu2 %v194_v21 }
  0xa9   :  { %204 = vmax.xlane.f32.xlu1 %v193_v22  ;;  %200 = vmax.xlane.f32.xlu0 %v191_v23 }
  0xad   :  { %v151_v24 = vpop.f32.mrf.mxu2  ;;  %v156_v25 = vpop.f32.mrf.mxu3 }
  0xae   :  { %v195_v26 = vadd.f32 %v375_v12, %v151_v24  ;;  %v197_v27 = vadd.f32 %v375_v12, %v156_v25 }
  0xb0   :  { %208 = vmax.xlane.f32.xlu2 %v195_v26 }
  0xb1   :  { %212 = vmax.xlane.f32.xlu1 %v197_v27  ;;  %210 = vmax.xlane.f32.xlu0 %v196_v28 }
 0x114   :  { %v203_v29 = vpop.xlane.xlu1 %202  ;;  %v199_v30 = vpop.xlane.xlu0 %198 }
 0x115   :  { %v216_v31 = vsub.f32 %v192_v15, %v203_v29  ;;  %v214_v32 = vsub.f32 %v190_v16, %v199_v30 }
 0x117   :  { %v226_v33 = vmul.f32 1.442695, %v216_v31  ;;  %v222_v34 = vmul.f32 1.442695, %v214_v32 }
 0x119   :  { %376 = vpow2.f32 %v226_v33 }
 0x11a   :  { %378 = vpow2.f32 %v222_v34 }
 0x11b   :  { %v207_v35 = vpop.xlane.xlu2 %206 }
 0x11c   :  { %v467_v36 = vsub.f32 %v194_v21, %v207_v35  ;;  %v205_v37 = vpop.xlane.xlu1 %204  ;;  %v201_v38 = vpop.xlane.xlu0 %200 }
 0x11d   :  { %v469_v39 = vsub.f32 %v193_v22, %v205_v37  ;;  %v473_v43 = vsub.f32 %v191_v23, %v201_v38 }
 0x11e   :  { %v230_v40 = vmul.f32 1.442695, %v467_v36 }
 0x11f   :  { %v377_v41 = vpop.eup %376  ;;  %v228_v42 = vmul.f32 1.442695, %v469_v39  ;;  %v224_v45 = vmul.f32 1.442695, %v473_v43 }
 0x120   :  { %v379_v44 = vpop.eup %378  ;;  %380 = vpow2.f32 %v230_v40  ;;  %242 = vadd.xlane.f32.xlu1 %v377_v41 }
 0x121   :  { %382 = vpow2.f32 %v228_v42  ;;  %238 = vadd.xlane.f32.xlu2 %v379_v44 }
 0x122   :  { %384 = vpow2.f32 %v224_v45 }
 0x123   :  { %v209_v46 = vpop.xlane.xlu2 %208 }
 0x124   :  { %v476_v47 = vsub.f32 %v195_v26, %v209_v46  ;;  %v211_v48 = vpop.xlane.xlu0 %210  ;;  %v213_v49 = vpop.xlane.xlu1 %212 }
 0x125   :  { %v478_v50 = vsub.f32 %v196_v28, %v211_v48  ;;  %v221_v55 = vsub.f32 %v197_v27, %v213_v49 }
 0x126   :  { %v381_v51 = vpop.eup %380  ;;  %v232_v52 = vmul.f32 1.442695, %v476_v47 }
 0x127   :  { %v383_v53 = vpop.eup %382  ;;  %v234_v54 = vmul.f32 1.442695, %v478_v50  ;;  %246 = vadd.xlane.f32.xlu0 %v381_v51  ;;  %v236_v56 = vmul.f32 1.442695, %v221_v55 }
 0x128   :  { %386 = vpow2.f32 %v232_v52  ;;  %v385_v57 = vpop.eup %384 }
 0x129   :  { %244 = vadd.xlane.f32.xlu2 %v383_v53  ;;  %388 = vpow2.f32 %v234_v54 }
 0x12a   :  { %390 = vpow2.f32 %v236_v56 }
 0x12e   :  { %v387_v58 = vpop.eup %386 }
 0x12f   :  { %248 = vadd.xlane.f32.xlu1 %v387_v58  ;;  %240 = vadd.xlane.f32.xlu0 %v385_v57  ;;  %v389_v59 = vpop.eup %388 }
 0x130   :  { %v391_v60 = vpop.eup %390 }
 0x131   :  { %250 = vadd.xlane.f32.xlu2 %v389_v59 }
 0x137   :  { %252 = vadd.xlane.f32.xlu0 %v391_v60 }
 0x193   :  { %v243_v61 = vpop.xlane.xlu1 %242 }
 0x194   :  { %392 = vlog2.f32 %v243_v61  ;;  %v239_v62 = vpop.xlane.xlu2 %238 }
 0x195   :  { %394 = vlog2.f32 %v239_v62 }
 0x19a   :  { %v393_v63 = vpop.eup %392  ;;  %v247_v0 = vpop.xlane.xlu0 %246 }
 0x19b   :  { %v395_v1 = vpop.eup %394  ;;  %v259_v2 = vmul.f32 0.6931472, %v393_v63  ;;  %396 = vlog2.f32 %v247_v0 }
 0x19c   :  { %v255_v3 = vmul.f32 0.6931472, %v395_v1  ;;  %v245_v4 = vpop.xlane.xlu2 %244 }
 0x19d   :  { %v272_v5 = vsub.f32 %v216_v31, %v259_v2  ;;  %398 = vlog2.f32 %v245_v4 }
 0x19e   :  { %v270_v6 = vsub.f32 %v214_v32, %v255_v3 }
 0x19f   :  { %280 = vst [vmem:[%s514_s3 + $0x10] sm:$0xff] %v272_v5 }
 0x1a0   :  { %278 = vst [vmem:[%s514_s3] sm:$0xff] %v270_v6 }
 0x1a1   :  { %v397_v7 = vpop.eup %396 }
 0x1a2   :  { %v263_v8 = vmul.f32 0.6931472, %v397_v7  ;;  %v249_v9 = vpop.xlane.xlu1 %248  ;;  %v241_v10 = vpop.xlane.xlu0 %240 }
 0x1a3   :  { %v399_v11 = vpop.eup %398  ;;  %400 = vlog2.f32 %v249_v9 }
 0x1a4   :  { %v274_v12 = vsub.f32 %v467_v36, %v263_v8  ;;  %v261_v13 = vmul.f32 0.6931472, %v399_v11  ;;  %402 = vlog2.f32 %v241_v10  ;;  %v251_v14 = vpop.xlane.xlu2 %250 }
 0x1a5   :  { %404 = vlog2.f32 %v251_v14 }
 0x1a6   :  { %282 = vst [vmem:[%s514_s3 + $0x20] sm:$0xff] %v274_v12  ;;  %v273_v15 = vsub.f32 %v469_v39, %v261_v13 }
 0x1a8   :  { %281 = vst [vmem:[%s514_s3 + $0x18] sm:$0xff] %v273_v15 }
 0x1a9   :  { %v401_v16 = vpop.eup %400 }
 0x1aa   :  { %v403_v17 = vpop.eup %402  ;;  %v265_v18 = vmul.f32 0.6931472, %v401_v16  ;;  %v253_v19 = vpop.xlane.xlu0 %252 }
 0x1ab   :  { %v405_v20 = vpop.eup %404  ;;  %v257_v21 = vmul.f32 0.6931472, %v403_v17  ;;  %406 = vlog2.f32 %v253_v19 }
 0x1ac   :  { %v275_v22 = vsub.f32 %v476_v47, %v265_v18  ;;  %v267_v23 = vmul.f32 0.6931472, %v405_v20 }
 0x1ad   :  { %v271_v24 = vsub.f32 %v473_v43, %v257_v21 }
 0x1ae   :  { %283 = vst [vmem:[%s514_s3 + $0x28] sm:$0xff] %v275_v22  ;;  %v276_v25 = vsub.f32 %v478_v50, %v267_v23 }
 0x1af   :  { %279 = vst [vmem:[%s514_s3 + $0x8] sm:$0xff] %v271_v24 }
 0x1b0   :  { %284 = vst [vmem:[%s514_s3 + $0x30] sm:$0xff] %v276_v25 }
 0x1b1   :  { %v407_v26 = vpop.eup %406 }
 0x1b2   :  { %v269_v27 = vmul.f32 0.6931472, %v407_v26 }
 0x1b4   :  { %v277_v28 = vsub.f32 %v221_v55, %v269_v27 }
 0x1b6   :  { %285 = vst [vmem:[%s514_s3 + $0x38] sm:$0xff] %v277_v28 }

</bundles_post_ra>
